<compile_context>
chip_gen: v7x
topology: tpu7x:2x2x1
jax: 0.10.0
libtpu: 0.0.40
codegen_flags: <defaults>
</compile_context>

<pallas_src>
import jax
import jax.numpy as jnp
from jax import lax
from jax.experimental import pallas as pl
from jax.experimental.pallas import tpu as pltpu

_BN_EPS = 1e-5
_VMEM_LIMIT = 32 << 20          # leave headroom on v7x (64 MiB physical / TC)


def _round_up(x, m):
    return (x + m - 1) // m * m


# ---------------------------------------------------------------------------
# Pallas kernels
# ---------------------------------------------------------------------------
def _gemm_bias_relu_kernel(x_ref, w_ref, b_ref, o_ref):
    """One row-block of relu(x @ w + b); w streamed as bf16, f32 accumulation."""
    w = w_ref[...].astype(jnp.float32)
    y = jnp.dot(x_ref[...], w, preferred_element_type=jnp.float32) + b_ref[...]
    o_ref[...] = jnp.maximum(y, 0.0).astype(o_ref.dtype)


def _fc_head_kernel(x_ref, w1_ref, b1_ref, w2_ref, b2_ref, w3_ref, b3_ref, o_ref):
    """Fused classifier head: Linear+ReLU, Linear+ReLU, Linear (BN pre-folded)."""
    x = x_ref[...]                                               # (Bp, 3200) f32
    h1 = jnp.dot(x, w1_ref[...].astype(jnp.float32),
                 preferred_element_type=jnp.float32) + b1_ref[...]
    h1 = jnp.maximum(h1, 0.0)
    h2 = jnp.dot(h1, w2_ref[...].astype(jnp.float32),
                 preferred_element_type=jnp.float32) + b2_ref[...]
    h2 = jnp.maximum(h2, 0.0)
    o_ref[...] = (jnp.dot(h2, w3_ref[...].astype(jnp.float32),
                          preferred_element_type=jnp.float32)
                  + b3_ref[...]).astype(o_ref.dtype)


# ---------------------------------------------------------------------------
# Pallas-call wrappers
# ---------------------------------------------------------------------------
def _gemm_bias_relu(x, w, b, *, block_rows=256):
    """relu(x @ w + b): x (M,K) f32, w (K,N) bf16, b (N,) f32 -> (M,N) f32.

    N is padded to a multiple of 128 inside the kernel so the output block is
    lane-dense (unmasked vst); the pad is sliced off on return.
    """
    M, K = x.shape
    N = w.shape[1]
    Np = _round_up(N, 128)                      # lane-dense output stores
    if Np != N:
        w = jnp.pad(w, ((0, 0), (0, Np - N)))
        b = jnp.pad(b, ((0, Np - N),))

    if M > block_rows:
        Mp, bm = _round_up(M, block_rows), block_rows
    else:
        Mp = _round_up(M, 8)                    # sublane alignment
        bm = Mp
    if Mp != M:
        x = jnp.pad(x, ((0, Mp - M), (0, 0)))
    b2d = b.reshape(1, Np).astype(jnp.float32)

    flops = 2 * Mp * K * Np
    bytes_acc = (Mp * K * x.dtype.itemsize + w.size * w.dtype.itemsize
                 + Np * 4 + Mp * Np * 4)

    out = pl.pallas_call(
        _gemm_bias_relu_kernel,
        out_shape=jax.ShapeDtypeStruct((Mp, Np), jnp.float32),
        grid_spec=pltpu.PrefetchScalarGridSpec(
            num_scalar_prefetch=0,
            grid=(Mp // bm,),
            in_specs=[
                pl.BlockSpec((bm, K), lambda i: (i, 0)),   # activation stream
                pl.BlockSpec((K, Np), lambda i: (0, 0)),   # weights VMEM-resident
                pl.BlockSpec((1, Np), lambda i: (0, 0)),
            ],
            out_specs=pl.BlockSpec((bm, Np), lambda i: (i, 0)),
        ),
        compiler_params=pltpu.CompilerParams(
            dimension_semantics=("parallel",),
            vmem_limit_bytes=_VMEM_LIMIT),
        cost_estimate=pl.CostEstimate(flops=int(flops), transcendentals=0,
                                      bytes_accessed=int(bytes_acc)),
    )(x, w, b2d)
    return out[:M, :N]


def _fc_head(x, wf1, bf1, wf2, bf2, wf3, bf3):
    """Fused Linear(3200,256)+ReLU -> Linear(256,100)+ReLU -> Linear(100,10)."""
    B, K = x.shape
    Bp = _round_up(max(B, 8), 8)                 # pad batch to sublane multiple
    if Bp != B:
        x = jnp.pad(x, ((0, Bp - B), (0, 0)))

    N1 = wf1.shape[1]                            # 256
    n2, n3 = wf2.shape[1], wf3.shape[1]          # 100, 10
    N2 = _round_up(n2, 128)                      # lane-dense hidden  (128)
    N3 = _round_up(n3, 128)                      # lane-dense output  (128)
    w2p = jnp.pad(wf2, ((0, 0), (0, N2 - n2)))
    b2p = jnp.pad(bf2, ((0, N2 - n2),)).reshape(1, N2).astype(jnp.float32)
    w3p = jnp.pad(wf3, ((0, N2 - n2), (0, N3 - n3)))
    b3p = jnp.pad(bf3, ((0, N3 - n3),)).reshape(1, N3).astype(jnp.float32)
    b1r = bf1.reshape(1, N1).astype(jnp.float32)

    full = lambda shape: pl.BlockSpec(shape, lambda: (0,) * len(shape))
    flops = 2 * Bp * (K * N1 + N1 * N2 + N2 * N3)
    bytes_acc = (Bp * K * 4 + wf1.size * 2 + w2p.size * 2 + w3p.size * 2
                 + (N1 + N2 + N3) * 4 + Bp * N3 * 4)

    out = pl.pallas_call(
        _fc_head_kernel,
        out_shape=jax.ShapeDtypeStruct((Bp, N3), jnp.float32),
        grid_spec=pltpu.PrefetchScalarGridSpec(
            num_scalar_prefetch=0,
            grid=(),
            in_specs=[full((Bp, K)),
                      full(wf1.shape), full((1, N1)),
                      full((N1, N2)), full((1, N2)),
                      full((N2, N3)), full((1, N3))],
            out_specs=full((Bp, N3)),
        ),
        compiler_params=pltpu.CompilerParams(vmem_limit_bytes=_VMEM_LIMIT),
        cost_estimate=pl.CostEstimate(flops=int(flops), transcendentals=0,
                                      bytes_accessed=int(bytes_acc)),
    )(x, wf1, b1r, w2p, b2p, w3p, b3p)
    return out[:B, :n3]


# ---------------------------------------------------------------------------
# Forward pass (XLA-side layout plumbing + Pallas compute)
# ---------------------------------------------------------------------------
def _im2col_5x5(x):
    """x: (B, Hp, Wp, C) padded NHWC -> (B*Ho*Wo, 25*C) patches in (dy,dx,c) order."""
    B, Hp, Wp, C = x.shape
    Ho, Wo = Hp - 4, Wp - 4
    cols = [x[:, dy:dy + Ho, dx:dx + Wo, :] for dy in range(5) for dx in range(5)]
    patches = jnp.stack(cols, axis=3)                     # (B, Ho, Wo, 25, C)
    return patches.reshape(B * Ho * Wo, 25 * C), (B, Ho, Wo)


def _maxpool2x2(x):
    B, H, W, C = x.shape
    return x.reshape(B, H // 2, 2, W // 2, 2, C).max(axis=(2, 4))


def dann_source_forward(img, params):
    """img: (B, 3, 28, 28) f32 NCHW -> class logits (B, 10)."""
    (wc1, bc1), (wc2, bc2), (wc3, bc3), (wf1, bf1), (wf2, bf2), (wf3, bf3) = params
    B = img.shape[0]
    x = jnp.transpose(img, (0, 2, 3, 1))                  # NHWC

    def conv_block(x, w_hwio, b, pool):
        # Conv2d(k=5, s=1, p=1) + folded BN + ReLU (+ optional 2x2 max-pool),
        # lowered to an im2col GEMM that runs in Pallas.
        cin, cout = w_hwio.shape[2], w_hwio.shape[3]
        xp = jnp.pad(x, ((0, 0), (1, 1), (1, 1), (0, 0)))
        cols, (bq, ho, wo) = _im2col_5x5(xp)
        y = _gemm_bias_relu(cols, w_hwio.reshape(25 * cin, cout), b)
        y = y.reshape(bq, ho, wo, cout)
        return _maxpool2x2(y) if pool else y

    x = conv_block(x, wc1, bc1, pool=False)               # (B, 26, 26, 32)
    x = conv_block(x, wc2, bc2, pool=True)                # (B, 12, 12, 64)
    # TODO(synk): Dropout2d is identity in eval mode; training-mode channel
    # masking (pltpu.prng_*) is not implemented.
    x = conv_block(x, wc3, bc3, pool=True)                # (B, 5, 5, 128)
    x = jnp.transpose(x, (0, 3, 1, 2)).reshape(B, -1)     # torch x.view(B, -1): (B, 3200)
    return _fc_head(x, wf1, bf1, wf2, bf2, wf3, bf3)      # (B, 10)


# ---------------------------------------------------------------------------
# Parameters (synthetic, torch layouts) + eval-mode BN folding
# ---------------------------------------------------------------------------
def init_raw_params(key):
    keys = iter(jax.random.split(key, 40))

    def uni(shape, bound):
        return jax.random.uniform(next(keys), shape, jnp.float32, -bound, bound)

    def bn(c):
        return dict(gamma=jax.random.uniform(next(keys), (c,), jnp.float32, 0.5, 1.5),
                    beta=uni((c,), 0.1),
                    mean=uni((c,), 0.1),
                    var=jax.random.uniform(next(keys), (c,), jnp.float32, 0.5, 1.5))

    def conv(cin, cout):
        bound = 1.0 / (cin * 25) ** 0.5
        return dict(w=uni((cout, cin, 5, 5), bound), b=uni((cout,), bound), **bn(cout))

    def linear(fin, fout, with_bn):
        bound = 1.0 / fin ** 0.5
        p = dict(w=uni((fout, fin), bound), b=uni((fout,), bound))
        if with_bn:
            p.update(bn(fout))
        return p

    return dict(conv1=conv(3, 32), conv2=conv(32, 64), conv3=conv(64, 128),
                fc1=linear(3200, 256, True), fc2=linear(256, 100, True),
                fc3=linear(100, 10, False))


def fold_params(raw):
    """Fold eval-mode BatchNorm into the preceding conv/linear weights and store
    weights in bf16 (halves the dominant HBM weight stream; the kernels
    accumulate in f32). Biases stay f32."""
    def bn_scale_shift(p):
        scale = p["gamma"] / jnp.sqrt(p["var"] + _BN_EPS)
        shift = p["beta"] - p["mean"] * scale
        return scale, shift

    def conv(p):
        scale, shift = bn_scale_shift(p)
        w = p["w"] * scale[:, None, None, None]           # (Cout, Cin, 5, 5)
        b = p["b"] * scale + shift
        w_hwio = jnp.transpose(w, (2, 3, 1, 0))           # (5, 5, Cin, Cout)
        return w_hwio.astype(jnp.bfloat16), b.astype(jnp.float32)

    def linear(p):
        w, b = p["w"], p["b"]                             # (out, in), (out,)
        if "gamma" in p:
            scale, shift = bn_scale_shift(p)
            w = w * scale[:, None]
            b = b * scale + shift
        return jnp.transpose(w).astype(jnp.bfloat16), b.astype(jnp.float32)

    return (conv(raw["conv1"]), conv(raw["conv2"]), conv(raw["conv3"]),
            linear(raw["fc1"]), linear(raw["fc2"]), linear(raw["fc3"]))


# ---------------------------------------------------------------------------
# Independent plain-JAX reference (lax.conv / reduce_window / jnp.dot)
# ---------------------------------------------------------------------------
def reference_forward(img, params):
    (wc1, bc1), (wc2, bc2), (wc3, bc3), (wf1, bf1), (wf2, bf2), (wf3, bf3) = params
    hi = lax.Precision.HIGHEST
    f32 = lambda a: a.astype(jnp.float32)

    def conv_bn_relu(x, w, b):
        y = lax.conv_general_dilated(x, f32(w), window_strides=(1, 1),
                                     padding=[(1, 1), (1, 1)],
                                     dimension_numbers=("NHWC", "HWIO", "NHWC"),
                                     precision=hi)
        return jnp.maximum(y + b, 0.0)

    def pool(x):
        return lax.reduce_window(x, -jnp.inf, lax.max,
                                 (1, 2, 2, 1), (1, 2, 2, 1), "VALID")

    x = jnp.transpose(img, (0, 2, 3, 1))
    x = conv_bn_relu(x, wc1, bc1)
    x = pool(conv_bn_relu(x, wc2, bc2))
    x = pool(conv_bn_relu(x, wc3, bc3))
    x = jnp.transpose(x, (0, 3, 1, 2)).reshape(img.shape[0], -1)
    h = jnp.maximum(jnp.dot(x, f32(wf1), precision=hi) + bf1, 0.0)
    h = jnp.maximum(jnp.dot(h, f32(wf2), precision=hi) + bf2, 0.0)
    return jnp.dot(h, f32(wf3), precision=hi) + bf3


if __name__ == "__main__":
    key = jax.random.PRNGKey(0)
    k_img, k_par = jax.random.split(key)

    # 28x28 RGB input (MNIST-M-like): 3->32->64->128 channels, flatten = 3200.
    B = 2
    img = jax.random.normal(k_img, (B, 3, 28, 28), jnp.float32)
    params = fold_params(init_raw_params(k_par))

    fwd = jax.jit(dann_source_forward)
    out = jax.block_until_ready(fwd(img, params))

    ref = reference_forward(img, params)
    assert out.shape == (B, 10), out.shape
    max_err = float(jnp.max(jnp.abs(out - ref)))
    assert jnp.allclose(out, ref, atol=2e-3, rtol=2e-3), f"max err {max_err}"

    print("KERNEL_OK")
</pallas_src>

<mosaic_0001>
module attributes {stable_mosaic.version = 11 : i64} {
  func.func @_gemm_bias_relu_kernel(%arg0: i32, %arg1: memref<256x75xf32, #tpu.memory_space<vmem>>, %arg2: memref<75x128xbf16, #tpu.memory_space<vmem>>, %arg3: memref<1x128xf32, #tpu.memory_space<vmem>>, %arg4: memref<256x128xf32, #tpu.memory_space<vmem>>) attributes {dimension_semantics = [#tpu.dimension_semantics<parallel>], iteration_bounds = array<i64: 6>, scalar_prefetch = 0 : i64, scratch_operands = 0 : i64, tpu.core_type = #tpu.core_type<tc>, window_params = [{transform_indices = @transform_0, window_bounds = array<i64: 256, 75>}, {pipeline_mode = #tpu.pipeline_mode<synchronous>, transform_indices = @transform_1, window_bounds = array<i64: 75, 128>}, {pipeline_mode = #tpu.pipeline_mode<synchronous>, transform_indices = @transform_2, window_bounds = array<i64: 1, 128>}, {transform_indices = @transform_3, window_bounds = array<i64: 256, 128>}]} {
    %c0 = arith.constant 0 : index
    %c0_0 = arith.constant 0 : index
    %0 = vector.load %arg2[%c0, %c0_0] : memref<75x128xbf16, #tpu.memory_space<vmem>>, vector<75x128xbf16>
    %1 = arith.extf %0 : vector<75x128xbf16> to vector<75x128xf32>
    %c0_1 = arith.constant 0 : index
    %c0_2 = arith.constant 0 : index
    %2 = vector.load %arg1[%c0_1, %c0_2] : memref<256x75xf32, #tpu.memory_space<vmem>>, vector<256x75xf32>
    %cst = arith.constant dense<0.000000e+00> : vector<256x128xf32>
    %3 = tpu.matmul %2, %1, %cst {dimension_numbers = #tpu.dot_dimension_numbers<[1], [0], [0], [1], [0, 0, 1, 1], [], []>} : vector<256x75xf32>, vector<75x128xf32>, vector<256x128xf32> -> vector<256x128xf32>
    %c0_3 = arith.constant 0 : index
    %c0_4 = arith.constant 0 : index
    %4 = vector.load %arg3[%c0_3, %c0_4] : memref<1x128xf32, #tpu.memory_space<vmem>>, vector<1x128xf32>
    %5 = vector.broadcast %4 : vector<1x128xf32> to vector<256x128xf32>
    %6 = arith.addf %3, %5 : vector<256x128xf32>
    %cst_5 = arith.constant 0.000000e+00 : f32
    %7 = vector.broadcast %cst_5 : f32 to vector<256x128xf32>
    %8 = arith.maximumf %6, %7 : vector<256x128xf32>
    %c0_6 = arith.constant 0 : index
    %c0_7 = arith.constant 0 : index
    %9 = vector.load %arg4[%c0_6, %c0_7] : memref<256x128xf32, #tpu.memory_space<vmem>>, vector<256x128xf32>
    tpu.vector_store %arg4[%c0_6, %c0_7], %8 {strides = array<i32>} : memref<256x128xf32, #tpu.memory_space<vmem>>, vector<256x128xf32>,
    return
  }
  func.func @transform_0(%arg0: i32) -> (i32, i32) {
    %c0_i32 = arith.constant 0 : i32
    %c0_i32_0 = arith.constant 0 : i32
    return %arg0, %c0_i32 : i32, i32
  }
  func.func @transform_1(%arg0: i32) -> (i32, i32) {
    %c0_i32 = arith.constant 0 : i32
    %c0_i32_0 = arith.constant 0 : i32
    %c0_i32_1 = arith.constant 0 : i32
    return %c0_i32, %c0_i32_0 : i32, i32
  }
  func.func @transform_2(%arg0: i32) -> (i32, i32) {
    %c0_i32 = arith.constant 0 : i32
    %c0_i32_0 = arith.constant 0 : i32
    %c0_i32_1 = arith.constant 0 : i32
    return %c0_i32, %c0_i32_0 : i32, i32
  }
  func.func @transform_3(%arg0: i32) -> (i32, i32) {
    %c0_i32 = arith.constant 0 : i32
    %c0_i32_0 = arith.constant 0 : i32
    return %arg0, %c0_i32 : i32, i32
  }
}

module attributes {stable_mosaic.version = 11 : i64} {
  func.func @_gemm_bias_relu_kernel(%arg0: i32, %arg1: memref<256x800xf32, #tpu.memory_space<vmem>>, %arg2: memref<800x128xbf16, #tpu.memory_space<vmem>>, %arg3: memref<1x128xf32, #tpu.memory_space<vmem>>, %arg4: memref<256x128xf32, #tpu.memory_space<vmem>>) attributes {dimension_semantics = [#tpu.dimension_semantics<parallel>], iteration_bounds = array<i64: 5>, scalar_prefetch = 0 : i64, scratch_operands = 0 : i64, tpu.core_type = #tpu.core_type<tc>, window_params = [{transform_indices = @transform_0, window_bounds = array<i64: 256, 800>}, {pipeline_mode = #tpu.pipeline_mode<synchronous>, transform_indices = @transform_1, window_bounds = array<i64: 800, 128>}, {pipeline_mode = #tpu.pipeline_mode<synchronous>, transform_indices = @transform_2, window_bounds = array<i64: 1, 128>}, {transform_indices = @transform_3, window_bounds = array<i64: 256, 128>}]} {
    %c0 = arith.constant 0 : index
    %c0_0 = arith.constant 0 : index
    %0 = vector.load %arg2[%c0, %c0_0] : memref<800x128xbf16, #tpu.memory_space<vmem>>, vector<800x128xbf16>
    %1 = arith.extf %0 : vector<800x128xbf16> to vector<800x128xf32>
    %c0_1 = arith.constant 0 : index
    %c0_2 = arith.constant 0 : index
    %2 = vector.load %arg1[%c0_1, %c0_2] : memref<256x800xf32, #tpu.memory_space<vmem>>, vector<256x800xf32>
    %cst = arith.constant dense<0.000000e+00> : vector<256x128xf32>
    %3 = tpu.matmul %2, %1, %cst {dimension_numbers = #tpu.dot_dimension_numbers<[1], [0], [0], [1], [0, 0, 1, 1], [], []>} : vector<256x800xf32>, vector<800x128xf32>, vector<256x128xf32> -> vector<256x128xf32>
    %c0_3 = arith.constant 0 : index
    %c0_4 = arith.constant 0 : index
    %4 = vector.load %arg3[%c0_3, %c0_4] : memref<1x128xf32, #tpu.memory_space<vmem>>, vector<1x128xf32>
    %5 = vector.broadcast %4 : vector<1x128xf32> to vector<256x128xf32>
    %6 = arith.addf %3, %5 : vector<256x128xf32>
    %cst_5 = arith.constant 0.000000e+00 : f32
    %7 = vector.broadcast %cst_5 : f32 to vector<256x128xf32>
    %8 = arith.maximumf %6, %7 : vector<256x128xf32>
    %c0_6 = arith.constant 0 : index
    %c0_7 = arith.constant 0 : index
    %9 = vector.load %arg4[%c0_6, %c0_7] : memref<256x128xf32, #tpu.memory_space<vmem>>, vector<256x128xf32>
    tpu.vector_store %arg4[%c0_6, %c0_7], %8 {strides = array<i32>} : memref<256x128xf32, #tpu.memory_space<vmem>>, vector<256x128xf32>,
    return
  }
  func.func @transform_0(%arg0: i32) -> (i32, i32) {
    %c0_i32 = arith.constant 0 : i32
    %c0_i32_0 = arith.constant 0 : i32
    return %arg0, %c0_i32 : i32, i32
  }
  func.func @transform_1(%arg0: i32) -> (i32, i32) {
    %c0_i32 = arith.constant 0 : i32
    %c0_i32_0 = arith.constant 0 : i32
    %c0_i32_1 = arith.constant 0 : i32
    return %c0_i32, %c0_i32_0 : i32, i32
  }
  func.func @transform_2(%arg0: i32) -> (i32, i32) {
    %c0_i32 = arith.constant 0 : i32
    %c0_i32_0 = arith.constant 0 : i32
    %c0_i32_1 = arith.constant 0 : i32
    return %c0_i32, %c0_i32_0 : i32, i32
  }
  func.func @transform_3(%arg0: i32) -> (i32, i32) {
    %c0_i32 = arith.constant 0 : i32
    %c0_i32_0 = arith.constant 0 : i32
    return %arg0, %c0_i32 : i32, i32
  }
}

module attributes {stable_mosaic.version = 11 : i64} {
  func.func @_gemm_bias_relu_kernel(%arg0: i32, %arg1: memref<200x1600xf32, #tpu.memory_space<vmem>>, %arg2: memref<1600x128xbf16, #tpu.memory_space<vmem>>, %arg3: memref<1x128xf32, #tpu.memory_space<vmem>>, %arg4: memref<200x128xf32, #tpu.memory_space<vmem>>) attributes {dimension_semantics = [#tpu.dimension_semantics<parallel>], iteration_bounds = array<i64: 1>, scalar_prefetch = 0 : i64, scratch_operands = 0 : i64, tpu.core_type = #tpu.core_type<tc>, window_params = [{transform_indices = @transform_0, window_bounds = array<i64: 200, 1600>}, {pipeline_mode = #tpu.pipeline_mode<synchronous>, transform_indices = @transform_1, window_bounds = array<i64: 1600, 128>}, {pipeline_mode = #tpu.pipeline_mode<synchronous>, transform_indices = @transform_2, window_bounds = array<i64: 1, 128>}, {transform_indices = @transform_3, window_bounds = array<i64: 200, 128>}]} {
    %c0 = arith.constant 0 : index
    %c0_0 = arith.constant 0 : index
    %0 = vector.load %arg2[%c0, %c0_0] : memref<1600x128xbf16, #tpu.memory_space<vmem>>, vector<1600x128xbf16>
    %1 = arith.extf %0 : vector<1600x128xbf16> to vector<1600x128xf32>
    %c0_1 = arith.constant 0 : index
    %c0_2 = arith.constant 0 : index
    %2 = vector.load %arg1[%c0_1, %c0_2] : memref<200x1600xf32, #tpu.memory_space<vmem>>, vector<200x1600xf32>
    %cst = arith.constant dense<0.000000e+00> : vector<200x128xf32>
    %3 = tpu.matmul %2, %1, %cst {dimension_numbers = #tpu.dot_dimension_numbers<[1], [0], [0], [1], [0, 0, 1, 1], [], []>} : vector<200x1600xf32>, vector<1600x128xf32>, vector<200x128xf32> -> vector<200x128xf32>
    %c0_3 = arith.constant 0 : index
    %c0_4 = arith.constant 0 : index
    %4 = vector.load %arg3[%c0_3, %c0_4] : memref<1x128xf32, #tpu.memory_space<vmem>>, vector<1x128xf32>
    %5 = vector.broadcast %4 : vector<1x128xf32> to vector<200x128xf32>
    %6 = arith.addf %3, %5 : vector<200x128xf32>
    %cst_5 = arith.constant 0.000000e+00 : f32
    %7 = vector.broadcast %cst_5 : f32 to vector<200x128xf32>
    %8 = arith.maximumf %6, %7 : vector<200x128xf32>
    %c0_6 = arith.constant 0 : index
    %c0_7 = arith.constant 0 : index
    %9 = vector.load %arg4[%c0_6, %c0_7] : memref<200x128xf32, #tpu.memory_space<vmem>>, vector<200x128xf32>
    tpu.vector_store %arg4[%c0_6, %c0_7], %8 {strides = array<i32>} : memref<200x128xf32, #tpu.memory_space<vmem>>, vector<200x128xf32>,
    return
  }
  func.func @transform_0(%arg0: i32) -> (i32, i32) {
    %c0_i32 = arith.constant 0 : i32
    %c0_i32_0 = arith.constant 0 : i32
    return %arg0, %c0_i32 : i32, i32
  }
  func.func @transform_1(%arg0: i32) -> (i32, i32) {
    %c0_i32 = arith.constant 0 : i32
    %c0_i32_0 = arith.constant 0 : i32
    %c0_i32_1 = arith.constant 0 : i32
    return %c0_i32, %c0_i32_0 : i32, i32
  }
  func.func @transform_2(%arg0: i32) -> (i32, i32) {
    %c0_i32 = arith.constant 0 : i32
    %c0_i32_0 = arith.constant 0 : i32
    %c0_i32_1 = arith.constant 0 : i32
    return %c0_i32, %c0_i32_0 : i32, i32
  }
  func.func @transform_3(%arg0: i32) -> (i32, i32) {
    %c0_i32 = arith.constant 0 : i32
    %c0_i32_0 = arith.constant 0 : i32
    return %arg0, %c0_i32 : i32, i32
  }
}

module attributes {stable_mosaic.version = 11 : i64} {
  func.func @_fc_head_kernel(%arg0: memref<8x3200xf32, #tpu.memory_space<vmem>>, %arg1: memref<3200x256xbf16, #tpu.memory_space<vmem>>, %arg2: memref<1x256xf32, #tpu.memory_space<vmem>>, %arg3: memref<256x128xbf16, #tpu.memory_space<vmem>>, %arg4: memref<1x128xf32, #tpu.memory_space<vmem>>, %arg5: memref<128x128xbf16, #tpu.memory_space<vmem>>, %arg6: memref<1x128xf32, #tpu.memory_space<vmem>>, %arg7: memref<8x128xf32, #tpu.memory_space<vmem>>) attributes {dimension_semantics = [], scalar_prefetch = 0 : i64, scratch_operands = 0 : i64, tpu.core_type = #tpu.core_type<tc>} {
    %c0 = arith.constant 0 : index
    %c0_0 = arith.constant 0 : index
    %0 = vector.load %arg0[%c0, %c0_0] : memref<8x3200xf32, #tpu.memory_space<vmem>>, vector<8x3200xf32>
    %c0_1 = arith.constant 0 : index
    %c0_2 = arith.constant 0 : index
    %1 = vector.load %arg1[%c0_1, %c0_2] : memref<3200x256xbf16, #tpu.memory_space<vmem>>, vector<3200x256xbf16>
    %2 = arith.extf %1 : vector<3200x256xbf16> to vector<3200x256xf32>
    %cst = arith.constant dense<0.000000e+00> : vector<8x256xf32>
    %3 = tpu.matmul %0, %2, %cst {dimension_numbers = #tpu.dot_dimension_numbers<[1], [0], [0], [1], [0, 0, 1, 1], [], []>} : vector<8x3200xf32>, vector<3200x256xf32>, vector<8x256xf32> -> vector<8x256xf32>
    %c0_3 = arith.constant 0 : index
    %c0_4 = arith.constant 0 : index
    %4 = vector.load %arg2[%c0_3, %c0_4] : memref<1x256xf32, #tpu.memory_space<vmem>>, vector<1x256xf32>
    %5 = vector.broadcast %4 : vector<1x256xf32> to vector<8x256xf32>
    %6 = arith.addf %3, %5 : vector<8x256xf32>
    %cst_5 = arith.constant 0.000000e+00 : f32
    %7 = vector.broadcast %cst_5 : f32 to vector<8x256xf32>
    %8 = arith.maximumf %6, %7 : vector<8x256xf32>
    %c0_6 = arith.constant 0 : index
    %c0_7 = arith.constant 0 : index
    %9 = vector.load %arg3[%c0_6, %c0_7] : memref<256x128xbf16, #tpu.memory_space<vmem>>, vector<256x128xbf16>
    %10 = arith.extf %9 : vector<256x128xbf16> to vector<256x128xf32>
    %cst_8 = arith.constant dense<0.000000e+00> : vector<8x128xf32>
    %11 = tpu.matmul %8, %10, %cst_8 {dimension_numbers = #tpu.dot_dimension_numbers<[1], [0], [0], [1], [0, 0, 1, 1], [], []>} : vector<8x256xf32>, vector<256x128xf32>, vector<8x128xf32> -> vector<8x128xf32>
    %c0_9 = arith.constant 0 : index
    %c0_10 = arith.constant 0 : index
    %12 = vector.load %arg4[%c0_9, %c0_10] : memref<1x128xf32, #tpu.memory_space<vmem>>, vector<1x128xf32>
    %13 = vector.broadcast %12 : vector<1x128xf32> to vector<8x128xf32>
    %14 = arith.addf %11, %13 : vector<8x128xf32>
    %cst_11 = arith.constant 0.000000e+00 : f32
    %15 = vector.broadcast %cst_11 : f32 to vector<8x128xf32>
    %16 = arith.maximumf %14, %15 : vector<8x128xf32>
    %c0_12 = arith.constant 0 : index
    %c0_13 = arith.constant 0 : index
    %17 = vector.load %arg5[%c0_12, %c0_13] : memref<128x128xbf16, #tpu.memory_space<vmem>>, vector<128x128xbf16>
    %18 = arith.extf %17 : vector<128x128xbf16> to vector<128x128xf32>
    %cst_14 = arith.constant dense<0.000000e+00> : vector<8x128xf32>
    %19 = tpu.matmul %16, %18, %cst_14 {dimension_numbers = #tpu.dot_dimension_numbers<[1], [0], [0], [1], [0, 0, 1, 1], [], []>} : vector<8x128xf32>, vector<128x128xf32>, vector<8x128xf32> -> vector<8x128xf32>
    %c0_15 = arith.constant 0 : index
    %c0_16 = arith.constant 0 : index
    %20 = vector.load %arg6[%c0_15, %c0_16] : memref<1x128xf32, #tpu.memory_space<vmem>>, vector<1x128xf32>
    %21 = vector.broadcast %20 : vector<1x128xf32> to vector<8x128xf32>
    %22 = arith.addf %19, %21 : vector<8x128xf32>
    %c0_17 = arith.constant 0 : index
    %c0_18 = arith.constant 0 : index
    %23 = vector.load %arg7[%c0_17, %c0_18] : memref<8x128xf32, #tpu.memory_space<vmem>>, vector<8x128xf32>
    tpu.vector_store %arg7[%c0_17, %c0_18], %22 {strides = array<i32>} : memref<8x128xf32, #tpu.memory_space<vmem>>, vector<8x128xf32>,
    return
  }
}

</mosaic_0001>

<bundles_post_ra>
// kernel: dann_source_forward.4
= control target key start
LH: loop header
LB: loop body
LE: loop exit
PB: predicated region body
PF: predicated region fallthrough
CT: control target
= control target key end

     0   :  { %s926_s12 = smov 0   ;;  %s1102_s0 = inlined_call_operand.vmem [shape: f32[1536,75], index: 0, kind: input, shape index: {}]   ;;  %s1103_s1 = inlined_call_operand.vmem [shape: bf16[75,128], index: 1, kind: input, shape index: {}]   ;;  %s1104_s2 = inlined_call_operand.vmem [shape: f32[1,128], index: 2, kind: input, shape index: {}]   ;;  %s1105_s3 = inlined_call_operand.vmem [shape: f32[1536,128], index: 3, kind: output, shape index: {}]  }
   0x1 LB: > { %s679_s13 = sadd.s32 4294967295, %s903_s12   ;;  %p683_p0 = scmp.ge.s32.totalorder %s903_s12, 1  ;;  %s903_s12 = sphi %s926_s12, %s13_s12  }
   0x2   : > { %p138_p1 = scmp.lt.s32.totalorder %s903_s12, 7 }
   0x4   : > { %p139_p2 = pnand %p683_p0, %p138_p1 }
   0x5   : > { %v725_v0 = vld [vmem:[%s1103_s1] sm:$0xff] (!%p139_p2)   ;;  %v740_v1 = vld [vmem:[%s1103_s1 + $0x8] sm:$0xff] (!%p139_p2)   ;;  %s684_s18 = sshll.u32 (!%p139_p2), %s679_s13, 5  ;;  %v741_v2 = vld [vmem:[%s1103_s1 + $0x10] sm:$0xff] (!%p139_p2)   ;;  %vm233_vm0 = vcmask (!%p139_p2), 613376   ;;  %vm330_vm1 = vcmask (!%p139_p2), 1042432  }
   0x6   : > { %142 = sbr.rel (%p139_p2) target bundleno = 272 (0x110), region = 32  ;;  %854 = vmatprep.subr.bf16.mxu0 (!%p139_p2), %v725_v0  ;;  %875 = vmatprep.subr.bf16.mxu1 (!%p139_p2), %v725_v0  ;;  %p163_p3 = scmp.lt.s32.totalorder (!%p139_p2), %s684_s18, 191  ;;  %v742_v5 = vld [vmem:[%s1103_s1 + $0x18] sm:$0xff] (!%p139_p2)   ;;  %v896_v6 = vld [vmem:[%s1103_s1 + $0x20] sm:$0x3f] (!%p139_p2)   ;;  %vm905_vm2 = vmmov (!%p139_p2), 1  }
   0x7   : > { %856 = vmatpush3.bf16.msra.mxu0 (!%p139_p2), %v725_v0  ;;  %880 = vmatpush3.bf16.msra.mxu1 (!%p139_p2), %v725_v0  ;;  %vm870_vm3 = vmpackc.low (!%p139_p2), %vm330_vm1, %vm905_vm2  ;;  %v1026_v37 = vld [vmem:[%s1104_s2] ss:$0 sm:$0xff] (!%p139_p2) }
   0x8   : > { %858 = vmatprep.subr.bf16.mxu0 (!%p139_p2), %v740_v1  ;;  %876 = vmatprep.subr.bf16.mxu1 (!%p139_p2), %v740_v1 }
   0xb   : > { %860 = vmatpush3.bf16.msra.mxu0 (!%p139_p2), %v740_v1  ;;  %881 = vmatpush3.bf16.msra.mxu1 (!%p139_p2), %v740_v1 }
   0xc   : > { %862 = vmatprep.subr.bf16.mxu0 (!%p139_p2), %v741_v2  ;;  %877 = vmatprep.subr.bf16.mxu1 (!%p139_p2), %v741_v2 }
   0xd   : > { %s1107_s18 = smov (!%p163_p3, %s684_s18), 191 }
   0xe   : > { %s685_s21 = sshll.u32 %s1107_s18, 3 }
   0xf   : > { %s951_s24 = scalar_lea.vmem %s1102_s0, %s685_s21  ;;  %864 = vmatpush3.bf16.msra.mxu0 %v741_v2  ;;  %882 = vmatpush3.bf16.msra.mxu1 %v741_v2  ;;  %s1035_s6 = scalar_lea.vmem %s1105_s3, %s685_s21 }
  0x10   : > { %v194_v3 = vld [vmem:[%s951_s24] sm:$0xff]  ;;  %866 = vmatprep.subr.bf16.mxu0 %v742_v5  ;;  %878 = vmatprep.subr.bf16.mxu1 %v742_v5  ;;  %v195_v7 = vld [vmem:[%s951_s24 + $0x8] sm:$0xff]  ;;  %v196_v9 = vld [vmem:[%s951_s24 + $0x10] sm:$0xff] }
  0x11   : > { %v210_v4 = vld [vmem:[%s951_s24 + $0x80] sm:$0xff]  ;;  %805 = vmatprep.mubr.msk.f32.mxu0 %vm233_vm0, %v194_v3  ;;  %v211_v8 = vld [vmem:[%s951_s24 + $0x88] sm:$0xff]  ;;  %v212_v10 = vld [vmem:[%s951_s24 + $0x90] sm:$0xff] }
  0x12   : > { %829 = vmatprep.mubr.msk.f32.mxu1 %vm233_vm0, %v210_v4  ;;  %v197_v11 = vld [vmem:[%s951_s24 + $0x18] sm:$0xff]  ;;  %v198_v13 = vld [vmem:[%s951_s24 + $0x20] sm:$0xff]  ;;  %v199_v15 = vld [vmem:[%s951_s24 + $0x28] sm:$0xff] }
  0x13   : > { %868 = vmatpush3.bf16.msra.mxu0 %v742_v5  ;;  %883 = vmatpush3.bf16.msra.mxu1 %v742_v5  ;;  %v213_v12 = vld [vmem:[%s951_s24 + $0x98] sm:$0xff]  ;;  %v214_v14 = vld [vmem:[%s951_s24 + $0xa0] sm:$0xff]  ;;  %v215_v16 = vld [vmem:[%s951_s24 + $0xa8] sm:$0xff] }
  0x14   : > { %871 = vmatprep.subr.msk.bf16.mxu0 %vm870_vm3, %v896_v6  ;;  %879 = vmatprep.subr.msk.bf16.mxu1 %vm870_vm3, %v896_v6  ;;  %v200_v17 = vld [vmem:[%s951_s24 + $0x30] sm:$0xff]  ;;  %v201_v19 = vld [vmem:[%s951_s24 + $0x38] sm:$0xff]  ;;  %v202_v21 = vld [vmem:[%s951_s24 + $0x40] sm:$0xff] }
  0x15   : > { %v216_v18 = vld [vmem:[%s951_s24 + $0xb0] sm:$0xff]  ;;  %v217_v20 = vld [vmem:[%s951_s24 + $0xb8] sm:$0xff]  ;;  %v218_v22 = vld [vmem:[%s951_s24 + $0xc0] sm:$0xff] }
  0x16   : > { %v203_v23 = vld [vmem:[%s951_s24 + $0x48] sm:$0xff]  ;;  %v204_v25 = vld [vmem:[%s951_s24 + $0x50] sm:$0xff]  ;;  %v205_v27 = vld [vmem:[%s951_s24 + $0x58] sm:$0xff] }
  0x17   : > { %874 = vmatpush3.bf16.msk.msra.mxu0 %vm870_vm3, %v896_v6  ;;  %884 = vmatpush3.bf16.msk.msra.mxu1 %vm870_vm3, %v896_v6  ;;  %v219_v24 = vld [vmem:[%s951_s24 + $0xc8] sm:$0xff]  ;;  %v220_v26 = vld [vmem:[%s951_s24 + $0xd0] sm:$0xff]  ;;  %v221_v28 = vld [vmem:[%s951_s24 + $0xd8] sm:$0xff] }
  0x18   : > { %v206_v29 = vld [vmem:[%s951_s24 + $0x60] sm:$0xff]  ;;  %v207_v31 = vld [vmem:[%s951_s24 + $0x68] sm:$0xff]  ;;  %v208_v33 = vld [vmem:[%s951_s24 + $0x70] sm:$0xff] }
  0x19   : > { %v222_v30 = vld [vmem:[%s951_s24 + $0xe0] sm:$0xff]  ;;  %v223_v32 = vld [vmem:[%s951_s24 + $0xe8] sm:$0xff]  ;;  %v224_v34 = vld [vmem:[%s951_s24 + $0xf0] sm:$0xff] }
  0x1a   : > { %806 = vmatmul.mubr.msk.f32.vlgmr.msra.gmra.mrb[0].mxu0 %vm233_vm0, %v195_v7  ;;  %830 = vmatmul.mubr.msk.f32.vlgmr.msra.gmra.mrb[0].mxu1 %vm233_vm0, %v211_v8  ;;  %v209_v35 = vld [vmem:[%s951_s24 + $0x78] sm:$0xff] }
  0x1b   : > { %808 = vmatprep.mubr.msk.f32.mxu0 %vm233_vm0, %v196_v9  ;;  %832 = vmatprep.mubr.msk.f32.mxu1 %vm233_vm0, %v212_v10  ;;  %v225_v36 = vld [vmem:[%s951_s24 + $0xf8] sm:$0xff] }
  0x1e   : > { %809 = vmatmul.mubr.msk.f32.gmra.mrb[2].mxu0 %vm233_vm0, %v197_v11  ;;  %833 = vmatmul.mubr.msk.f32.gmra.mrb[2].mxu1 %vm233_vm0, %v213_v12 }
  0x1f   : > { %811 = vmatprep.mubr.msk.f32.mxu0 %vm233_vm0, %v198_v13  ;;  %835 = vmatprep.mubr.msk.f32.mxu1 %vm233_vm0, %v214_v14 }
  0x22   : > { %812 = vmatmul.mubr.msk.f32.gmra.mrb[4].mxu0 %vm233_vm0, %v199_v15  ;;  %836 = vmatmul.mubr.msk.f32.gmra.mrb[4].mxu1 %vm233_vm0, %v215_v16 }
  0x23   : > { %814 = vmatprep.mubr.msk.f32.mxu0 %vm233_vm0, %v200_v17  ;;  %838 = vmatprep.mubr.msk.f32.mxu1 %vm233_vm0, %v216_v18 }
  0x26   : > { %815 = vmatmul.mubr.msk.f32.gmra.mrb[6].mxu0 %vm233_vm0, %v201_v19  ;;  %839 = vmatmul.mubr.msk.f32.gmra.mrb[6].mxu1 %vm233_vm0, %v217_v20 }
  0x27   : > { %817 = vmatprep.mubr.msk.f32.mxu0 %vm233_vm0, %v202_v21  ;;  %841 = vmatprep.mubr.msk.f32.mxu1 %vm233_vm0, %v218_v22 }
  0x2a   : > { %818 = vmatmul.mubr.msk.f32.gmra.mrb[8].mxu0 %vm233_vm0, %v203_v23  ;;  %842 = vmatmul.mubr.msk.f32.gmra.mrb[8].mxu1 %vm233_vm0, %v219_v24 }
  0x2b   : > { %820 = vmatprep.mubr.msk.f32.mxu0 %vm233_vm0, %v204_v25  ;;  %844 = vmatprep.mubr.msk.f32.mxu1 %vm233_vm0, %v220_v26 }
  0x2e   : > { %821 = vmatmul.mubr.msk.f32.gmra.mrb[10].mxu0 %vm233_vm0, %v205_v27  ;;  %845 = vmatmul.mubr.msk.f32.gmra.mrb[10].mxu1 %vm233_vm0, %v221_v28 }
  0x2f   : > { %823 = vmatprep.mubr.msk.f32.mxu0 %vm233_vm0, %v206_v29  ;;  %847 = vmatprep.mubr.msk.f32.mxu1 %vm233_vm0, %v222_v30 }
  0x32   : > { %824 = vmatmul.mubr.msk.f32.gmra.mrb[12].mxu0 %vm233_vm0, %v207_v31  ;;  %848 = vmatmul.mubr.msk.f32.gmra.mrb[12].mxu1 %vm233_vm0, %v223_v32 }
  0x33   : > { %826 = vmatprep.mubr.msk.f32.mxu0 %vm233_vm0, %v208_v33  ;;  %850 = vmatprep.mubr.msk.f32.mxu1 %vm233_vm0, %v224_v34 }
  0x36   : > { %827 = vmatmul.mubr.msk.f32.gmra.mrb[14].mxu0 %vm233_vm0, %v209_v35  ;;  %851 = vmatmul.mubr.msk.f32.gmra.mrb[14].mxu1 %vm233_vm0, %v225_v36 }
  0xed   : > { %v807_v38 = vpop.f32.mrb[0].mxu0  ;;  %v831_v39 = vpop.f32.mrb[0].mxu1 }
  0xee   : > { %v406_v40 = vadd.f32 %v807_v38, %v1026_v37  ;;  %v486_v41 = vadd.f32 %v831_v39, %v1026_v37  ;;  %v400_v42 = vpop.f32.mrb[1].mxu0  ;;  %v480_v43 = vpop.f32.mrb[1].mxu1 }
  0xef   : > { %v401_v44 = vadd.f32 %v1026_v37, %v400_v42  ;;  %v481_v45 = vadd.f32 %v1026_v37, %v480_v43 }
  0xf0   : > { %v560_v46 = vmax.f32 %v406_v40, 0.0  ;;  %v576_v47 = vmax.f32 %v486_v41, 0.0 }
  0xf1   : > { %v559_v48 = vmax.f32 %v401_v44, 0.0  ;;  %v575_v49 = vmax.f32 %v481_v45, 0.0  ;;  %v810_v50 = vpop.f32.mrb[2].mxu0  ;;  %v834_v51 = vpop.f32.mrb[2].mxu1 }
  0xf2   : > { %592 = vst [vmem:[%s1035_s6 + $0x8] sm:$0xff] %v560_v46  ;;  %608 = vst [vmem:[%s1035_s6 + $0x88] sm:$0xff] %v576_v47  ;;  %v416_v52 = vadd.f32 %v810_v50, %v1026_v37  ;;  %v496_v53 = vadd.f32 %v834_v51, %v1026_v37  ;;  %v410_v54 = vpop.f32.mrb[3].mxu0  ;;  %v490_v55 = vpop.f32.mrb[3].mxu1 }
  0xf3   : > { %591 = vst [vmem:[%s1035_s6] sm:$0xff] %v559_v48  ;;  %607 = vst [vmem:[%s1035_s6 + $0x80] sm:$0xff] %v575_v49  ;;  %v411_v56 = vadd.f32 %v1026_v37, %v410_v54  ;;  %v491_v57 = vadd.f32 %v1026_v37, %v490_v55 }
  0xf4   : > { %v562_v58 = vmax.f32 %v416_v52, 0.0  ;;  %v578_v59 = vmax.f32 %v496_v53, 0.0 }
  0xf5   : > { %v561_v60 = vmax.f32 %v411_v56, 0.0  ;;  %v577_v61 = vmax.f32 %v491_v57, 0.0  ;;  %v813_v62 = vpop.f32.mrb[4].mxu0  ;;  %v837_v63 = vpop.f32.mrb[4].mxu1 }
  0xf6   : > { %594 = vst [vmem:[%s1035_s6 + $0x18] sm:$0xff] %v562_v58  ;;  %610 = vst [vmem:[%s1035_s6 + $0x98] sm:$0xff] %v578_v59  ;;  %v426_v0 = vadd.f32 %v813_v62, %v1026_v37  ;;  %v506_v1 = vadd.f32 %v837_v63, %v1026_v37  ;;  %v420_v2 = vpop.f32.mrb[5].mxu0  ;;  %v500_v3 = vpop.f32.mrb[5].mxu1 }
  0xf7   : > { %593 = vst [vmem:[%s1035_s6 + $0x10] sm:$0xff] %v561_v60  ;;  %609 = vst [vmem:[%s1035_s6 + $0x90] sm:$0xff] %v577_v61  ;;  %v421_v4 = vadd.f32 %v1026_v37, %v420_v2  ;;  %v501_v5 = vadd.f32 %v1026_v37, %v500_v3 }
  0xf8   : > { %v564_v6 = vmax.f32 %v426_v0, 0.0  ;;  %v580_v7 = vmax.f32 %v506_v1, 0.0 }
  0xf9   : > { %v563_v8 = vmax.f32 %v421_v4, 0.0  ;;  %v579_v9 = vmax.f32 %v501_v5, 0.0  ;;  %v816_v10 = vpop.f32.mrb[6].mxu0  ;;  %v840_v11 = vpop.f32.mrb[6].mxu1 }
  0xfa   : > { %596 = vst [vmem:[%s1035_s6 + $0x28] sm:$0xff] %v564_v6  ;;  %612 = vst [vmem:[%s1035_s6 + $0xa8] sm:$0xff] %v580_v7  ;;  %v436_v12 = vadd.f32 %v816_v10, %v1026_v37  ;;  %v516_v13 = vadd.f32 %v840_v11, %v1026_v37  ;;  %v430_v14 = vpop.f32.mrb[7].mxu0  ;;  %v510_v15 = vpop.f32.mrb[7].mxu1 }
  0xfb   : > { %595 = vst [vmem:[%s1035_s6 + $0x20] sm:$0xff] %v563_v8  ;;  %611 = vst [vmem:[%s1035_s6 + $0xa0] sm:$0xff] %v579_v9  ;;  %v431_v16 = vadd.f32 %v1026_v37, %v430_v14  ;;  %v511_v17 = vadd.f32 %v1026_v37, %v510_v15 }
  0xfc   : > { %v566_v18 = vmax.f32 %v436_v12, 0.0  ;;  %v582_v19 = vmax.f32 %v516_v13, 0.0 }
  0xfd   : > { %v565_v20 = vmax.f32 %v431_v16, 0.0  ;;  %v581_v21 = vmax.f32 %v511_v17, 0.0  ;;  %v819_v22 = vpop.f32.mrb[8].mxu0  ;;  %v843_v23 = vpop.f32.mrb[8].mxu1 }
  0xfe   : > { %598 = vst [vmem:[%s1035_s6 + $0x38] sm:$0xff] %v566_v18  ;;  %614 = vst [vmem:[%s1035_s6 + $0xb8] sm:$0xff] %v582_v19  ;;  %v446_v24 = vadd.f32 %v819_v22, %v1026_v37  ;;  %v526_v25 = vadd.f32 %v843_v23, %v1026_v37  ;;  %v440_v26 = vpop.f32.mrb[9].mxu0  ;;  %v520_v27 = vpop.f32.mrb[9].mxu1 }
  0xff   : > { %597 = vst [vmem:[%s1035_s6 + $0x30] sm:$0xff] %v565_v20  ;;  %613 = vst [vmem:[%s1035_s6 + $0xb0] sm:$0xff] %v581_v21  ;;  %v441_v28 = vadd.f32 %v1026_v37, %v440_v26  ;;  %v521_v29 = vadd.f32 %v1026_v37, %v520_v27 }
 0x100   : > { %v568_v30 = vmax.f32 %v446_v24, 0.0  ;;  %v584_v31 = vmax.f32 %v526_v25, 0.0 }
 0x101   : > { %v567_v32 = vmax.f32 %v441_v28, 0.0  ;;  %v583_v33 = vmax.f32 %v521_v29, 0.0  ;;  %v822_v34 = vpop.f32.mrb[10].mxu0  ;;  %v846_v35 = vpop.f32.mrb[10].mxu1 }
 0x102   : > { %600 = vst [vmem:[%s1035_s6 + $0x48] sm:$0xff] %v568_v30  ;;  %616 = vst [vmem:[%s1035_s6 + $0xc8] sm:$0xff] %v584_v31  ;;  %v456_v36 = vadd.f32 %v822_v34, %v1026_v37  ;;  %v536_v38 = vadd.f32 %v846_v35, %v1026_v37  ;;  %v450_v39 = vpop.f32.mrb[11].mxu0  ;;  %v530_v40 = vpop.f32.mrb[11].mxu1 }
 0x103   : > { %599 = vst [vmem:[%s1035_s6 + $0x40] sm:$0xff] %v567_v32  ;;  %615 = vst [vmem:[%s1035_s6 + $0xc0] sm:$0xff] %v583_v33  ;;  %v451_v41 = vadd.f32 %v1026_v37, %v450_v39  ;;  %v531_v42 = vadd.f32 %v1026_v37, %v530_v40 }
 0x104   : > { %v570_v43 = vmax.f32 %v456_v36, 0.0  ;;  %v586_v44 = vmax.f32 %v536_v38, 0.0 }
 0x105   : > { %v569_v45 = vmax.f32 %v451_v41, 0.0  ;;  %v585_v46 = vmax.f32 %v531_v42, 0.0  ;;  %v825_v47 = vpop.f32.mrb[12].mxu0  ;;  %v849_v48 = vpop.f32.mrb[12].mxu1 }
 0x106   : > { %602 = vst [vmem:[%s1035_s6 + $0x58] sm:$0xff] %v570_v43  ;;  %618 = vst [vmem:[%s1035_s6 + $0xd8] sm:$0xff] %v586_v44  ;;  %v466_v49 = vadd.f32 %v825_v47, %v1026_v37  ;;  %v546_v50 = vadd.f32 %v849_v48, %v1026_v37  ;;  %v460_v51 = vpop.f32.mrb[13].mxu0  ;;  %v540_v52 = vpop.f32.mrb[13].mxu1 }
 0x107   : > { %601 = vst [vmem:[%s1035_s6 + $0x50] sm:$0xff] %v569_v45  ;;  %617 = vst [vmem:[%s1035_s6 + $0xd0] sm:$0xff] %v585_v46  ;;  %v461_v53 = vadd.f32 %v1026_v37, %v460_v51  ;;  %v541_v54 = vadd.f32 %v1026_v37, %v540_v52 }
 0x108   : > { %v572_v55 = vmax.f32 %v466_v49, 0.0  ;;  %v588_v56 = vmax.f32 %v546_v50, 0.0 }
 0x109   : > { %v571_v57 = vmax.f32 %v461_v53, 0.0  ;;  %v587_v58 = vmax.f32 %v541_v54, 0.0  ;;  %v828_v59 = vpop.f32.mrb[14].mxu0  ;;  %v852_v60 = vpop.f32.mrb[14].mxu1 }
 0x10a   : > { %604 = vst [vmem:[%s1035_s6 + $0x68] sm:$0xff] %v572_v55  ;;  %620 = vst [vmem:[%s1035_s6 + $0xe8] sm:$0xff] %v588_v56  ;;  %v476_v61 = vadd.f32 %v828_v59, %v1026_v37  ;;  %v556_v62 = vadd.f32 %v852_v60, %v1026_v37  ;;  %v470_v63 = vpop.f32.mrb[15].mxu0  ;;  %v550_v0 = vpop.f32.mrb[15].mxu1 }
 0x10b   : > { %603 = vst [vmem:[%s1035_s6 + $0x60] sm:$0xff] %v571_v57  ;;  %619 = vst [vmem:[%s1035_s6 + $0xe0] sm:$0xff] %v587_v58  ;;  %v471_v1 = vadd.f32 %v1026_v37, %v470_v63  ;;  %v551_v2 = vadd.f32 %v1026_v37, %v550_v0 }
 0x10c   : > { %v574_v3 = vmax.f32 %v476_v61, 0.0  ;;  %v590_v4 = vmax.f32 %v556_v62, 0.0 }
 0x10d   : > { %v573_v5 = vmax.f32 %v471_v1, 0.0  ;;  %v589_v6 = vmax.f32 %v551_v2, 0.0 }
 0x10e   : > { %606 = vst [vmem:[%s1035_s6 + $0x78] sm:$0xff] %v574_v3  ;;  %622 = vst [vmem:[%s1035_s6 + $0xf8] sm:$0xff] %v590_v4 }
 0x10f   : > { %605 = vst [vmem:[%s1035_s6 + $0x70] sm:$0xff] %v573_v5  ;;  %621 = vst [vmem:[%s1035_s6 + $0xf0] sm:$0xff] %v589_v6 }
 0x110 PF: > { %s13_s12 = sadd.s32 1, %s903_s12  }
 0x111   : > { %p10_p4 = scmp.ge.s32.totalorder %s13_s12, 8  }
 0x113   :  { %12 = sbr.rel (!%p10_p4) target bundleno = 1 (0x1), region = 62 }

// kernel: dann_source_forward.5
= control target key start
LH: loop header
LB: loop body
LE: loop exit
PB: predicated region body
PF: predicated region fallthrough
CT: control target
= control target key end

     0   :  { %s2461_s12 = smov 0   ;;  %s3237_s0 = inlined_call_operand.vmem [shape: f32[1280,800], index: 0, kind: input, shape index: {}]   ;;  %s3238_s1 = inlined_call_operand.vmem [shape: bf16[800,128], index: 1, kind: input, shape index: {}]   ;;  %s3239_s2 = inlined_call_operand.vmem [shape: f32[1,128], index: 2, kind: input, shape index: {}]   ;;  %s3240_s3 = inlined_call_operand.vmem [shape: f32[1280,128], index: 3, kind: output, shape index: {}]  }
   0x1 LB: > { %s1725_s13 = sadd.s32 4294967295, %s2438_s12   ;;  %p1729_p0 = scmp.ge.s32.totalorder %s2438_s12, 1  ;;  %s2438_s12 = sphi %s2461_s12, %s13_s12  }
   0x2   : > { %p139_p1 = scmp.lt.s32.totalorder %s2438_s12, 6 }
   0x4   : > { %p140_p2 = pnand %p1729_p0, %p139_p1 }
   0x5   : > { %v1770_v0 = vld [vmem:[%s3238_s1] sm:$0xff] (!%p140_p2)   ;;  %s1730_s18 = sshll.u32 (!%p140_p2), %s1725_s13, 5  ;;  %v2440_v2 = vmov (!%p140_p2), 0.0|0.0   ;;  %v1969_v3 = vld [vmem:[%s3238_s1 + $0x8] sm:$0xff] (!%p140_p2)   ;;  %v1970_v5 = vld [vmem:[%s3238_s1 + $0x10] sm:$0xff] (!%p140_p2)   ;;  %vm608_vm0 = vcmask (!%p140_p2), 261120  }
   0x6   : > { %143 = sbr.rel (%p140_p2) target bundleno = 509 (0x1fd), region = 32  ;;  %v2475_v1 = vld [vmem:[%s3238_s1 + $0x80] sm:$0xff] (!%p140_p2)   ;;  %2110 = vmatprep.subr.bf16.mxu1 (!%p140_p2), %v2440_v2  ;;  %2158 = vmatprep.subr.bf16.mxu0 (!%p140_p2), %v2440_v2  ;;  %p165_p3 = scmp.lt.s32.totalorder (!%p140_p2), %s1730_s18, 159  ;;  %v2488_v4 = vld [vmem:[%s3238_s1 + $0x88] sm:$0xff] (!%p140_p2)   ;;  %v2502_v6 = vld [vmem:[%s3238_s1 + $0x90] sm:$0xff] (!%p140_p2)  }
   0x7   : > { %2112 = vmatpush1.bf16.msra.mxu1 (!%p140_p2), %v1770_v0  ;;  %2160 = vmatpush1.bf16.msra.mxu0 (!%p140_p2), %v2475_v1  ;;  %v1971_v8 = vld [vmem:[%s3238_s1 + $0x18] sm:$0xff] (!%p140_p2)   ;;  %v1972_v11 = vld [vmem:[%s3238_s1 + $0x20] sm:$0xff] (!%p140_p2)   ;;  %v1973_v13 = vld [vmem:[%s3238_s1 + $0x28] sm:$0xff] (!%p140_p2)  }
   0x8   : > { %2113 = vmatprep.subr.bf16.mxu1 (!%p140_p2), %v2440_v2  ;;  %2161 = vmatprep.subr.bf16.mxu0 (!%p140_p2), %v2440_v2  ;;  %v2519_v9 = vld [vmem:[%s3238_s1 + $0x98] sm:$0xff] (!%p140_p2)   ;;  %v2531_v12 = vld [vmem:[%s3238_s1 + $0xa0] sm:$0xff] (!%p140_p2)   ;;  %v2542_v14 = vld [vmem:[%s3238_s1 + $0xa8] sm:$0xff] (!%p140_p2)  }
   0x9   : > { %v1974_v15 = vld [vmem:[%s3238_s1 + $0x30] sm:$0xff] (!%p140_p2)   ;;  %v1975_v17 = vld [vmem:[%s3238_s1 + $0x38] sm:$0xff] (!%p140_p2)   ;;  %v1976_v19 = vld [vmem:[%s3238_s1 + $0x40] sm:$0xff] (!%p140_p2)  }
   0xa   : > { %v2553_v16 = vld [vmem:[%s3238_s1 + $0xb0] sm:$0xff] (!%p140_p2)   ;;  %v2564_v18 = vld [vmem:[%s3238_s1 + $0xb8] sm:$0xff] (!%p140_p2)   ;;  %v2575_v20 = vld [vmem:[%s3238_s1 + $0xc0] sm:$0xff] (!%p140_p2)  }
   0xb   : > { %2115 = vmatpush1.bf16.msra.mxu1 (!%p140_p2), %v1969_v3  ;;  %2163 = vmatpush1.bf16.msra.mxu0 (!%p140_p2), %v2488_v4  ;;  %v1977_v21 = vld [vmem:[%s3238_s1 + $0x48] sm:$0xff] (!%p140_p2)   ;;  %v1978_v23 = vld [vmem:[%s3238_s1 + $0x50] sm:$0xff] (!%p140_p2)   ;;  %v1979_v25 = vld [vmem:[%s3238_s1 + $0x58] sm:$0xff] (!%p140_p2)  }
   0xc   : > { %2116 = vmatprep.subr.bf16.mxu1 (!%p140_p2), %v2440_v2  ;;  %2164 = vmatprep.subr.bf16.mxu0 (!%p140_p2), %v2440_v2  ;;  %v2586_v22 = vld [vmem:[%s3238_s1 + $0xc8] sm:$0xff] (!%p140_p2)   ;;  %v2597_v24 = vld [vmem:[%s3238_s1 + $0xd0] sm:$0xff] (!%p140_p2)   ;;  %v2608_v26 = vld [vmem:[%s3238_s1 + $0xd8] sm:$0xff] (!%p140_p2)  }
   0xd   : > { %s3242_s18 = smov (!%p165_p3, %s1730_s18), 159  ;;  %v1980_v27 = vld [vmem:[%s3238_s1 + $0x60] sm:$0xff]   ;;  %v1981_v29 = vld [vmem:[%s3238_s1 + $0x68] sm:$0xff]   ;;  %v1982_v31 = vld [vmem:[%s3238_s1 + $0x70] sm:$0xff]  }
   0xe   : > { %s2422_s23 = smul.u32 56, %s3242_s18  ;;  %v2619_v28 = vld [vmem:[%s3238_s1 + $0xe0] sm:$0xff]   ;;  %v2630_v30 = vld [vmem:[%s3238_s1 + $0xe8] sm:$0xff]   ;;  %v2641_v32 = vld [vmem:[%s3238_s1 + $0xf0] sm:$0xff]  }
   0xf   : > { %2118 = vmatpush1.bf16.msra.mxu1 %v1970_v5  ;;  %2166 = vmatpush1.bf16.msra.mxu0 %v2502_v6  ;;  %v1983_v33 = vld [vmem:[%s3238_s1 + $0x78] sm:$0xff]   ;;  %v2000_v37 = vld [vmem:[%s3238_s1 + $0x100] sm:$0xff]   ;;  %v2001_v44 = vld [vmem:[%s3238_s1 + $0x108] sm:$0xff]  }
  0x10   : > { %s2507_s30 = scalar_lea.vmem %s3237_s0, %s2422_s23  ;;  %2119 = vmatprep.subr.bf16.mxu1 %v2440_v2  ;;  %2167 = vmatprep.subr.bf16.mxu0 %v2440_v2  ;;  %v2652_v34 = vld [vmem:[%s3238_s1 + $0xf8] sm:$0xff]   ;;  %v2002_v49 = vld [vmem:[%s3238_s1 + $0x110] sm:$0xff]   ;;  %v2004_v59 = vld [vmem:[%s3238_s1 + $0x120] sm:$0xff]   ;;  %s1733_s23 = sshll.u32 %s3242_s18, 3 }
  0x11   : > { %v378_v7 = vld [vmem:[%s2507_s30 + $0x8] sm:$0xff]  ;;  %v380_v10 = vld [vmem:[%s2507_s30 + $0x18] sm:$0xff]  ;;  %v377_v35 = vld [vmem:[%s2507_s30] sm:$0xff]  ;;  %s3139_s26 = scalar_lea.vmem %s3240_s3, %s1733_s23 }
  0x12   : > { %769 = vmatprep.mubr.f32.mxu1 %v378_v7  ;;  %994 = vmatprep.mubr.f32.mxu0 %v380_v10  ;;  %v379_v36 = vld [vmem:[%s2507_s30 + $0x10] sm:$0xff]  ;;  %v385_v38 = vld [vmem:[%s2507_s30 + $0x40] sm:$0xff]  ;;  %v384_v40 = vld [vmem:[%s2507_s30 + $0x38] sm:$0xff] }
  0x13   : > { %2121 = vmatpush1.bf16.msra.mxu1 %v1971_v8  ;;  %2169 = vmatpush1.bf16.msra.mxu0 %v2519_v9  ;;  %v387_v39 = vld [vmem:[%s2507_s30 + $0x50] sm:$0xff]  ;;  %v386_v41 = vld [vmem:[%s2507_s30 + $0x48] sm:$0xff]  ;;  %v392_v42 = vld [vmem:[%s2507_s30 + $0x78] sm:$0xff] }
  0x14   : > { %2122 = vmatprep.subr.bf16.mxu1 %v2440_v2  ;;  %2170 = vmatprep.subr.bf16.mxu0 %v2440_v2  ;;  %v394_v43 = vld [vmem:[%s2507_s30 + $0x88] sm:$0xff]  ;;  %v391_v45 = vld [vmem:[%s2507_s30 + $0x70] sm:$0xff]  ;;  %v393_v46 = vld [vmem:[%s2507_s30 + $0x80] sm:$0xff] }
  0x15   : > { %v399_v47 = vld [vmem:[%s2507_s30 + $0xb0] sm:$0xff]  ;;  %v401_v48 = vld [vmem:[%s2507_s30 + $0xc0] sm:$0xff]  ;;  %v398_v50 = vld [vmem:[%s2507_s30 + $0xa8] sm:$0xff] }
  0x16   : > { %v400_v51 = vld [vmem:[%s2507_s30 + $0xb8] sm:$0xff]  ;;  %v406_v52 = vld [vmem:[%s2507_s30 + $0xe8] sm:$0xff]  ;;  %v405_v55 = vld [vmem:[%s2507_s30 + $0xe0] sm:$0xff] }
  0x17   : > { %2124 = vmatpush1.bf16.msra.mxu1 %v1972_v11  ;;  %2172 = vmatpush1.bf16.msra.mxu0 %v2531_v12  ;;  %v408_v53 = vld [vmem:[%s2507_s30 + $0xf8] sm:$0xff]  ;;  %v407_v56 = vld [vmem:[%s2507_s30 + $0xf0] sm:$0xff]  ;;  %v413_v57 = vld [vmem:[%s2507_s30 + $0x120] sm:$0xff] }
  0x18   : > { %2125 = vmatprep.subr.bf16.mxu1 %v2440_v2  ;;  %2173 = vmatprep.subr.bf16.mxu0 %v2440_v2  ;;  %v2003_v54 = vld [vmem:[%s3238_s1 + $0x118] sm:$0xff]   ;;  %v415_v58 = vld [vmem:[%s2507_s30 + $0x130] sm:$0xff]  ;;  %v414_v61 = vld [vmem:[%s2507_s30 + $0x128] sm:$0xff] }
  0x19   : > { %v412_v60 = vld [vmem:[%s2507_s30 + $0x118] sm:$0xff]  ;;  %v422_v63 = vld [vmem:[%s2507_s30 + $0x168] sm:$0xff]  ;;  %v421_v3 = vld [vmem:[%s2507_s30 + $0x160] sm:$0xff] }
  0x1a   : > { %v420_v62 = vld [vmem:[%s2507_s30 + $0x158] sm:$0xff]  ;;  %v2005_v0 = vld [vmem:[%s3238_s1 + $0x128] sm:$0xff]   ;;  %v429_v5 = vld [vmem:[%s2507_s30 + $0x1a0] sm:$0xff] }
  0x1b   : > { %2127 = vmatpush1.bf16.msra.mxu1 %v1973_v13  ;;  %2175 = vmatpush1.bf16.msra.mxu0 %v2542_v14  ;;  %v426_v7 = vld [vmem:[%s2507_s30 + $0x188] sm:$0xff]  ;;  %v428_v8 = vld [vmem:[%s2507_s30 + $0x198] sm:$0xff]  ;;  %v435_v13 = vld [vmem:[%s2507_s30 + $0x1d0] sm:$0xff] }
  0x1c   : > { %2128 = vmatprep.subr.bf16.mxu1 %v2440_v2  ;;  %2176 = vmatprep.subr.bf16.mxu0 %v2440_v2  ;;  %v436_v10 = vld [vmem:[%s2507_s30 + $0x1d8] sm:$0xff] }
  0x1d   : > { %v2007_v11 = vld [vmem:[%s3238_s1 + $0x138] sm:$0xff]  }
  0x1f   : > { %2130 = vmatpush1.bf16.msra.mxu1 %v1974_v15  ;;  %2178 = vmatpush1.bf16.msra.mxu0 %v2553_v16  ;;  %v443_v15 = vld [vmem:[%s2507_s30 + $0x210] sm:$0xff] }
  0x20   : > { %2131 = vmatprep.subr.bf16.mxu1 %v2440_v2  ;;  %2179 = vmatprep.subr.bf16.mxu0 %v2440_v2 }
  0x23   : > { %2133 = vmatpush1.bf16.msra.mxu1 %v1975_v17  ;;  %2181 = vmatpush1.bf16.msra.mxu0 %v2564_v18  ;;  %v440_v17 = vld [vmem:[%s2507_s30 + $0x1f8] sm:$0xff] }
  0x24   : > { %2134 = vmatprep.subr.bf16.mxu1 %v2440_v2  ;;  %2182 = vmatprep.subr.bf16.mxu0 %v2440_v2 }
  0x27   : > { %2136 = vmatpush1.bf16.msra.mxu1 %v1976_v19  ;;  %2184 = vmatpush1.bf16.msra.mxu0 %v2575_v20  ;;  %v442_v19 = vld [vmem:[%s2507_s30 + $0x208] sm:$0xff] }
  0x28   : > { %2137 = vmatprep.subr.bf16.mxu1 %v2440_v2  ;;  %2185 = vmatprep.subr.bf16.mxu0 %v2440_v2 }
  0x2b   : > { %2139 = vmatpush1.bf16.msra.mxu1 %v1977_v21  ;;  %2187 = vmatpush1.bf16.msra.mxu0 %v2586_v22  ;;  %v448_v21 = vld [vmem:[%s2507_s30 + $0x238] sm:$0xff] }
  0x2c   : > { %2140 = vmatprep.subr.bf16.mxu1 %v2440_v2  ;;  %2188 = vmatprep.subr.bf16.mxu0 %v2440_v2 }
  0x2f   : > { %2142 = vmatpush1.bf16.msra.mxu1 %v1978_v23  ;;  %2190 = vmatpush1.bf16.msra.mxu0 %v2597_v24  ;;  %v2009_v23 = vld [vmem:[%s3238_s1 + $0x148] sm:$0xff]  }
  0x30   : > { %2143 = vmatprep.subr.bf16.mxu1 %v2440_v2  ;;  %2191 = vmatprep.subr.bf16.mxu0 %v2440_v2 }
  0x33   : > { %2145 = vmatpush1.bf16.msra.mxu1 %v1979_v25  ;;  %2193 = vmatpush1.bf16.msra.mxu0 %v2608_v26  ;;  %v447_v25 = vld [vmem:[%s2507_s30 + $0x230] sm:$0xff] }
  0x34   : > { %2146 = vmatprep.subr.bf16.mxu1 %v2440_v2  ;;  %2194 = vmatprep.subr.bf16.mxu0 %v2440_v2 }
  0x37   : > { %2148 = vmatpush1.bf16.msra.mxu1 %v1980_v27  ;;  %2196 = vmatpush1.bf16.msra.mxu0 %v2619_v28  ;;  %v449_v27 = vld [vmem:[%s2507_s30 + $0x240] sm:$0xff] }
  0x38   : > { %2149 = vmatprep.subr.bf16.mxu1 %v2440_v2  ;;  %2197 = vmatprep.subr.bf16.mxu0 %v2440_v2 }
  0x3b   : > { %2151 = vmatpush1.bf16.msra.mxu1 %v1981_v29  ;;  %2199 = vmatpush1.bf16.msra.mxu0 %v2630_v30  ;;  %v455_v29 = vld [vmem:[%s2507_s30 + $0x270] sm:$0xff] }
  0x3c   : > { %2152 = vmatprep.subr.bf16.mxu1 %v2440_v2  ;;  %2200 = vmatprep.subr.bf16.mxu0 %v2440_v2 }
  0x3f   : > { %2154 = vmatpush1.bf16.msra.mxu1 %v1982_v31  ;;  %2202 = vmatpush1.bf16.msra.mxu0 %v2641_v32  ;;  %v2010_v31 = vld [vmem:[%s3238_s1 + $0x150] sm:$0xff]  }
  0x40   : > { %2155 = vmatprep.subr.bf16.mxu1 %v2440_v2  ;;  %2203 = vmatprep.subr.bf16.mxu0 %v2440_v2 }
  0x43   : > { %2157 = vmatpush1.bf16.msra.mxu1 %v1983_v33  ;;  %2205 = vmatpush1.bf16.msra.mxu0 %v2652_v34  ;;  %v454_v33 = vld [vmem:[%s2507_s30 + $0x268] sm:$0xff] }
  0x44   : > { %2206 = vmatprep.subr.bf16.mxu0 %v2440_v2  ;;  %2262 = vmatprep.subr.bf16.mxu1 %v2440_v2 }
  0x46   : > { %770 = vmatmul.mubr.f32.vlgmr.msra.gmra.mrb[0].mxu1 %v377_v35  ;;  %995 = vmatmul.mubr.f32.vlgmr.msra.gmra.mrb[0].mxu0 %v379_v36  ;;  %v456_v35 = vld [vmem:[%s2507_s30 + $0x278] sm:$0xff]  ;;  %v462_v36 = vld [vmem:[%s2507_s30 + $0x2a8] sm:$0xff] }
  0x47   : > { %2208 = vmatpush1.bf16.msra.mxu0 %v2000_v37  ;;  %2278 = vmatpush1.bf16.msra.mxu1 %v2475_v1  ;;  %v419_v1 = vld [vmem:[%s2507_s30 + $0x150] sm:$0xff]  ;;  %v2011_v37 = vld [vmem:[%s3238_s1 + $0x158] sm:$0xff]  }
  0x48   : > { %774 = vmatprep.mubr.f32.mxu1 %v385_v38  ;;  %999 = vmatprep.mubr.f32.mxu0 %v387_v39  ;;  %v461_v38 = vld [vmem:[%s2507_s30 + $0x2a0] sm:$0xff]  ;;  %v463_v39 = vld [vmem:[%s2507_s30 + $0x2b0] sm:$0xff] }
  0x49   : > { %2209 = vmatprep.subr.bf16.mxu0 %v2440_v2  ;;  %2263 = vmatprep.subr.bf16.mxu1 %v2440_v2 }
  0x4a   : > { %775 = vmatmul.mubr.f32.gmra.mrb[2].mxu1 %v384_v40  ;;  %1000 = vmatmul.mubr.f32.gmra.mrb[2].mxu0 %v386_v41  ;;  %v469_v40 = vld [vmem:[%s2507_s30 + $0x2e0] sm:$0xff] }
  0x4b   : > { %779 = vmatprep.mubr.f32.mxu1 %v392_v42  ;;  %1004 = vmatprep.mubr.f32.mxu0 %v394_v43  ;;  %v2012_v41 = vld [vmem:[%s3238_s1 + $0x160] sm:$0xff]   ;;  %v468_v42 = vld [vmem:[%s2507_s30 + $0x2d8] sm:$0xff]  ;;  %v470_v43 = vld [vmem:[%s2507_s30 + $0x2e8] sm:$0xff] }
  0x4c   : > { %2211 = vmatpush1.bf16.msra.mxu0 %v2001_v44  ;;  %2279 = vmatpush1.bf16.msra.mxu1 %v2488_v4  ;;  %v427_v4 = vld [vmem:[%s2507_s30 + $0x190] sm:$0xff]  ;;  %v476_v44 = vld [vmem:[%s2507_s30 + $0x318] sm:$0xff] }
  0x4d   : > { %2212 = vmatprep.subr.bf16.mxu0 %v2440_v2  ;;  %2264 = vmatprep.subr.bf16.mxu1 %v2440_v2 }
  0x4e   : > { %780 = vmatmul.mubr.f32.gmra.mrb[4].mxu1 %v391_v45  ;;  %1005 = vmatmul.mubr.f32.gmra.mrb[4].mxu0 %v393_v46  ;;  %v2013_v45 = vld [vmem:[%s3238_s1 + $0x168] sm:$0xff]   ;;  %v475_v46 = vld [vmem:[%s2507_s30 + $0x310] sm:$0xff] }
  0x4f   : > { %784 = vmatprep.mubr.f32.mxu1 %v399_v47  ;;  %1009 = vmatprep.mubr.f32.mxu0 %v401_v48  ;;  %v477_v47 = vld [vmem:[%s2507_s30 + $0x320] sm:$0xff]  ;;  %v483_v48 = vld [vmem:[%s2507_s30 + $0x350] sm:$0xff] }
  0x50   : > { %2214 = vmatpush1.bf16.msra.mxu0 %v2002_v49  ;;  %2280 = vmatpush1.bf16.msra.mxu1 %v2502_v6  ;;  %v2006_v6 = vld [vmem:[%s3238_s1 + $0x130] sm:$0xff]  }
  0x51   : > { %2215 = vmatprep.subr.bf16.mxu0 %v2440_v2  ;;  %2265 = vmatprep.subr.bf16.mxu1 %v2440_v2  ;;  %v2014_v49 = vld [vmem:[%s3238_s1 + $0x170] sm:$0xff]  }
  0x52   : > { %785 = vmatmul.mubr.f32.gmra.mrb[6].mxu1 %v398_v50  ;;  %1010 = vmatmul.mubr.f32.gmra.mrb[6].mxu0 %v400_v51  ;;  %v482_v50 = vld [vmem:[%s2507_s30 + $0x348] sm:$0xff]  ;;  %v484_v51 = vld [vmem:[%s2507_s30 + $0x358] sm:$0xff] }
  0x53   : > { %789 = vmatprep.mubr.f32.mxu1 %v406_v52  ;;  %1014 = vmatprep.mubr.f32.mxu0 %v408_v53  ;;  %v490_v52 = vld [vmem:[%s2507_s30 + $0x388] sm:$0xff]  ;;  %v2015_v53 = vld [vmem:[%s3238_s1 + $0x178] sm:$0xff]  }
  0x54   : > { %2217 = vmatpush1.bf16.msra.mxu0 %v2003_v54  ;;  %2281 = vmatpush1.bf16.msra.mxu1 %v2519_v9  ;;  %v434_v9 = vld [vmem:[%s2507_s30 + $0x1c8] sm:$0xff]  ;;  %v2817_v54 = vld [vmem:[%s3238_s1 + $0x180] sm:$0xff]  }
  0x55   : > { %2218 = vmatprep.subr.bf16.mxu0 %v2440_v2  ;;  %2266 = vmatprep.subr.bf16.mxu1 %v2440_v2 }
  0x56   : > { %790 = vmatmul.mubr.f32.gmra.mrb[8].mxu1 %v405_v55  ;;  %1015 = vmatmul.mubr.f32.gmra.mrb[8].mxu0 %v407_v56  ;;  %v491_v55 = vld [vmem:[%s2507_s30 + $0x390] sm:$0xff]  ;;  %v497_v56 = vld [vmem:[%s2507_s30 + $0x3c0] sm:$0xff] }
  0x57   : > { %794 = vmatprep.mubr.f32.mxu1 %v413_v57  ;;  %1019 = vmatprep.mubr.f32.mxu0 %v415_v58  ;;  %v499_v57 = vld [vmem:[%s2507_s30 + $0x3d0] sm:$0xff]  ;;  %v498_v58 = vld [vmem:[%s2507_s30 + $0x3c8] sm:$0xff] }
  0x58   : > { %2220 = vmatpush1.bf16.msra.mxu0 %v2004_v59  ;;  %2282 = vmatpush1.bf16.msra.mxu1 %v2531_v12  ;;  %v433_v12 = vld [vmem:[%s2507_s30 + $0x1c0] sm:$0xff]  ;;  %v504_v59 = vld [vmem:[%s2507_s30 + $0x3f8] sm:$0xff] }
  0x59   : > { %2221 = vmatprep.subr.bf16.mxu0 %v2440_v2  ;;  %2267 = vmatprep.subr.bf16.mxu1 %v2440_v2 }
  0x5a   : > { %795 = vmatmul.mubr.f32.gmra.mrb[10].mxu1 %v412_v60  ;;  %1020 = vmatmul.mubr.f32.gmra.mrb[10].mxu0 %v414_v61  ;;  %v506_v60 = vld [vmem:[%s2507_s30 + $0x408] sm:$0xff]  ;;  %v505_v61 = vld [vmem:[%s2507_s30 + $0x400] sm:$0xff] }
  0x5b   : > { %799 = vmatprep.mubr.f32.mxu1 %v420_v62  ;;  %1024 = vmatprep.mubr.f32.mxu0 %v422_v63  ;;  %v511_v62 = vld [vmem:[%s2507_s30 + $0x430] sm:$0xff]  ;;  %v513_v63 = vld [vmem:[%s2507_s30 + $0x440] sm:$0xff] }
  0x5c   : > { %2223 = vmatpush1.bf16.msra.mxu0 %v2005_v0  ;;  %2283 = vmatpush1.bf16.msra.mxu1 %v2542_v14  ;;  %v441_v14 = vld [vmem:[%s2507_s30 + $0x200] sm:$0xff]  ;;  %v510_v0 = vld [vmem:[%s2507_s30 + $0x428] sm:$0xff] }
  0x5d   : > { %2224 = vmatprep.subr.bf16.mxu0 %v2440_v2  ;;  %2268 = vmatprep.subr.bf16.mxu1 %v2440_v2 }
  0x5e   : > { %800 = vmatmul.mubr.f32.gmra.mrb[12].mxu1 %v419_v1  ;;  %1025 = vmatmul.mubr.f32.gmra.mrb[12].mxu0 %v421_v3  ;;  %v512_v1 = vld [vmem:[%s2507_s30 + $0x438] sm:$0xff]  ;;  %v518_v3 = vld [vmem:[%s2507_s30 + $0x468] sm:$0xff] }
  0x5f   : > { %804 = vmatprep.mubr.f32.mxu1 %v427_v4  ;;  %1029 = vmatprep.mubr.f32.mxu0 %v429_v5  ;;  %v520_v4 = vld [vmem:[%s2507_s30 + $0x478] sm:$0xff]  ;;  %v517_v5 = vld [vmem:[%s2507_s30 + $0x460] sm:$0xff] }
  0x60   : > { %2226 = vmatpush1.bf16.msra.mxu0 %v2006_v6  ;;  %2284 = vmatpush1.bf16.msra.mxu1 %v2553_v16  ;;  %v2008_v16 = vld [vmem:[%s3238_s1 + $0x140] sm:$0xff]   ;;  %v519_v6 = vld [vmem:[%s2507_s30 + $0x470] sm:$0xff] }
  0x61   : > { %2227 = vmatprep.subr.bf16.mxu0 %v2440_v2  ;;  %2269 = vmatprep.subr.bf16.mxu1 %v2440_v2 }
  0x62   : > { %805 = vmatmul.mubr.f32.gmra.mrb[14].mxu1 %v426_v7  ;;  %1030 = vmatmul.mubr.f32.gmra.mrb[14].mxu0 %v428_v8  ;;  %v525_v7 = vld [vmem:[%s2507_s30 + $0x4a0] sm:$0xff]  ;;  %v527_v8 = vld [vmem:[%s2507_s30 + $0x4b0] sm:$0xff] }
  0x63   : > { %809 = vmatprep.mubr.f32.mxu1 %v434_v9  ;;  %1034 = vmatprep.mubr.f32.mxu0 %v436_v10  ;;  %v524_v9 = vld [vmem:[%s2507_s30 + $0x498] sm:$0xff]  ;;  %v526_v10 = vld [vmem:[%s2507_s30 + $0x4a8] sm:$0xff] }
  0x64   : > { %2229 = vmatpush1.bf16.msra.mxu0 %v2007_v11  ;;  %2285 = vmatpush1.bf16.msra.mxu1 %v2564_v18  ;;  %v450_v18 = vld [vmem:[%s2507_s30 + $0x248] sm:$0xff]  ;;  %v532_v11 = vld [vmem:[%s2507_s30 + $0x4d8] sm:$0xff] }
  0x65   : > { %2230 = vmatprep.subr.bf16.mxu0 %v2440_v2  ;;  %2270 = vmatprep.subr.bf16.mxu1 %v2440_v2 }
  0x66   : > { %810 = vmatmul.mubr.f32.gmra.mrb[16].mxu1 %v433_v12  ;;  %1035 = vmatmul.mubr.f32.gmra.mrb[16].mxu0 %v435_v13  ;;  %v534_v12 = vld [vmem:[%s2507_s30 + $0x4e8] sm:$0xff]  ;;  %v531_v13 = vld [vmem:[%s2507_s30 + $0x4d0] sm:$0xff] }
  0x67   : > { %814 = vmatprep.mubr.f32.mxu1 %v441_v14  ;;  %1039 = vmatprep.mubr.f32.mxu0 %v443_v15  ;;  %v533_v14 = vld [vmem:[%s2507_s30 + $0x4e0] sm:$0xff]  ;;  %v539_v15 = vld [vmem:[%s2507_s30 + $0x510] sm:$0xff] }
  0x68   : > { %2232 = vmatpush1.bf16.msra.mxu0 %v2008_v16  ;;  %2286 = vmatpush1.bf16.msra.mxu1 %v2575_v20  ;;  %v457_v20 = vld [vmem:[%s2507_s30 + $0x280] sm:$0xff] }
  0x69   : > { %2233 = vmatprep.subr.bf16.mxu0 %v2440_v2  ;;  %2271 = vmatprep.subr.bf16.mxu1 %v2440_v2  ;;  %v541_v16 = vld [vmem:[%s2507_s30 + $0x520] sm:$0xff] }
  0x6a   : > { %815 = vmatmul.mubr.f32.gmra.mrb[18].mxu1 %v440_v17  ;;  %1040 = vmatmul.mubr.f32.gmra.mrb[18].mxu0 %v442_v19  ;;  %v538_v17 = vld [vmem:[%s2507_s30 + $0x508] sm:$0xff]  ;;  %v540_v19 = vld [vmem:[%s2507_s30 + $0x518] sm:$0xff] }
  0x6b   : > { %819 = vmatprep.mubr.f32.mxu1 %v448_v21  ;;  %1044 = vmatprep.mubr.f32.mxu0 %v450_v18  ;;  %v546_v21 = vld [vmem:[%s2507_s30 + $0x548] sm:$0xff] }
  0x6c   : > { %2235 = vmatpush1.bf16.msra.mxu0 %v2009_v23  ;;  %2287 = vmatpush1.bf16.msra.mxu1 %v2586_v22  ;;  %v464_v22 = vld [vmem:[%s2507_s30 + $0x2b8] sm:$0xff]  ;;  %v382_v18 = vld [vmem:[%s2507_s30 + $0x28] sm:$0xff]  ;;  %v545_v23 = vld [vmem:[%s2507_s30 + $0x540] sm:$0xff] }
  0x6d   : > { %2236 = vmatprep.subr.bf16.mxu0 %v2440_v2  ;;  %2272 = vmatprep.subr.bf16.mxu1 %v2440_v2 }
  0x6e   : > { %820 = vmatmul.mubr.f32.gmra.mrb[20].mxu1 %v447_v25  ;;  %1045 = vmatmul.mubr.f32.gmra.mrb[20].mxu0 %v449_v27  ;;  %v381_v25 = vld [vmem:[%s2507_s30 + $0x20] sm:$0xff] }
  0x6f   : > { %824 = vmatprep.mubr.f32.mxu1 %v455_v29  ;;  %1049 = vmatprep.mubr.f32.mxu0 %v457_v20  ;;  %v553_v27 = vld [vmem:[%s2507_s30 + $0x580] sm:$0xff]  ;;  %v552_v20 = vld [vmem:[%s2507_s30 + $0x578] sm:$0xff] }
  0x70   : > { %2238 = vmatpush1.bf16.msra.mxu0 %v2010_v31  ;;  %2288 = vmatpush1.bf16.msra.mxu1 %v2597_v24  ;;  %v471_v24 = vld [vmem:[%s2507_s30 + $0x2f0] sm:$0xff]  ;;  %v389_v29 = vld [vmem:[%s2507_s30 + $0x60] sm:$0xff]  ;;  %v388_v31 = vld [vmem:[%s2507_s30 + $0x58] sm:$0xff] }
  0x71   : > { %2239 = vmatprep.subr.bf16.mxu0 %v2440_v2  ;;  %2273 = vmatprep.subr.bf16.mxu1 %v2440_v2 }
  0x72   : > { %825 = vmatmul.mubr.f32.gmra.mrb[22].mxu1 %v454_v33  ;;  %1050 = vmatmul.mubr.f32.gmra.mrb[22].mxu0 %v456_v35  ;;  %v560_v33 = vld [vmem:[%s2507_s30 + $0x5b8] sm:$0xff] }
  0x73   : > { %829 = vmatprep.mubr.f32.mxu1 %v462_v36  ;;  %1054 = vmatprep.mubr.f32.mxu0 %v464_v22  ;;  %v396_v35 = vld [vmem:[%s2507_s30 + $0x98] sm:$0xff]  ;;  %v559_v36 = vld [vmem:[%s2507_s30 + $0x5b0] sm:$0xff] }
  0x74   : > { %2241 = vmatpush1.bf16.msra.mxu0 %v2011_v37  ;;  %2289 = vmatpush1.bf16.msra.mxu1 %v2608_v26  ;;  %v478_v26 = vld [vmem:[%s2507_s30 + $0x328] sm:$0xff]  ;;  %v395_v22 = vld [vmem:[%s2507_s30 + $0x90] sm:$0xff] }
  0x75   : > { %2242 = vmatprep.subr.bf16.mxu0 %v2440_v2  ;;  %2274 = vmatprep.subr.bf16.mxu1 %v2440_v2  ;;  %v567_v37 = vld [vmem:[%s2507_s30 + $0x5f0] sm:$0xff] }
  0x76   : > { %830 = vmatmul.mubr.f32.gmra.mrb[24].mxu1 %v461_v38  ;;  %1055 = vmatmul.mubr.f32.gmra.mrb[24].mxu0 %v463_v39  ;;  %v403_v38 = vld [vmem:[%s2507_s30 + $0xd0] sm:$0xff]  ;;  %v566_v39 = vld [vmem:[%s2507_s30 + $0x5e8] sm:$0xff] }
  0x77   : > { %834 = vmatprep.mubr.f32.mxu1 %v469_v40  ;;  %1059 = vmatprep.mubr.f32.mxu0 %v471_v24  ;;  %v402_v40 = vld [vmem:[%s2507_s30 + $0xc8] sm:$0xff] }
  0x78   : > { %2244 = vmatpush1.bf16.msra.mxu0 %v2012_v41  ;;  %2290 = vmatpush1.bf16.msra.mxu1 %v2619_v28  ;;  %v485_v28 = vld [vmem:[%s2507_s30 + $0x360] sm:$0xff]  ;;  %v574_v24 = vld [vmem:[%s2507_s30 + $0x628] sm:$0xff] }
  0x79   : > { %2245 = vmatprep.subr.bf16.mxu0 %v2440_v2  ;;  %2275 = vmatprep.subr.bf16.mxu1 %v2440_v2  ;;  %v410_v41 = vld [vmem:[%s2507_s30 + $0x108] sm:$0xff] }
  0x7a   : > { %835 = vmatmul.mubr.f32.gmra.mrb[26].mxu1 %v468_v42  ;;  %1060 = vmatmul.mubr.f32.gmra.mrb[26].mxu0 %v470_v43  ;;  %v573_v42 = vld [vmem:[%s2507_s30 + $0x620] sm:$0xff] }
  0x7b   : > { %839 = vmatprep.mubr.f32.mxu1 %v476_v44  ;;  %1064 = vmatprep.mubr.f32.mxu0 %v478_v26  ;;  %v409_v43 = vld [vmem:[%s2507_s30 + $0x100] sm:$0xff] }
  0x7c   : > { %2247 = vmatpush1.bf16.msra.mxu0 %v2013_v45  ;;  %2291 = vmatpush1.bf16.msra.mxu1 %v2630_v30  ;;  %v492_v30 = vld [vmem:[%s2507_s30 + $0x398] sm:$0xff]  ;;  %v581_v44 = vld [vmem:[%s2507_s30 + $0x660] sm:$0xff] }
  0x7d   : > { %2248 = vmatprep.subr.bf16.mxu0 %v2440_v2  ;;  %2276 = vmatprep.subr.bf16.mxu1 %v2440_v2  ;;  %v417_v26 = vld [vmem:[%s2507_s30 + $0x140] sm:$0xff]  ;;  %v580_v45 = vld [vmem:[%s2507_s30 + $0x658] sm:$0xff] }
  0x7e   : > { %840 = vmatmul.mubr.f32.gmra.mrb[28].mxu1 %v475_v46  ;;  %1065 = vmatmul.mubr.f32.gmra.mrb[28].mxu0 %v477_v47  ;;  %v416_v46 = vld [vmem:[%s2507_s30 + $0x138] sm:$0xff] }
  0x7f   : > { %844 = vmatprep.mubr.f32.mxu1 %v483_v48  ;;  %1069 = vmatprep.mubr.f32.mxu0 %v485_v28  ;;  %v588_v47 = vld [vmem:[%s2507_s30 + $0x698] sm:$0xff]  ;;  %v587_v28 = vld [vmem:[%s2507_s30 + $0x690] sm:$0xff] }
  0x80   : > { %2250 = vmatpush1.bf16.msra.mxu0 %v2014_v49  ;;  %2292 = vmatpush1.bf16.msra.mxu1 %v2641_v32  ;;  %v489_v32 = vld [vmem:[%s2507_s30 + $0x380] sm:$0xff]  ;;  %v424_v48 = vld [vmem:[%s2507_s30 + $0x178] sm:$0xff]  ;;  %v423_v49 = vld [vmem:[%s2507_s30 + $0x170] sm:$0xff] }
  0x81   : > { %2251 = vmatprep.subr.bf16.mxu0 %v2440_v2  ;;  %2277 = vmatprep.subr.bf16.mxu1 %v2440_v2  ;;  %v496_v2 = vld [vmem:[%s2507_s30 + $0x3b8] sm:$0xff] }
  0x82   : > { %845 = vmatmul.mubr.f32.gmra.mrb[30].mxu1 %v482_v50  ;;  %1070 = vmatmul.mubr.f32.gmra.mrb[30].mxu0 %v484_v51  ;;  %v595_v50 = vld [vmem:[%s2507_s30 + $0x6d0] sm:$0xff] }
  0x83   : > { %849 = vmatprep.mubr.f32.mxu1 %v490_v52  ;;  %1074 = vmatprep.mubr.f32.mxu0 %v492_v30  ;;  %v431_v51 = vld [vmem:[%s2507_s30 + $0x1b0] sm:$0xff]  ;;  %v594_v52 = vld [vmem:[%s2507_s30 + $0x6c8] sm:$0xff] }
  0x84   : > { %2253 = vmatpush1.bf16.msra.mxu0 %v2015_v53  ;;  %2293 = vmatpush1.bf16.msra.mxu1 %v2652_v34  ;;  %v503_v34 = vld [vmem:[%s2507_s30 + $0x3f0] sm:$0xff]  ;;  %v430_v30 = vld [vmem:[%s2507_s30 + $0x1a8] sm:$0xff]  ;;  %v548_v53 = vld [vmem:[%s2507_s30 + $0x558] sm:$0xff] }
  0x85   : > { %2255 = vmatprep.subr.bf16.mxu1 %v2817_v54 }
  0x86   : > { %850 = vmatmul.mubr.f32.gmra.mrb[32].mxu1 %v489_v32  ;;  %1075 = vmatmul.mubr.f32.gmra.mrb[32].mxu0 %v491_v55  ;;  %v438_v32 = vld [vmem:[%s2507_s30 + $0x1e8] sm:$0xff]  ;;  %v547_v55 = vld [vmem:[%s2507_s30 + $0x550] sm:$0xff] }
  0x87   : > { %854 = vmatprep.mubr.f32.mxu1 %v497_v56  ;;  %1079 = vmatprep.mubr.f32.mxu0 %v499_v57  ;;  %v437_v56 = vld [vmem:[%s2507_s30 + $0x1e0] sm:$0xff]  ;;  %v555_v57 = vld [vmem:[%s2507_s30 + $0x590] sm:$0xff] }
  0x8a   : > { %855 = vmatmul.mubr.f32.gmra.mrb[34].mxu1 %v496_v2  ;;  %1080 = vmatmul.mubr.f32.gmra.mrb[34].mxu0 %v498_v58  ;;  %v445_v2 = vld [vmem:[%s2507_s30 + $0x220] sm:$0xff]  ;;  %v2017_v58 = vld [vmem:[%s3238_s1 + $0x188] sm:$0xff]  }
  0x8b   : > { %859 = vmatprep.mubr.f32.mxu1 %v504_v59  ;;  %1084 = vmatprep.mubr.f32.mxu0 %v506_v60  ;;  %v554_v59 = vld [vmem:[%s2507_s30 + $0x588] sm:$0xff]  ;;  %v444_v60 = vld [vmem:[%s2507_s30 + $0x218] sm:$0xff] }
  0x8e   : > { %860 = vmatmul.mubr.f32.gmra.mrb[36].mxu1 %v503_v34  ;;  %1085 = vmatmul.mubr.f32.gmra.mrb[36].mxu0 %v505_v61  ;;  %v562_v34 = vld [vmem:[%s2507_s30 + $0x5c8] sm:$0xff]  ;;  %v452_v61 = vld [vmem:[%s2507_s30 + $0x258] sm:$0xff] }
  0x8f   : > { %864 = vmatprep.mubr.f32.mxu1 %v511_v62  ;;  %1089 = vmatprep.mubr.f32.mxu0 %v513_v63  ;;  %v561_v62 = vld [vmem:[%s2507_s30 + $0x5c0] sm:$0xff]  ;;  %v451_v63 = vld [vmem:[%s2507_s30 + $0x250] sm:$0xff] }
  0x92   : > { %865 = vmatmul.mubr.f32.gmra.mrb[38].mxu1 %v510_v0  ;;  %1090 = vmatmul.mubr.f32.gmra.mrb[38].mxu0 %v512_v1  ;;  %v569_v0 = vld [vmem:[%s2507_s30 + $0x600] sm:$0xff]  ;;  %v568_v1 = vld [vmem:[%s2507_s30 + $0x5f8] sm:$0xff] }
  0x93   : > { %869 = vmatprep.mubr.f32.mxu1 %v518_v3  ;;  %1094 = vmatprep.mubr.f32.mxu0 %v520_v4  ;;  %v458_v3 = vld [vmem:[%s2507_s30 + $0x288] sm:$0xff]  ;;  %v576_v4 = vld [vmem:[%s2507_s30 + $0x638] sm:$0xff] }
  0x96   : > { %870 = vmatmul.mubr.f32.gmra.mrb[40].mxu1 %v517_v5  ;;  %1095 = vmatmul.mubr.f32.gmra.mrb[40].mxu0 %v519_v6  ;;  %v466_v5 = vld [vmem:[%s2507_s30 + $0x2c8] sm:$0xff]  ;;  %v575_v6 = vld [vmem:[%s2507_s30 + $0x630] sm:$0xff] }
  0x97   : > { %874 = vmatprep.mubr.f32.mxu1 %v525_v7  ;;  %1099 = vmatprep.mubr.f32.mxu0 %v527_v8  ;;  %v465_v7 = vld [vmem:[%s2507_s30 + $0x2c0] sm:$0xff]  ;;  %v583_v8 = vld [vmem:[%s2507_s30 + $0x670] sm:$0xff] }
  0x9a   : > { %875 = vmatmul.mubr.f32.gmra.mrb[42].mxu1 %v524_v9  ;;  %1100 = vmatmul.mubr.f32.gmra.mrb[42].mxu0 %v526_v10  ;;  %v473_v9 = vld [vmem:[%s2507_s30 + $0x300] sm:$0xff]  ;;  %v582_v10 = vld [vmem:[%s2507_s30 + $0x668] sm:$0xff] }
  0x9b   : > { %879 = vmatprep.mubr.f32.mxu1 %v532_v11  ;;  %1104 = vmatprep.mubr.f32.mxu0 %v534_v12  ;;  %v472_v11 = vld [vmem:[%s2507_s30 + $0x2f8] sm:$0xff]  ;;  %v590_v12 = vld [vmem:[%s2507_s30 + $0x6a8] sm:$0xff] }
  0x9e   : > { %880 = vmatmul.mubr.f32.gmra.mrb[44].mxu1 %v531_v13  ;;  %1105 = vmatmul.mubr.f32.gmra.mrb[44].mxu0 %v533_v14  ;;  %v480_v13 = vld [vmem:[%s2507_s30 + $0x338] sm:$0xff]  ;;  %v589_v14 = vld [vmem:[%s2507_s30 + $0x6a0] sm:$0xff] }
  0x9f   : > { %884 = vmatprep.mubr.f32.mxu1 %v539_v15  ;;  %1109 = vmatprep.mubr.f32.mxu0 %v541_v16  ;;  %v479_v15 = vld [vmem:[%s2507_s30 + $0x330] sm:$0xff]  ;;  %v597_v16 = vld [vmem:[%s2507_s30 + $0x6e0] sm:$0xff] }
  0xa2   : > { %885 = vmatmul.mubr.f32.gmra.mrb[46].mxu1 %v538_v17  ;;  %1110 = vmatmul.mubr.f32.gmra.mrb[46].mxu0 %v540_v19  ;;  %v487_v17 = vld [vmem:[%s2507_s30 + $0x370] sm:$0xff]  ;;  %v596_v19 = vld [vmem:[%s2507_s30 + $0x6d8] sm:$0xff] }
  0xa3   : > { %889 = vmatprep.mubr.f32.mxu1 %v546_v21  ;;  %1219 = vmatprep.mubr.f32.mxu0 %v382_v18  ;;  %v486_v21 = vld [vmem:[%s2507_s30 + $0x368] sm:$0xff] }
  0xa4   : > { %v494_v18 = vld [vmem:[%s2507_s30 + $0x3a8] sm:$0xff] }
  0xa6   : > { %890 = vmatmul.mubr.f32.gmra.mrb[48].mxu1 %v545_v23  ;;  %1220 = vmatmul.mubr.f32.vlgmr.msra.gmra.mrb[0].mxu0 %v381_v25  ;;  %v383_v23 = vld [vmem:[%s2507_s30 + $0x30] sm:$0xff]  ;;  %v493_v25 = vld [vmem:[%s2507_s30 + $0x3a0] sm:$0xff] }
  0xa7   : > { %894 = vmatprep.mubr.f32.mxu1 %v553_v27  ;;  %1224 = vmatprep.mubr.f32.mxu0 %v389_v29  ;;  %v390_v27 = vld [vmem:[%s2507_s30 + $0x68] sm:$0xff]  ;;  %v501_v29 = vld [vmem:[%s2507_s30 + $0x3e0] sm:$0xff] }
  0xaa   : > { %895 = vmatmul.mubr.f32.gmra.mrb[50].mxu1 %v552_v20  ;;  %1225 = vmatmul.mubr.f32.gmra.mrb[2].mxu0 %v388_v31  ;;  %v397_v20 = vld [vmem:[%s2507_s30 + $0xa0] sm:$0xff]  ;;  %v500_v31 = vld [vmem:[%s2507_s30 + $0x3d8] sm:$0xff] }
  0xab   : > { %899 = vmatprep.mubr.f32.mxu1 %v560_v33  ;;  %1229 = vmatprep.mubr.f32.mxu0 %v396_v35  ;;  %v404_v33 = vld [vmem:[%s2507_s30 + $0xd8] sm:$0xff] }
  0xac   : > { %v508_v35 = vld [vmem:[%s2507_s30 + $0x418] sm:$0xff] }
  0xae   : > { %900 = vmatmul.mubr.f32.gmra.mrb[52].mxu1 %v559_v36  ;;  %1230 = vmatmul.mubr.f32.gmra.mrb[4].mxu0 %v395_v22  ;;  %v411_v36 = vld [vmem:[%s2507_s30 + $0x110] sm:$0xff] }
  0xaf   : > { %904 = vmatprep.mubr.f32.mxu1 %v567_v37  ;;  %1234 = vmatprep.mubr.f32.mxu0 %v403_v38  ;;  %v507_v22 = vld [vmem:[%s2507_s30 + $0x410] sm:$0xff]  ;;  %v418_v37 = vld [vmem:[%s2507_s30 + $0x148] sm:$0xff] }
  0xb0   : > { %v515_v38 = vld [vmem:[%s2507_s30 + $0x450] sm:$0xff] }
  0xb2   : > { %905 = vmatmul.mubr.f32.gmra.mrb[54].mxu1 %v566_v39  ;;  %1235 = vmatmul.mubr.f32.gmra.mrb[6].mxu0 %v402_v40  ;;  %v425_v39 = vld [vmem:[%s2507_s30 + $0x180] sm:$0xff]  ;;  %v514_v40 = vld [vmem:[%s2507_s30 + $0x448] sm:$0xff] }
  0xb3   : > { %909 = vmatprep.mubr.f32.mxu1 %v574_v24  ;;  %1239 = vmatprep.mubr.f32.mxu0 %v410_v41  ;;  %v432_v24 = vld [vmem:[%s2507_s30 + $0x1b8] sm:$0xff]  ;;  %v522_v41 = vld [vmem:[%s2507_s30 + $0x488] sm:$0xff] }
  0xb6   : > { %910 = vmatmul.mubr.f32.gmra.mrb[56].mxu1 %v573_v42  ;;  %1240 = vmatmul.mubr.f32.gmra.mrb[8].mxu0 %v409_v43  ;;  %v439_v42 = vld [vmem:[%s2507_s30 + $0x1f0] sm:$0xff]  ;;  %v521_v43 = vld [vmem:[%s2507_s30 + $0x480] sm:$0xff] }
  0xb7   : > { %914 = vmatprep.mubr.f32.mxu1 %v581_v44  ;;  %1244 = vmatprep.mubr.f32.mxu0 %v417_v26  ;;  %v446_v44 = vld [vmem:[%s2507_s30 + $0x228] sm:$0xff]  ;;  %v529_v26 = vld [vmem:[%s2507_s30 + $0x4c0] sm:$0xff] }
  0xba   : > { %915 = vmatmul.mubr.f32.gmra.mrb[58].mxu1 %v580_v45  ;;  %1245 = vmatmul.mubr.f32.gmra.mrb[10].mxu0 %v416_v46  ;;  %v453_v45 = vld [vmem:[%s2507_s30 + $0x260] sm:$0xff]  ;;  %v528_v46 = vld [vmem:[%s2507_s30 + $0x4b8] sm:$0xff] }
  0xbb   : > { %919 = vmatprep.mubr.f32.mxu1 %v588_v47  ;;  %1249 = vmatprep.mubr.f32.mxu0 %v424_v48  ;;  %v460_v47 = vld [vmem:[%s2507_s30 + $0x298] sm:$0xff] }
  0xbc   : > { %v536_v48 = vld [vmem:[%s2507_s30 + $0x4f8] sm:$0xff] }
  0xbe   : > { %920 = vmatmul.mubr.f32.gmra.mrb[60].mxu1 %v587_v28  ;;  %1250 = vmatmul.mubr.f32.gmra.mrb[12].mxu0 %v423_v49  ;;  %v467_v28 = vld [vmem:[%s2507_s30 + $0x2d0] sm:$0xff] }
  0xbf   : > { %924 = vmatprep.mubr.f32.mxu1 %v595_v50  ;;  %1254 = vmatprep.mubr.f32.mxu0 %v431_v51  ;;  %v535_v49 = vld [vmem:[%s2507_s30 + $0x4f0] sm:$0xff]  ;;  %v474_v50 = vld [vmem:[%s2507_s30 + $0x308] sm:$0xff] }
  0xc0   : > { %v543_v51 = vld [vmem:[%s2507_s30 + $0x530] sm:$0xff] }
  0xc2   : > { %925 = vmatmul.mubr.f32.gmra.mrb[62].mxu1 %v594_v52  ;;  %1255 = vmatmul.mubr.f32.gmra.mrb[14].mxu0 %v430_v30  ;;  %v481_v52 = vld [vmem:[%s2507_s30 + $0x340] sm:$0xff]  ;;  %v542_v30 = vld [vmem:[%s2507_s30 + $0x528] sm:$0xff] }
  0xc3   : > { %1114 = vmatprep.mubr.f32.mxu1 %v548_v53  ;;  %1259 = vmatprep.mubr.f32.mxu0 %v438_v32  ;;  %v488_v53 = vld [vmem:[%s2507_s30 + $0x378] sm:$0xff]  ;;  %v550_v32 = vld [vmem:[%s2507_s30 + $0x568] sm:$0xff] }
  0xc6   : > { %1115 = vmatmul.mubr.f32.vlgmr.msra.gmra.mrb[48].mxu1 %v547_v55  ;;  %1260 = vmatmul.mubr.f32.gmra.mrb[16].mxu0 %v437_v56  ;;  %v495_v55 = vld [vmem:[%s2507_s30 + $0x3b0] sm:$0xff]  ;;  %v549_v56 = vld [vmem:[%s2507_s30 + $0x560] sm:$0xff] }
  0xc7   : > { %2257 = vmatpush3.bf16.msra.mxu1 %v2817_v54  ;;  %1119 = vmatprep.mubr.f32.mxu1 %v555_v57  ;;  %v459_v54 = vld [vmem:[%s2507_s30 + $0x290] sm:$0xff]  ;;  %v502_v57 = vld [vmem:[%s2507_s30 + $0x3e8] sm:$0xff] }
  0xc8   : > { %1264 = vmatprep.mubr.f32.mxu0 %v445_v2  ;;  %2259 = vmatprep.subr.bf16.mxu1 %v2017_v58  ;;  %v557_v2 = vld [vmem:[%s2507_s30 + $0x5a0] sm:$0xff] }
  0xca   : > { %1120 = vmatmul.mubr.f32.gmra.mrb[50].mxu1 %v554_v59  ;;  %1265 = vmatmul.mubr.f32.gmra.mrb[18].mxu0 %v444_v60  ;;  %v556_v59 = vld [vmem:[%s2507_s30 + $0x598] sm:$0xff] }
  0xcb   : > { %1124 = vmatprep.mubr.f32.mxu1 %v562_v34  ;;  %1269 = vmatprep.mubr.f32.mxu0 %v452_v61  ;;  %v516_v60 = vld [vmem:[%s2507_s30 + $0x458] sm:$0xff]  ;;  %v523_v61 = vld [vmem:[%s2507_s30 + $0x490] sm:$0xff] }
  0xcc   : > { %2261 = vmatpush3.bf16.msra.mxu1 %v2017_v58  ;;  %v509_v58 = vld [vmem:[%s2507_s30 + $0x420] sm:$0xff]  ;;  %v564_v34 = vld [vmem:[%s2507_s30 + $0x5d8] sm:$0xff] }
  0xce   : > { %1125 = vmatmul.mubr.f32.gmra.mrb[52].mxu1 %v561_v62  ;;  %1270 = vmatmul.mubr.f32.gmra.mrb[20].mxu0 %v451_v63  ;;  %v563_v62 = vld [vmem:[%s2507_s30 + $0x5d0] sm:$0xff]  ;;  %v530_v63 = vld [vmem:[%s2507_s30 + $0x4c8] sm:$0xff] }
  0xcf   : > { %1129 = vmatprep.mubr.f32.mxu1 %v569_v0  ;;  %1274 = vmatprep.mubr.f32.mxu0 %v459_v54  ;;  %v571_v0 = vld [vmem:[%s2507_s30 + $0x610] sm:$0xff]  ;;  %v537_v54 = vld [vmem:[%s2507_s30 + $0x500] sm:$0xff] }
  0xd2   : > { %1130 = vmatmul.mubr.f32.gmra.mrb[54].mxu1 %v568_v1  ;;  %1275 = vmatmul.mubr.f32.gmra.mrb[22].mxu0 %v458_v3  ;;  %v570_v1 = vld [vmem:[%s2507_s30 + $0x608] sm:$0xff]  ;;  %v544_v3 = vld [vmem:[%s2507_s30 + $0x538] sm:$0xff] }
  0xd3   : > { %1134 = vmatprep.mubr.f32.mxu1 %v576_v4  ;;  %1279 = vmatprep.mubr.f32.mxu0 %v466_v5  ;;  %v578_v4 = vld [vmem:[%s2507_s30 + $0x648] sm:$0xff]  ;;  %v551_v5 = vld [vmem:[%s2507_s30 + $0x570] sm:$0xff] }
  0xd6   : > { %1135 = vmatmul.mubr.f32.gmra.mrb[56].mxu1 %v575_v6  ;;  %1280 = vmatmul.mubr.f32.gmra.mrb[24].mxu0 %v465_v7  ;;  %v577_v6 = vld [vmem:[%s2507_s30 + $0x640] sm:$0xff]  ;;  %v558_v7 = vld [vmem:[%s2507_s30 + $0x5a8] sm:$0xff] }
  0xd7   : > { %1139 = vmatprep.mubr.f32.mxu1 %v583_v8  ;;  %1284 = vmatprep.mubr.f32.mxu0 %v473_v9  ;;  %v585_v8 = vld [vmem:[%s2507_s30 + $0x680] sm:$0xff] }
  0xd8   : > { %v565_v9 = vld [vmem:[%s2507_s30 + $0x5e0] sm:$0xff] }
  0xda   : > { %1140 = vmatmul.mubr.f32.gmra.mrb[58].mxu1 %v582_v10  ;;  %1285 = vmatmul.mubr.f32.gmra.mrb[26].mxu0 %v472_v11  ;;  %v584_v10 = vld [vmem:[%s2507_s30 + $0x678] sm:$0xff] }
  0xdb   : > { %1144 = vmatprep.mubr.f32.mxu1 %v590_v12  ;;  %1289 = vmatprep.mubr.f32.mxu0 %v480_v13  ;;  %v572_v11 = vld [vmem:[%s2507_s30 + $0x618] sm:$0xff]  ;;  %v579_v13 = vld [vmem:[%s2507_s30 + $0x650] sm:$0xff] }
  0xdc   : > { %v592_v12 = vld [vmem:[%s2507_s30 + $0x6b8] sm:$0xff] }
  0xde   : > { %1145 = vmatmul.mubr.f32.gmra.mrb[60].mxu1 %v589_v14  ;;  %1290 = vmatmul.mubr.f32.gmra.mrb[28].mxu0 %v479_v15 }
  0xdf   : > { %1149 = vmatprep.mubr.f32.mxu1 %v597_v16  ;;  %1294 = vmatprep.mubr.f32.mxu0 %v487_v17  ;;  %v591_v16 = vld [vmem:[%s2507_s30 + $0x6b0] sm:$0xff]  ;;  %v586_v17 = vld [vmem:[%s2507_s30 + $0x688] sm:$0xff] }
  0xe2   : > { %1150 = vmatmul.mubr.f32.gmra.mrb[62].mxu1 %v596_v19  ;;  %1295 = vmatmul.mubr.f32.gmra.mrb[30].mxu0 %v486_v21  ;;  %v599_v19 = vld [vmem:[%s2507_s30 + $0x6f0] sm:$0xff]  ;;  %v593_v21 = vld [vmem:[%s2507_s30 + $0x6c0] sm:$0xff] }
  0xe3   : > { %1299 = vmatprep.mubr.f32.mxu0 %v494_v18  ;;  %2062 = vmatprep.mubr.msk.f32.mxu1 %vm608_vm0, %v383_v23 }
  0xe6   : > { %1300 = vmatmul.mubr.f32.gmra.mrb[32].mxu0 %v493_v25  ;;  %2063 = vmatmul.mubr.msk.f32.vlgmr.msra.gmra.mrb[64].mxu1 %vm608_vm0, %v390_v27  ;;  %v598_v25 = vld [vmem:[%s2507_s30 + $0x6e8] sm:$0xff]  ;;  %v600_v27 = vld [vmem:[%s2507_s30 + $0x6f8] sm:$0xff] }
  0xe7   : > { %1304 = vmatprep.mubr.f32.mxu0 %v501_v29  ;;  %2065 = vmatprep.mubr.msk.f32.mxu1 %vm608_vm0, %v397_v20 }
  0xea   : > { %1305 = vmatmul.mubr.f32.gmra.mrb[34].mxu0 %v500_v31  ;;  %2066 = vmatmul.mubr.msk.f32.gmra.mrb[66].mxu1 %vm608_vm0, %v404_v33 }
  0xeb   : > { %1309 = vmatprep.mubr.f32.mxu0 %v508_v35  ;;  %2068 = vmatprep.mubr.msk.f32.mxu1 %vm608_vm0, %v411_v36 }
  0xee   : > { %1310 = vmatmul.mubr.f32.gmra.mrb[36].mxu0 %v507_v22  ;;  %2069 = vmatmul.mubr.msk.f32.gmra.mrb[68].mxu1 %vm608_vm0, %v418_v37 }
  0xef   : > { %1314 = vmatprep.mubr.f32.mxu0 %v515_v38  ;;  %2071 = vmatprep.mubr.msk.f32.mxu1 %vm608_vm0, %v425_v39 }
  0xf2   : > { %1315 = vmatmul.mubr.f32.gmra.mrb[38].mxu0 %v514_v40  ;;  %2072 = vmatmul.mubr.msk.f32.gmra.mrb[70].mxu1 %vm608_vm0, %v432_v24 }
  0xf3   : > { %1319 = vmatprep.mubr.f32.mxu0 %v522_v41  ;;  %2074 = vmatprep.mubr.msk.f32.mxu1 %vm608_vm0, %v439_v42 }
  0xf6   : > { %1320 = vmatmul.mubr.f32.gmra.mrb[40].mxu0 %v521_v43  ;;  %2075 = vmatmul.mubr.msk.f32.gmra.mrb[72].mxu1 %vm608_vm0, %v446_v44 }
  0xf7   : > { %1324 = vmatprep.mubr.f32.mxu0 %v529_v26  ;;  %2077 = vmatprep.mubr.msk.f32.mxu1 %vm608_vm0, %v453_v45 }
  0xfa   : > { %1325 = vmatmul.mubr.f32.gmra.mrb[42].mxu0 %v528_v46  ;;  %2078 = vmatmul.mubr.msk.f32.gmra.mrb[74].mxu1 %vm608_vm0, %v460_v47 }
  0xfb   : > { %1329 = vmatprep.mubr.f32.mxu0 %v536_v48  ;;  %2080 = vmatprep.mubr.msk.f32.mxu1 %vm608_vm0, %v467_v28 }
  0xfe   : > { %1330 = vmatmul.mubr.f32.gmra.mrb[44].mxu0 %v535_v49  ;;  %2081 = vmatmul.mubr.msk.f32.gmra.mrb[76].mxu1 %vm608_vm0, %v474_v50 }
  0xff   : > { %1334 = vmatprep.mubr.f32.mxu0 %v543_v51  ;;  %2083 = vmatprep.mubr.msk.f32.mxu1 %vm608_vm0, %v481_v52 }
 0x102   : > { %1335 = vmatmul.mubr.f32.gmra.mrb[46].mxu0 %v542_v30  ;;  %2084 = vmatmul.mubr.msk.f32.gmra.mrb[78].mxu1 %vm608_vm0, %v488_v53 }
 0x103   : > { %1339 = vmatprep.mubr.f32.mxu0 %v550_v32  ;;  %2086 = vmatprep.mubr.msk.f32.mxu1 %vm608_vm0, %v495_v55 }
 0x106   : > { %1340 = vmatmul.mubr.f32.gmra.mrb[48].mxu0 %v549_v56  ;;  %2087 = vmatmul.mubr.msk.f32.gmra.mrb[80].mxu1 %vm608_vm0, %v502_v57 }
 0x107   : > { %1344 = vmatprep.mubr.f32.mxu0 %v557_v2  ;;  %2089 = vmatprep.mubr.msk.f32.mxu1 %vm608_vm0, %v509_v58 }
 0x10a   : > { %1345 = vmatmul.mubr.f32.gmra.mrb[50].mxu0 %v556_v59  ;;  %2090 = vmatmul.mubr.msk.f32.gmra.mrb[82].mxu1 %vm608_vm0, %v516_v60 }
 0x10b   : > { %1349 = vmatprep.mubr.f32.mxu0 %v564_v34  ;;  %2092 = vmatprep.mubr.msk.f32.mxu1 %vm608_vm0, %v523_v61 }
 0x10e   : > { %1350 = vmatmul.mubr.f32.gmra.mrb[52].mxu0 %v563_v62  ;;  %2093 = vmatmul.mubr.msk.f32.gmra.mrb[84].mxu1 %vm608_vm0, %v530_v63 }
 0x10f   : > { %1354 = vmatprep.mubr.f32.mxu0 %v571_v0  ;;  %2095 = vmatprep.mubr.msk.f32.mxu1 %vm608_vm0, %v537_v54 }
 0x112   : > { %1355 = vmatmul.mubr.f32.gmra.mrb[54].mxu0 %v570_v1  ;;  %2096 = vmatmul.mubr.msk.f32.gmra.mrb[86].mxu1 %vm608_vm0, %v544_v3  ;;  %v3052_v1 = vld [vmem:[%s3239_s2] ss:$0 sm:$0xff] }
 0x113   : > { %1359 = vmatprep.mubr.f32.mxu0 %v578_v4  ;;  %2098 = vmatprep.mubr.msk.f32.mxu1 %vm608_vm0, %v551_v5 }
 0x116   : > { %1360 = vmatmul.mubr.f32.gmra.mrb[56].mxu0 %v577_v6  ;;  %2099 = vmatmul.mubr.msk.f32.gmra.mrb[88].mxu1 %vm608_vm0, %v558_v7 }
 0x117   : > { %1364 = vmatprep.mubr.f32.mxu0 %v585_v8  ;;  %2101 = vmatprep.mubr.msk.f32.mxu1 %vm608_vm0, %v565_v9 }
 0x119   : > { %v3004_v14 = vpop.f32.mrb[0].mxu1 }
 0x11a   : > { %1365 = vmatmul.mubr.f32.gmra.mrb[58].mxu0 %v584_v10  ;;  %2102 = vmatmul.mubr.msk.f32.gmra.mrb[90].mxu1 %vm608_vm0, %v572_v11  ;;  %v773_v15 = vpop.f32.mrb[1].mxu1  ;;  %v772_v5 = vadd.f32 %v3052_v1, %v3004_v14 }
 0x11b   : > { %1369 = vmatprep.mubr.f32.mxu0 %v592_v12  ;;  %2104 = vmatprep.mubr.msk.f32.mxu1 %vm608_vm0, %v579_v13 }
 0x11d   : > { %v776_v18 = vpop.f32.mrb[2].mxu1 }
 0x11e   : > { %1370 = vmatmul.mubr.f32.gmra.mrb[60].mxu0 %v591_v16  ;;  %2105 = vmatmul.mubr.msk.f32.gmra.mrb[92].mxu1 %vm608_vm0, %v586_v17  ;;  %v778_v23 = vpop.f32.mrb[3].mxu1  ;;  %v777_v9 = vadd.f32 %v3052_v1, %v776_v18 }
 0x11f   : > { %1374 = vmatprep.mubr.f32.mxu0 %v599_v19  ;;  %2107 = vmatprep.mubr.msk.f32.mxu1 %vm608_vm0, %v593_v21 }
 0x121   : > { %v781_v29 = vpop.f32.mrb[4].mxu1 }
 0x122   : > { %1375 = vmatmul.mubr.f32.gmra.mrb[62].mxu0 %v598_v25  ;;  %2108 = vmatmul.mubr.msk.f32.gmra.mrb[94].mxu1 %vm608_vm0, %v600_v27  ;;  %v783_v20 = vpop.f32.mrb[5].mxu1  ;;  %v782_v13 = vadd.f32 %v3052_v1, %v781_v29 }
 0x125   : > { %v786_v31 = vpop.f32.mrb[6].mxu1 }
 0x126   : > { %v788_v33 = vpop.f32.mrb[7].mxu1  ;;  %v787_v19 = vadd.f32 %v3052_v1, %v786_v31 }
 0x129   : > { %v791_v35 = vpop.f32.mrb[8].mxu1 }
 0x12a   : > { %v793_v36 = vpop.f32.mrb[9].mxu1  ;;  %v792_v25 = vadd.f32 %v3052_v1, %v791_v35 }
 0x12d   : > { %v796_v22 = vpop.f32.mrb[10].mxu1 }
 0x12e   : > { %v798_v37 = vpop.f32.mrb[11].mxu1  ;;  %v797_v33 = vadd.f32 %v3052_v1, %v796_v22 }
 0x131   : > { %v801_v38 = vpop.f32.mrb[12].mxu1 }
 0x132   : > { %v803_v39 = vpop.f32.mrb[13].mxu1 }
 0x133   : > { %v802_v39 = vadd.f32 %v3052_v1, %v801_v38 }
 0x135   : > { %v3017_v40 = vpop.f32.mrb[14].mxu1 }
 0x136   : > { %v808_v24 = vpop.f32.mrb[15].mxu1 }
 0x139   : > { %v3019_v41 = vpop.f32.mrb[16].mxu1 }
 0x13a   : > { %v813_v42 = vpop.f32.mrb[17].mxu1  ;;  %v812_v22 = vadd.f32 %v3052_v1, %v3019_v41 }
 0x13d   : > { %v3021_v43 = vpop.f32.mrb[18].mxu1 }
 0x13e   : > { %v818_v44 = vpop.f32.mrb[19].mxu1 }
 0x13f   : > { %v807_v44 = vadd.f32 %v3052_v1, %v3017_v40 }
 0x141   : > { %v3023_v26 = vpop.f32.mrb[20].mxu1 }
 0x142   : > { %v823_v45 = vpop.f32.mrb[21].mxu1  ;;  %v822_v41 = vadd.f32 %v3052_v1, %v3023_v26 }
 0x145   : > { %v3025_v46 = vpop.f32.mrb[22].mxu1 }
 0x146   : > { %v828_v47 = vpop.f32.mrb[23].mxu1 }
 0x149   : > { %v3027_v48 = vpop.f32.mrb[24].mxu1 }
 0x14a   : > { %v833_v28 = vpop.f32.mrb[25].mxu1  ;;  %v832_v26 = vadd.f32 %v3052_v1, %v3027_v48 }
 0x14d   : > { %v3029_v49 = vpop.f32.mrb[26].mxu1 }
 0x14e   : > { %v838_v50 = vpop.f32.mrb[27].mxu1 }
 0x151   : > { %v3031_v51 = vpop.f32.mrb[28].mxu1 }
 0x152   : > { %v843_v52 = vpop.f32.mrb[29].mxu1  ;;  %v842_v48 = vadd.f32 %v3052_v1, %v3031_v51 }
 0x155   : > { %v3033_v30 = vpop.f32.mrb[30].mxu1 }
 0x156   : > { %v848_v53 = vpop.f32.mrb[31].mxu1 }
 0x159   : > { %v3035_v32 = vpop.f32.mrb[32].mxu1 }
 0x15a   : > { %v853_v55 = vpop.f32.mrb[33].mxu1  ;;  %v852_v51 = vadd.f32 %v3052_v1, %v3035_v32 }
 0x15b   : > { %v817_v55 = vadd.f32 %v3052_v1, %v3021_v43  ;;  %v827_v43 = vadd.f32 %v3052_v1, %v3025_v46  ;;  %v837_v46 = vadd.f32 %v3052_v1, %v3029_v49  ;;  %v847_v49 = vadd.f32 %v3052_v1, %v3033_v30 }
 0x15d   : > { %v3037_v56 = vpop.f32.mrb[34].mxu1 }
 0x15e   : > { %v858_v57 = vpop.f32.mrb[35].mxu1  ;;  %v857_v32 = vadd.f32 %v3052_v1, %v3037_v56 }
 0x161   : > { %v3039_v2 = vpop.f32.mrb[36].mxu1 }
 0x162   : > { %v863_v58 = vpop.f32.mrb[37].mxu1 }
 0x165   : > { %v3041_v59 = vpop.f32.mrb[38].mxu1 }
 0x166   : > { %v868_v60 = vpop.f32.mrb[39].mxu1 }
 0x169   : > { %v3043_v34 = vpop.f32.mrb[40].mxu1 }
 0x16a   : > { %v873_v61 = vpop.f32.mrb[41].mxu1 }
 0x16d   : > { %v3045_v62 = vpop.f32.mrb[42].mxu1 }
 0x16e   : > { %v878_v63 = vpop.f32.mrb[43].mxu1 }
 0x171   : > { %v3047_v0 = vpop.f32.mrb[44].mxu1 }
 0x172   : > { %v883_v54 = vpop.f32.mrb[45].mxu1 }
 0x175   : > { %v3054_v3 = vpop.f32.mrb[46].mxu1 }
 0x176   : > { %v888_v4 = vpop.f32.mrb[47].mxu1 }
 0x179   : > { %v1221_v6 = vpop.f32.mrb[0].mxu0 }
 0x17a   : > { %v3058_v7 = vadd.f32 %v1221_v6, %v772_v5  ;;  %v1223_v8 = vpop.f32.mrb[1].mxu0 }
 0x17d   : > { %v1226_v10 = vpop.f32.mrb[2].mxu0 }
 0x17e   : > { %v3061_v11 = vadd.f32 %v1226_v10, %v777_v9  ;;  %v1228_v12 = vpop.f32.mrb[3].mxu0 }
 0x181   : > { %v1231_v15 = vpop.f32.mrb[4].mxu0 }
 0x182   : > { %v3064_v16 = vadd.f32 %v1231_v15, %v782_v13  ;;  %v1233_v17 = vpop.f32.mrb[5].mxu0 }
 0x185   : > { %v1236_v21 = vpop.f32.mrb[6].mxu0 }
 0x186   : > { %v3067_v14 = vadd.f32 %v1236_v21, %v787_v19  ;;  %v1238_v23 = vpop.f32.mrb[7].mxu0 }
 0x189   : > { %v1241_v27 = vpop.f32.mrb[8].mxu0 }
 0x18a   : > { %v3070_v18 = vadd.f32 %v1241_v27, %v792_v25  ;;  %v1243_v20 = vpop.f32.mrb[9].mxu0 }
 0x18d   : > { %v1246_v36 = vpop.f32.mrb[10].mxu0 }
 0x18e   : > { %v3073_v29 = vadd.f32 %v1246_v36, %v797_v33  ;;  %v1248_v37 = vpop.f32.mrb[11].mxu0 }
 0x191   : > { %v1251_v24 = vpop.f32.mrb[12].mxu0 }
 0x192   : > { %v3076_v31 = vadd.f32 %v1251_v24, %v802_v39  ;;  %v1253_v42 = vpop.f32.mrb[13].mxu0 }
 0x195   : > { %v1256_v35 = vpop.f32.mrb[14].mxu0 }
 0x196   : > { %v3080_v45 = vadd.f32 %v1256_v35, %v807_v44  ;;  %v1258_v47 = vpop.f32.mrb[15].mxu0 }
 0x199   : > { %v3084_v28 = vpop.f32.mrb[48].mxu1  ;;  %v1261_v50 = vpop.f32.mrb[16].mxu0 }
 0x19a   : > { %v3086_v52 = vadd.f32 %v1261_v50, %v812_v22  ;;  %v1118_v38 = vpop.f32.mrb[49].mxu1  ;;  %v1263_v53 = vpop.f32.mrb[17].mxu0 }
 0x19d   : > { %v3090_v57 = vpop.f32.mrb[50].mxu1  ;;  %v1266_v40 = vpop.f32.mrb[18].mxu0 }
 0x19e   : > { %v3092_v58 = vadd.f32 %v1266_v40, %v817_v55  ;;  %v1123_v60 = vpop.f32.mrb[51].mxu1  ;;  %v1268_v61 = vpop.f32.mrb[19].mxu0 }
 0x1a1   : > { %v3096_v63 = vpop.f32.mrb[52].mxu1  ;;  %v1271_v54 = vpop.f32.mrb[20].mxu0 }
 0x1a2   : > { %v3098_v4 = vadd.f32 %v1271_v54, %v822_v41  ;;  %v1128_v5 = vpop.f32.mrb[53].mxu1  ;;  %v1273_v6 = vpop.f32.mrb[21].mxu0 }
 0x1a5   : > { %v3102_v8 = vpop.f32.mrb[54].mxu1  ;;  %v1276_v9 = vpop.f32.mrb[22].mxu0 }
 0x1a6   : > { %v3104_v10 = vadd.f32 %v1276_v9, %v827_v43  ;;  %v1133_v12 = vpop.f32.mrb[55].mxu1  ;;  %v1278_v13 = vpop.f32.mrb[23].mxu0 }
 0x1a9   : > { %v3108_v15 = vpop.f32.mrb[56].mxu1  ;;  %v1281_v17 = vpop.f32.mrb[24].mxu0 }
 0x1aa   : > { %v3110_v19 = vadd.f32 %v1281_v17, %v832_v26  ;;  %v1138_v21 = vpop.f32.mrb[57].mxu1  ;;  %v1283_v23 = vpop.f32.mrb[25].mxu0 }
 0x1ad   : > { %v3114_v25 = vpop.f32.mrb[58].mxu1  ;;  %v1286_v27 = vpop.f32.mrb[26].mxu0 }
 0x1ae   : > { %v3116_v20 = vadd.f32 %v1286_v27, %v837_v46  ;;  %v1143_v33 = vpop.f32.mrb[59].mxu1  ;;  %v1288_v36 = vpop.f32.mrb[27].mxu0 }
 0x1b1   : > { %v3120_v37 = vpop.f32.mrb[60].mxu1  ;;  %v1291_v39 = vpop.f32.mrb[28].mxu0 }
 0x1b2   : > { %v3122_v24 = vadd.f32 %v1291_v39, %v842_v48  ;;  %v1148_v42 = vpop.f32.mrb[61].mxu1  ;;  %v1293_v44 = vpop.f32.mrb[29].mxu0 }
 0x1b5   : > { %v3126_v35 = vpop.f32.mrb[62].mxu1  ;;  %v1296_v47 = vpop.f32.mrb[30].mxu0 }
 0x1b6   : > { %v3128_v22 = vadd.f32 %v1296_v47, %v847_v49  ;;  %v1153_v50 = vpop.f32.mrb[63].mxu1  ;;  %v1298_v38 = vpop.f32.mrb[31].mxu0 }
 0x1b9   : > { %v1301_v53 = vpop.f32.mrb[32].mxu0  ;;  %v2064_v55 = vpop.f32.mrb[64].mxu1 }
 0x1ba   : > { %v3133_v40 = vadd.f32 %v1301_v53, %v852_v51  ;;  %v1452_v60 = vadd.f32 %v3061_v11, %v2064_v55  ;;  %v1303_v61 = vpop.f32.mrb[33].mxu0  ;;  %v1446_v41 = vpop.f32.mrb[65].mxu1 }
 0x1bb   : > { %v1447_v30 = vadd.f32 %v3058_v7, %v1446_v41  ;;  %v862_v7 = vadd.f32 %v3052_v1, %v3039_v2 }
 0x1bc   : > { %v1606_v54 = vmax.f32 %v1452_v60, 0.0 }
 0x1bd   : > { %v1605_v5 = vmax.f32 %v1447_v30, 0.0  ;;  %v1306_v6 = vpop.f32.mrb[34].mxu0  ;;  %v2067_v43 = vpop.f32.mrb[66].mxu1 }
 0x1be   : > { %1638 = vst [vmem:[%s3139_s26 + $0x8] sm:$0xff] %v1606_v54  ;;  %v3145_v11 = vadd.f32 %v1306_v6, %v857_v32  ;;  %v1462_v9 = vadd.f32 %v3067_v14, %v2067_v43  ;;  %v1308_v12 = vpop.f32.mrb[35].mxu0  ;;  %v1456_v13 = vpop.f32.mrb[67].mxu1 }
 0x1bf   : > { %1637 = vst [vmem:[%s3139_s26] sm:$0xff] %v1605_v5  ;;  %v1457_v26 = vadd.f32 %v3064_v16, %v1456_v13  ;;  %v867_v16 = vadd.f32 %v3052_v1, %v3041_v59 }
 0x1c0   : > { %v1608_v56 = vmax.f32 %v1462_v9, 0.0 }
 0x1c1   : > { %v1607_v17 = vmax.f32 %v1457_v26, 0.0  ;;  %v1311_v21 = vpop.f32.mrb[36].mxu0  ;;  %v2070_v23 = vpop.f32.mrb[68].mxu1 }
 0x1c2   : > { %1640 = vst [vmem:[%s3139_s26 + $0x18] sm:$0xff] %v1608_v56  ;;  %v3153_v46 = vadd.f32 %v1311_v21, %v862_v7  ;;  %v1472_v27 = vadd.f32 %v3073_v29, %v2070_v23  ;;  %v1313_v14 = vpop.f32.mrb[37].mxu0  ;;  %v1466_v33 = vpop.f32.mrb[69].mxu1 }
 0x1c3   : > { %1639 = vst [vmem:[%s3139_s26 + $0x10] sm:$0xff] %v1607_v17  ;;  %v1467_v36 = vadd.f32 %v3070_v18, %v1466_v33  ;;  %v872_v18 = vadd.f32 %v3052_v1, %v3043_v34 }
 0x1c4   : > { %v1610_v2 = vmax.f32 %v1472_v27, 0.0 }
 0x1c5   : > { %v1609_v48 = vmax.f32 %v1467_v36, 0.0  ;;  %v1316_v39 = vpop.f32.mrb[38].mxu0  ;;  %v2073_v42 = vpop.f32.mrb[70].mxu1 }
 0x1c6   : > { %1642 = vst [vmem:[%s3139_s26 + $0x28] sm:$0xff] %v1610_v2  ;;  %v3161_v44 = vadd.f32 %v1316_v39, %v867_v16  ;;  %v1482_v49 = vadd.f32 %v3080_v45, %v2073_v42  ;;  %v1318_v29 = vpop.f32.mrb[39].mxu0  ;;  %v1476_v47 = vpop.f32.mrb[71].mxu1 }
 0x1c7   : > { %1641 = vst [vmem:[%s3139_s26 + $0x20] sm:$0xff] %v1609_v48  ;;  %v1477_v50 = vadd.f32 %v3076_v31, %v1476_v47  ;;  %v877_v31 = vadd.f32 %v3052_v1, %v3045_v62 }
 0x1c8   : > { %v1612_v59 = vmax.f32 %v1482_v49, 0.0 }
 0x1c9   : > { %v1611_v38 = vmax.f32 %v1477_v50, 0.0  ;;  %v1321_v51 = vpop.f32.mrb[40].mxu0  ;;  %v2076_v53 = vpop.f32.mrb[72].mxu1 }
 0x1ca   : > { %1644 = vst [vmem:[%s3139_s26 + $0x38] sm:$0xff] %v1612_v59  ;;  %v3169_v55 = vadd.f32 %v1321_v51, %v872_v18  ;;  %v1492_v60 = vadd.f32 %v3092_v58, %v2076_v53  ;;  %v1323_v45 = vpop.f32.mrb[41].mxu0  ;;  %v1486_v61 = vpop.f32.mrb[73].mxu1 }
 0x1cb   : > { %1643 = vst [vmem:[%s3139_s26 + $0x30] sm:$0xff] %v1611_v38  ;;  %v1487_v41 = vadd.f32 %v3086_v52, %v1486_v61  ;;  %v882_v52 = vadd.f32 %v3052_v1, %v3047_v0 }
 0x1cc   : > { %v1614_v34 = vmax.f32 %v1492_v60, 0.0 }
 0x1cd   : > { %v1613_v30 = vmax.f32 %v1487_v41, 0.0  ;;  %v1326_v32 = vpop.f32.mrb[42].mxu0  ;;  %v2079_v54 = vpop.f32.mrb[74].mxu1 }
 0x1ce   : > { %1646 = vst [vmem:[%s3139_s26 + $0x48] sm:$0xff] %v1614_v34  ;;  %v2337_v5 = vadd.f32 %v1326_v32, %v877_v31  ;;  %v1502_v6 = vadd.f32 %v3104_v10, %v2079_v54  ;;  %v1328_v43 = vpop.f32.mrb[43].mxu0  ;;  %v1496_v58 = vpop.f32.mrb[75].mxu1 }
 0x1cf   : > { %1645 = vst [vmem:[%s3139_s26 + $0x40] sm:$0xff] %v1613_v30  ;;  %v1497_v9 = vadd.f32 %v3098_v4, %v1496_v58  ;;  %v887_v4 = vadd.f32 %v3052_v1, %v3054_v3 }
 0x1d0   : > { %v1616_v12 = vmax.f32 %v1502_v6, 0.0 }
 0x1d1   : > { %v1615_v62 = vmax.f32 %v1497_v9, 0.0  ;;  %v1331_v13 = vpop.f32.mrb[44].mxu0  ;;  %v2082_v26 = vpop.f32.mrb[76].mxu1 }
 0x1d2   : > { %1648 = vst [vmem:[%s3139_s26 + $0x58] sm:$0xff] %v1616_v12  ;;  %v3183_v7 = vadd.f32 %v1331_v13, %v882_v52  ;;  %v1512_v56 = vadd.f32 %v3116_v20, %v2082_v26  ;;  %v1333_v10 = vpop.f32.mrb[45].mxu0  ;;  %v1506_v17 = vpop.f32.mrb[77].mxu1 }
 0x1d3   : > { %1647 = vst [vmem:[%s3139_s26 + $0x50] sm:$0xff] %v1615_v62  ;;  %v1507_v21 = vadd.f32 %v3110_v19, %v1506_v17  ;;  %v2342_v19 = vadd.f32 %v3052_v1, %v3084_v28 }
 0x1d4   : > { %v1618_v0 = vmax.f32 %v1512_v56, 0.0 }
 0x1d5   : > { %v1617_v23 = vmax.f32 %v1507_v21, 0.0  ;;  %v1336_v27 = vpop.f32.mrb[46].mxu0  ;;  %v2085_v14 = vpop.f32.mrb[78].mxu1 }
 0x1d6   : > { %1650 = vst [vmem:[%s3139_s26 + $0x68] sm:$0xff] %v1618_v0  ;;  %v2341_v33 = vadd.f32 %v1336_v27, %v887_v4  ;;  %v1522_v36 = vadd.f32 %v3128_v22, %v2085_v14  ;;  %v1338_v16 = vpop.f32.mrb[47].mxu0  ;;  %v1516_v20 = vpop.f32.mrb[79].mxu1 }
 0x1d7   : > { %1649 = vst [vmem:[%s3139_s26 + $0x60] sm:$0xff] %v1617_v23  ;;  %v1517_v2 = vadd.f32 %v3122_v24, %v1516_v20  ;;  %v2344_v24 = vadd.f32 %v3052_v1, %v3090_v57  ;;  %v2352_v23 = vadd.f32 %v3052_v1, %v3114_v25 }
 0x1d8   : > { %v1620_v48 = vmax.f32 %v1522_v36, 0.0 }
 0x1d9   : > { %v1619_v3 = vmax.f32 %v1517_v2, 0.0  ;;  %v1341_v39 = vpop.f32.mrb[48].mxu0  ;;  %v2088_v42 = vpop.f32.mrb[80].mxu1 }
 0x1da   : > { %1652 = vst [vmem:[%s3139_s26 + $0x78] sm:$0xff] %v1620_v48  ;;  %v2343_v49 = vadd.f32 %v2342_v19, %v1341_v39  ;;  %v1532_v29 = vadd.f32 %v3145_v11, %v2088_v42  ;;  %v1343_v47 = vpop.f32.mrb[49].mxu0  ;;  %v1526_v22 = vpop.f32.mrb[81].mxu1  ;;  %v2354_v19 = vadd.f32 %v3052_v1, %v3120_v37 }
 0x1db   : > { %1651 = vst [vmem:[%s3139_s26 + $0x70] sm:$0xff] %v1619_v3  ;;  %v1527_v50 = vadd.f32 %v3133_v40, %v1526_v22  ;;  %v2346_v40 = vadd.f32 %v3052_v1, %v3096_v63 }
 0x1dc   : > { %v1622_v18 = vmax.f32 %v1532_v29, 0.0 }
 0x1dd   : > { %v1621_v28 = vmax.f32 %v1527_v50, 0.0  ;;  %v1346_v59 = vpop.f32.mrb[50].mxu0  ;;  %v2091_v38 = vpop.f32.mrb[82].mxu1  ;;  %v2356_v50 = vadd.f32 %v3052_v1, %v3126_v35 }
 0x1de   : > { %1654 = vst [vmem:[%s3139_s26 + $0x88] sm:$0xff] %v1622_v18  ;;  %v2345_v51 = vadd.f32 %v2344_v24, %v1346_v59  ;;  %v1542_v53 = vadd.f32 %v3161_v44, %v2091_v38  ;;  %v1348_v60 = vpop.f32.mrb[51].mxu0  ;;  %v1536_v11 = vpop.f32.mrb[83].mxu1 }
 0x1df   : > { %1653 = vst [vmem:[%s3139_s26 + $0x80] sm:$0xff] %v1621_v28  ;;  %v1537_v45 = vadd.f32 %v3153_v46, %v1536_v11  ;;  %v2348_v46 = vadd.f32 %v3052_v1, %v3102_v8 }
 0x1e0   : > { %v1624_v61 = vmax.f32 %v1542_v53, 0.0 }
 0x1e1   : > { %v1623_v57 = vmax.f32 %v1537_v45, 0.0  ;;  %v1351_v41 = vpop.f32.mrb[52].mxu0  ;;  %v2094_v31 = vpop.f32.mrb[84].mxu1 }
 0x1e2   : > { %1656 = vst [vmem:[%s3139_s26 + $0x98] sm:$0xff] %v1624_v61  ;;  %v2347_v34 = vadd.f32 %v2346_v40, %v1351_v41  ;;  %v1552_v30 = vadd.f32 %v2337_v5, %v2094_v31  ;;  %v1353_v32 = vpop.f32.mrb[53].mxu0  ;;  %v1546_v54 = vpop.f32.mrb[85].mxu1 }
 0x1e3   : > { %1655 = vst [vmem:[%s3139_s26 + $0x90] sm:$0xff] %v1623_v57  ;;  %v1547_v44 = vadd.f32 %v3169_v55, %v1546_v54  ;;  %v2350_v55 = vadd.f32 %v3052_v1, %v3108_v15 }
 0x1e4   : > { %v1626_v6 = vmax.f32 %v1552_v30, 0.0 }
 0x1e5   : > { %v1625_v63 = vmax.f32 %v1547_v44, 0.0  ;;  %v1356_v43 = vpop.f32.mrb[54].mxu0  ;;  %v2097_v58 = vpop.f32.mrb[86].mxu1 }
 0x1e6   : > { %1658 = vst [vmem:[%s3139_s26 + $0xa8] sm:$0xff] %v1626_v6  ;;  %v2349_v9 = vadd.f32 %v2348_v46, %v1356_v43  ;;  %v1562_v52 = vadd.f32 %v2341_v33, %v2097_v58  ;;  %v1358_v12 = vpop.f32.mrb[55].mxu0  ;;  %v1556_v62 = vpop.f32.mrb[87].mxu1 }
 0x1e7   : > { %1657 = vst [vmem:[%s3139_s26 + $0xa0] sm:$0xff] %v1625_v63  ;;  %v1557_v5 = vadd.f32 %v3183_v7, %v1556_v62 }
 0x1e8   : > { %v1628_v13 = vmax.f32 %v1562_v52, 0.0 }
 0x1e9   : > { %v1627_v8 = vmax.f32 %v1557_v5, 0.0  ;;  %v1361_v26 = vpop.f32.mrb[56].mxu0  ;;  %v2100_v56 = vpop.f32.mrb[88].mxu1 }
 0x1ea   : > { %1660 = vst [vmem:[%s3139_s26 + $0xb8] sm:$0xff] %v1628_v13  ;;  %v2351_v10 = vadd.f32 %v2350_v55, %v1361_v26  ;;  %v1572_v17 = vadd.f32 %v2345_v51, %v2100_v56  ;;  %v1363_v21 = vpop.f32.mrb[57].mxu0  ;;  %v1566_v4 = vpop.f32.mrb[89].mxu1 }
 0x1eb   : > { %1659 = vst [vmem:[%s3139_s26 + $0xb0] sm:$0xff] %v1627_v8  ;;  %v1567_v0 = vadd.f32 %v2343_v49, %v1566_v4 }
 0x1ec   : > { %v1630_v7 = vmax.f32 %v1572_v17, 0.0 }
 0x1ed   : > { %v1629_v27 = vmax.f32 %v1567_v0, 0.0  ;;  %v1366_v15 = vpop.f32.mrb[58].mxu0  ;;  %v2103_v14 = vpop.f32.mrb[90].mxu1 }
 0x1ee   : > { %1662 = vst [vmem:[%s3139_s26 + $0xc8] sm:$0xff] %v1630_v7  ;;  %v2353_v33 = vadd.f32 %v2352_v23, %v1366_v15  ;;  %v1582_v36 = vadd.f32 %v2349_v9, %v2103_v14  ;;  %v1368_v16 = vpop.f32.mrb[59].mxu0  ;;  %v1576_v20 = vpop.f32.mrb[91].mxu1 }
 0x1ef   : > { %1661 = vst [vmem:[%s3139_s26 + $0xc0] sm:$0xff] %v1629_v27  ;;  %v1577_v2 = vadd.f32 %v2347_v34, %v1576_v20 }
 0x1f0   : > { %v1632_v48 = vmax.f32 %v1582_v36, 0.0 }
 0x1f1   : > { %v1631_v3 = vmax.f32 %v1577_v2, 0.0  ;;  %v1371_v25 = vpop.f32.mrb[60].mxu0  ;;  %v2106_v39 = vpop.f32.mrb[92].mxu1 }
 0x1f2   : > { %1664 = vst [vmem:[%s3139_s26 + $0xd8] sm:$0xff] %v1632_v48  ;;  %v2355_v42 = vadd.f32 %v2354_v19, %v1371_v25  ;;  %v1592_v49 = vadd.f32 %v2353_v33, %v2106_v39  ;;  %v1373_v29 = vpop.f32.mrb[61].mxu0  ;;  %v1586_v47 = vpop.f32.mrb[93].mxu1 }
 0x1f3   : > { %1663 = vst [vmem:[%s3139_s26 + $0xd0] sm:$0xff] %v1631_v3  ;;  %v1587_v22 = vadd.f32 %v2351_v10, %v1586_v47 }
 0x1f4   : > { %v1634_v24 = vmax.f32 %v1592_v49, 0.0 }
 0x1f5   : > { %v1633_v37 = vmax.f32 %v1587_v22, 0.0  ;;  %v1376_v18 = vpop.f32.mrb[62].mxu0  ;;  %v2109_v28 = vpop.f32.mrb[94].mxu1 }
 0x1f6   : > { %1666 = vst [vmem:[%s3139_s26 + $0xe8] sm:$0xff] %v1634_v24  ;;  %v2357_v59 = vadd.f32 %v2356_v50, %v1376_v18  ;;  %v1378_v38 = vpop.f32.mrb[63].mxu0  ;;  %v1596_v51 = vpop.f32.mrb[95].mxu1 }
 0x1f7   : > { %1665 = vst [vmem:[%s3139_s26 + $0xe0] sm:$0xff] %v1633_v37  ;;  %v1597_v53 = vadd.f32 %v2355_v42, %v1596_v51 }
 0x1f8   : > { %v1602_v60 = vadd.f32 %v2357_v59, %v2109_v28 }
 0x1f9   : > { %v1635_v11 = vmax.f32 %v1597_v53, 0.0 }
 0x1fa   : > { %v1636_v45 = vmax.f32 %v1602_v60, 0.0 }
 0x1fb   : > { %1667 = vst [vmem:[%s3139_s26 + $0xf0] sm:$0xff] %v1635_v11 }
 0x1fc   : > { %1668 = vst [vmem:[%s3139_s26 + $0xf8] sm:$0xff] %v1636_v45 }
 0x1fd PF: > { %s13_s12 = sadd.s32 1, %s2438_s12  }
 0x1fe   : > { %p10_p4 = scmp.ge.s32.totalorder %s13_s12, 7  }
 0x200   :  { %12 = sbr.rel (!%p10_p4) target bundleno = 1 (0x1), region = 62 }

// kernel: dann_source_forward.6
= control target key start
LH: loop header
LB: loop body
LE: loop exit
PB: predicated region body
PF: predicated region fallthrough
CT: control target
= control target key end

     0   :  { %v3466_v0 = vmov 0.0|0.0   ;;  %vm3467_vm0 = vmmov 0   ;;  %vm746_vm1 = vcmask 523264   ;;  %s5217_s1 = inlined_call_operand.vmem [shape: bf16[1600,128], index: 1, kind: input, shape index: {}]   ;;  %s5218_s0 = inlined_call_operand.vmem [shape: f32[200,1600], index: 0, kind: input, shape index: {}]   ;;  %s5219_s2 = inlined_call_operand.vmem [shape: f32[1,128], index: 2, kind: input, shape index: {}]   ;;  %s5220_s3 = inlined_call_operand.vmem [shape: f32[200,128], index: 3, kind: output, shape index: {}]  }
   0x1   :  { %2855 = vmatprep.subr.bf16.mxu1 %v3466_v0  ;;  %2999 = vmatprep.subr.bf16.mxu0 %v3466_v0  ;;  %v2233_v1 = vld [vmem:[%s5217_s1] sm:$0xff]   ;;  %v2632_v3 = vld [vmem:[%s5217_s1 + $0x8] sm:$0xff]   ;;  %v2633_v5 = vld [vmem:[%s5217_s1 + $0x10] sm:$0xff]  }
   0x2   :  { %v2679_v2 = vld [vmem:[%s5217_s1 + $0x180] sm:$0xff]   ;;  %2857 = vmatpush1.bf16.msra.mxu1 %v2233_v1  ;;  %v2680_v4 = vld [vmem:[%s5217_s1 + $0x188] sm:$0xff]   ;;  %v2681_v6 = vld [vmem:[%s5217_s1 + $0x190] sm:$0xff]  }
   0x3   :  { %3001 = vmatpush1.bf16.msra.mxu0 %v2679_v2  ;;  %2858 = vmatprep.subr.bf16.mxu1 %v3466_v0  ;;  %v2634_v7 = vld [vmem:[%s5217_s1 + $0x18] sm:$0xff]   ;;  %v415_v9 = vld [vmem:[%s5218_s0 + $0x8] sm:$0xff]  ;;  %v2635_v11 = vld [vmem:[%s5217_s1 + $0x20] sm:$0xff]  }
   0x4   :  { %3002 = vmatprep.subr.bf16.mxu0 %v3466_v0  ;;  %v2682_v8 = vld [vmem:[%s5217_s1 + $0x198] sm:$0xff]   ;;  %886 = vmatprep.mubr.f32.mxu1 %v415_v9  ;;  %v2683_v12 = vld [vmem:[%s5217_s1 + $0x1a0] sm:$0xff]   ;;  %v2636_v13 = vld [vmem:[%s5217_s1 + $0x28] sm:$0xff]  }
   0x5   :  { %v421_v10 = vld [vmem:[%s5218_s0 + $0x38] sm:$0xff]  ;;  %v2684_v14 = vld [vmem:[%s5217_s1 + $0x1a8] sm:$0xff]   ;;  %v2637_v15 = vld [vmem:[%s5217_s1 + $0x30] sm:$0xff]  }
   0x6   :  { %2860 = vmatpush1.bf16.msra.mxu1 %v2632_v3  ;;  %1456 = vmatprep.mubr.f32.mxu0 %v421_v10  ;;  %v2685_v16 = vld [vmem:[%s5217_s1 + $0x1b0] sm:$0xff]   ;;  %v2638_v17 = vld [vmem:[%s5217_s1 + $0x38] sm:$0xff]   ;;  %v2639_v19 = vld [vmem:[%s5217_s1 + $0x40] sm:$0xff]  }
   0x7   :  { %3004 = vmatpush1.bf16.msra.mxu0 %v2680_v4  ;;  %2861 = vmatprep.subr.bf16.mxu1 %v3466_v0  ;;  %v2686_v18 = vld [vmem:[%s5217_s1 + $0x1b8] sm:$0xff]   ;;  %v2687_v20 = vld [vmem:[%s5217_s1 + $0x1c0] sm:$0xff]   ;;  %v2640_v21 = vld [vmem:[%s5217_s1 + $0x48] sm:$0xff]  }
   0x8   :  { %3005 = vmatprep.subr.bf16.mxu0 %v3466_v0  ;;  %v2688_v22 = vld [vmem:[%s5217_s1 + $0x1c8] sm:$0xff]   ;;  %v2641_v23 = vld [vmem:[%s5217_s1 + $0x50] sm:$0xff]   ;;  %v2642_v25 = vld [vmem:[%s5217_s1 + $0x58] sm:$0xff]  }
   0x9   :  { %v2689_v24 = vld [vmem:[%s5217_s1 + $0x1d0] sm:$0xff]   ;;  %v2690_v26 = vld [vmem:[%s5217_s1 + $0x1d8] sm:$0xff]   ;;  %v2643_v27 = vld [vmem:[%s5217_s1 + $0x60] sm:$0xff]  }
   0xa   :  { %2863 = vmatpush1.bf16.msra.mxu1 %v2633_v5  ;;  %v2691_v28 = vld [vmem:[%s5217_s1 + $0x1e0] sm:$0xff]   ;;  %v2644_v29 = vld [vmem:[%s5217_s1 + $0x68] sm:$0xff]   ;;  %v2645_v31 = vld [vmem:[%s5217_s1 + $0x70] sm:$0xff]  }
   0xb   :  { %3007 = vmatpush1.bf16.msra.mxu0 %v2681_v6  ;;  %2864 = vmatprep.subr.bf16.mxu1 %v3466_v0  ;;  %v2692_v30 = vld [vmem:[%s5217_s1 + $0x1e8] sm:$0xff]   ;;  %v2693_v32 = vld [vmem:[%s5217_s1 + $0x1f0] sm:$0xff]   ;;  %v2646_v33 = vld [vmem:[%s5217_s1 + $0x78] sm:$0xff]  }
   0xc   :  { %3008 = vmatprep.subr.bf16.mxu0 %v3466_v0  ;;  %v2694_v34 = vld [vmem:[%s5217_s1 + $0x1f8] sm:$0xff]   ;;  %v414_v35 = vld [vmem:[%s5218_s0] sm:$0xff]  ;;  %v420_v36 = vld [vmem:[%s5218_s0 + $0x30] sm:$0xff] }
   0xd   :  { %v2695_v37 = vld [vmem:[%s5217_s1 + $0x200] sm:$0xff]   ;;  %v428_v38 = vld [vmem:[%s5218_s0 + $0x70] sm:$0xff]  ;;  %v427_v41 = vld [vmem:[%s5218_s0 + $0x68] sm:$0xff] }
   0xe   :  { %2866 = vmatpush1.bf16.msra.mxu1 %v2634_v7  ;;  %v2647_v39 = vld [vmem:[%s5217_s1 + $0x80] sm:$0xff]   ;;  %v433_v42 = vld [vmem:[%s5218_s0 + $0x98] sm:$0xff]  ;;  %v447_v44 = vld [vmem:[%s5218_s0 + $0x108] sm:$0xff] }
   0xf   :  { %3010 = vmatpush1.bf16.msra.mxu0 %v2682_v8  ;;  %2867 = vmatprep.subr.bf16.mxu1 %v3466_v0  ;;  %v434_v40 = vld [vmem:[%s5218_s0 + $0xa0] sm:$0xff]  ;;  %v441_v43 = vld [vmem:[%s5218_s0 + $0xd8] sm:$0xff]  ;;  %v2696_v45 = vld [vmem:[%s5217_s1 + $0x208] sm:$0xff]  }
  0x10   :  { %3011 = vmatprep.subr.bf16.mxu0 %v3466_v0  ;;  %v2648_v46 = vld [vmem:[%s5217_s1 + $0x88] sm:$0xff]   ;;  %v440_v47 = vld [vmem:[%s5218_s0 + $0xd0] sm:$0xff]  ;;  %v446_v48 = vld [vmem:[%s5218_s0 + $0x100] sm:$0xff] }
  0x11   :  { %v454_v49 = vld [vmem:[%s5218_s0 + $0x140] sm:$0xff]  ;;  %v460_v50 = vld [vmem:[%s5218_s0 + $0x170] sm:$0xff]  ;;  %v453_v53 = vld [vmem:[%s5218_s0 + $0x138] sm:$0xff] }
  0x12   :  { %2869 = vmatpush1.bf16.msra.mxu1 %v2635_v11  ;;  %v2697_v51 = vld [vmem:[%s5217_s1 + $0x210] sm:$0xff]   ;;  %v459_v54 = vld [vmem:[%s5218_s0 + $0x168] sm:$0xff]  ;;  %v473_v56 = vld [vmem:[%s5218_s0 + $0x1d8] sm:$0xff] }
  0x13   :  { %3013 = vmatpush1.bf16.msra.mxu0 %v2683_v12  ;;  %2870 = vmatprep.subr.bf16.mxu1 %v3466_v0  ;;  %v2649_v52 = vld [vmem:[%s5217_s1 + $0x90] sm:$0xff]   ;;  %v467_v55 = vld [vmem:[%s5218_s0 + $0x1a8] sm:$0xff]  ;;  %v2698_v57 = vld [vmem:[%s5217_s1 + $0x218] sm:$0xff]  }
  0x14   :  { %3014 = vmatprep.subr.bf16.mxu0 %v3466_v0  ;;  %v2650_v58 = vld [vmem:[%s5217_s1 + $0x98] sm:$0xff]   ;;  %v466_v59 = vld [vmem:[%s5218_s0 + $0x1a0] sm:$0xff]  ;;  %v472_v60 = vld [vmem:[%s5218_s0 + $0x1d0] sm:$0xff] }
  0x15   :  { %v480_v61 = vld [vmem:[%s5218_s0 + $0x210] sm:$0xff]  ;;  %v486_v62 = vld [vmem:[%s5218_s0 + $0x240] sm:$0xff]  ;;  %v479_v2 = vld [vmem:[%s5218_s0 + $0x208] sm:$0xff] }
  0x16   :  { %2872 = vmatpush1.bf16.msra.mxu1 %v2636_v13  ;;  %v2699_v63 = vld [vmem:[%s5217_s1 + $0x220] sm:$0xff]   ;;  %v485_v3 = vld [vmem:[%s5218_s0 + $0x238] sm:$0xff]  ;;  %v499_v5 = vld [vmem:[%s5218_s0 + $0x2a8] sm:$0xff] }
  0x17   :  { %3016 = vmatpush1.bf16.msra.mxu0 %v2684_v14  ;;  %2873 = vmatprep.subr.bf16.mxu1 %v3466_v0  ;;  %v2651_v1 = vld [vmem:[%s5217_s1 + $0xa0] sm:$0xff]   ;;  %v493_v4 = vld [vmem:[%s5218_s0 + $0x278] sm:$0xff]  ;;  %v2700_v6 = vld [vmem:[%s5217_s1 + $0x228] sm:$0xff]  }
  0x18   :  { %3017 = vmatprep.subr.bf16.mxu0 %v3466_v0  ;;  %v2652_v7 = vld [vmem:[%s5217_s1 + $0xa8] sm:$0xff]   ;;  %v492_v8 = vld [vmem:[%s5218_s0 + $0x270] sm:$0xff]  ;;  %v498_v9 = vld [vmem:[%s5218_s0 + $0x2a0] sm:$0xff] }
  0x19   :  { %v506_v10 = vld [vmem:[%s5218_s0 + $0x2e0] sm:$0xff]  ;;  %v512_v11 = vld [vmem:[%s5218_s0 + $0x310] sm:$0xff]  ;;  %v505_v14 = vld [vmem:[%s5218_s0 + $0x2d8] sm:$0xff] }
  0x1a   :  { %2875 = vmatpush1.bf16.msra.mxu1 %v2637_v15  ;;  %v2701_v12 = vld [vmem:[%s5217_s1 + $0x230] sm:$0xff]   ;;  %v511_v15 = vld [vmem:[%s5218_s0 + $0x308] sm:$0xff] }
  0x1b   :  { %3019 = vmatpush1.bf16.msra.mxu0 %v2685_v16  ;;  %2876 = vmatprep.subr.bf16.mxu1 %v3466_v0  ;;  %v2653_v13 = vld [vmem:[%s5217_s1 + $0xb0] sm:$0xff]   ;;  %v519_v16 = vld [vmem:[%s5218_s0 + $0x348] sm:$0xff] }
  0x1c   :  { %3020 = vmatprep.subr.bf16.mxu0 %v3466_v0 }
  0x1e   :  { %2878 = vmatpush1.bf16.msra.mxu1 %v2638_v17  ;;  %v525_v17 = vld [vmem:[%s5218_s0 + $0x378] sm:$0xff] }
  0x1f   :  { %3022 = vmatpush1.bf16.msra.mxu0 %v2686_v18  ;;  %2879 = vmatprep.subr.bf16.mxu1 %v3466_v0  ;;  %v2702_v18 = vld [vmem:[%s5217_s1 + $0x238] sm:$0xff]  }
  0x20   :  { %3023 = vmatprep.subr.bf16.mxu0 %v3466_v0 }
  0x22   :  { %2881 = vmatpush1.bf16.msra.mxu1 %v2639_v19  ;;  %v2654_v19 = vld [vmem:[%s5217_s1 + $0xb8] sm:$0xff]  }
  0x23   :  { %3025 = vmatpush1.bf16.msra.mxu0 %v2687_v20  ;;  %2882 = vmatprep.subr.bf16.mxu1 %v3466_v0  ;;  %v518_v20 = vld [vmem:[%s5218_s0 + $0x340] sm:$0xff] }
  0x24   :  { %3026 = vmatprep.subr.bf16.mxu0 %v3466_v0 }
  0x26   :  { %2884 = vmatpush1.bf16.msra.mxu1 %v2640_v21  ;;  %v524_v21 = vld [vmem:[%s5218_s0 + $0x370] sm:$0xff] }
  0x27   :  { %3028 = vmatpush1.bf16.msra.mxu0 %v2688_v22  ;;  %2885 = vmatprep.subr.bf16.mxu1 %v3466_v0  ;;  %v532_v22 = vld [vmem:[%s5218_s0 + $0x3b0] sm:$0xff] }
  0x28   :  { %3029 = vmatprep.subr.bf16.mxu0 %v3466_v0 }
  0x2a   :  { %2887 = vmatpush1.bf16.msra.mxu1 %v2641_v23  ;;  %v538_v23 = vld [vmem:[%s5218_s0 + $0x3e0] sm:$0xff] }
  0x2b   :  { %3031 = vmatpush1.bf16.msra.mxu0 %v2689_v24  ;;  %2888 = vmatprep.subr.bf16.mxu1 %v3466_v0  ;;  %v2703_v24 = vld [vmem:[%s5217_s1 + $0x240] sm:$0xff]  }
  0x2c   :  { %3032 = vmatprep.subr.bf16.mxu0 %v3466_v0 }
  0x2e   :  { %2890 = vmatpush1.bf16.msra.mxu1 %v2642_v25  ;;  %v2655_v25 = vld [vmem:[%s5217_s1 + $0xc0] sm:$0xff]  }
  0x2f   :  { %3034 = vmatpush1.bf16.msra.mxu0 %v2690_v26  ;;  %2891 = vmatprep.subr.bf16.mxu1 %v3466_v0  ;;  %v531_v26 = vld [vmem:[%s5218_s0 + $0x3a8] sm:$0xff] }
  0x30   :  { %3035 = vmatprep.subr.bf16.mxu0 %v3466_v0 }
  0x32   :  { %2893 = vmatpush1.bf16.msra.mxu1 %v2643_v27  ;;  %v537_v27 = vld [vmem:[%s5218_s0 + $0x3d8] sm:$0xff] }
  0x33   :  { %3037 = vmatpush1.bf16.msra.mxu0 %v2691_v28  ;;  %2894 = vmatprep.subr.bf16.mxu1 %v3466_v0  ;;  %v545_v28 = vld [vmem:[%s5218_s0 + $0x418] sm:$0xff] }
  0x34   :  { %3038 = vmatprep.subr.bf16.mxu0 %v3466_v0 }
  0x36   :  { %2896 = vmatpush1.bf16.msra.mxu1 %v2644_v29  ;;  %v551_v29 = vld [vmem:[%s5218_s0 + $0x448] sm:$0xff] }
  0x37   :  { %3040 = vmatpush1.bf16.msra.mxu0 %v2692_v30  ;;  %2897 = vmatprep.subr.bf16.mxu1 %v3466_v0  ;;  %v2704_v30 = vld [vmem:[%s5217_s1 + $0x248] sm:$0xff]  }
  0x38   :  { %3041 = vmatprep.subr.bf16.mxu0 %v3466_v0 }
  0x3a   :  { %2899 = vmatpush1.bf16.msra.mxu1 %v2645_v31  ;;  %v2656_v31 = vld [vmem:[%s5217_s1 + $0xc8] sm:$0xff]  }
  0x3b   :  { %3043 = vmatpush1.bf16.msra.mxu0 %v2693_v32  ;;  %2900 = vmatprep.subr.bf16.mxu1 %v3466_v0  ;;  %v544_v32 = vld [vmem:[%s5218_s0 + $0x410] sm:$0xff] }
  0x3c   :  { %3044 = vmatprep.subr.bf16.mxu0 %v3466_v0 }
  0x3e   :  { %2902 = vmatpush1.bf16.msra.mxu1 %v2646_v33  ;;  %v550_v33 = vld [vmem:[%s5218_s0 + $0x440] sm:$0xff] }
  0x3f   :  { %3046 = vmatpush1.bf16.msra.mxu0 %v2694_v34  ;;  %2903 = vmatprep.subr.bf16.mxu1 %v3466_v0  ;;  %v558_v34 = vld [vmem:[%s5218_s0 + $0x480] sm:$0xff] }
  0x40   :  { %3047 = vmatprep.subr.bf16.mxu0 %v3466_v0 }
  0x41   :  { %887 = vmatmul.mubr.f32.vlgmr.msra.gmra.mrb[0].mxu1 %v414_v35  ;;  %v564_v35 = vld [vmem:[%s5218_s0 + $0x4b0] sm:$0xff] }
  0x42   :  { %1457 = vmatmul.mubr.f32.vlgmr.msra.gmra.mrb[0].mxu0 %v420_v36  ;;  %891 = vmatprep.mubr.f32.mxu1 %v428_v38  ;;  %v2705_v36 = vld [vmem:[%s5217_s1 + $0x250] sm:$0xff]   ;;  %v557_v38 = vld [vmem:[%s5218_s0 + $0x478] sm:$0xff] }
  0x43   :  { %3049 = vmatpush1.bf16.msra.mxu0 %v2695_v37  ;;  %2905 = vmatpush1.bf16.msra.mxu1 %v2647_v39  ;;  %v2657_v37 = vld [vmem:[%s5217_s1 + $0xd0] sm:$0xff]   ;;  %v563_v39 = vld [vmem:[%s5218_s0 + $0x4a8] sm:$0xff] }
  0x44   :  { %1461 = vmatprep.mubr.f32.mxu0 %v434_v40  ;;  %3050 = vmatprep.subr.bf16.mxu0 %v3466_v0  ;;  %v571_v40 = vld [vmem:[%s5218_s0 + $0x4e8] sm:$0xff] }
  0x45   :  { %2906 = vmatprep.subr.bf16.mxu1 %v3466_v0  ;;  %892 = vmatmul.mubr.f32.gmra.mrb[2].mxu1 %v427_v41  ;;  %v577_v41 = vld [vmem:[%s5218_s0 + $0x518] sm:$0xff] }
  0x46   :  { %1462 = vmatmul.mubr.f32.gmra.mrb[2].mxu0 %v433_v42  ;;  %896 = vmatprep.mubr.f32.mxu1 %v441_v43  ;;  %v2706_v42 = vld [vmem:[%s5217_s1 + $0x258] sm:$0xff]  }
  0x47   :  { %1466 = vmatprep.mubr.f32.mxu0 %v447_v44  ;;  %3052 = vmatpush1.bf16.msra.mxu0 %v2696_v45  ;;  %v2658_v43 = vld [vmem:[%s5217_s1 + $0xd8] sm:$0xff]   ;;  %v570_v44 = vld [vmem:[%s5218_s0 + $0x4e0] sm:$0xff]  ;;  %v576_v45 = vld [vmem:[%s5218_s0 + $0x510] sm:$0xff] }
  0x48   :  { %2908 = vmatpush1.bf16.msra.mxu1 %v2648_v46  ;;  %3053 = vmatprep.subr.bf16.mxu0 %v3466_v0  ;;  %v584_v46 = vld [vmem:[%s5218_s0 + $0x550] sm:$0xff] }
  0x49   :  { %2909 = vmatprep.subr.bf16.mxu1 %v3466_v0  ;;  %897 = vmatmul.mubr.f32.gmra.mrb[4].mxu1 %v440_v47  ;;  %v590_v47 = vld [vmem:[%s5218_s0 + $0x580] sm:$0xff] }
  0x4a   :  { %1467 = vmatmul.mubr.f32.gmra.mrb[4].mxu0 %v446_v48  ;;  %901 = vmatprep.mubr.f32.mxu1 %v454_v49  ;;  %v2707_v48 = vld [vmem:[%s5217_s1 + $0x260] sm:$0xff]  }
  0x4b   :  { %1471 = vmatprep.mubr.f32.mxu0 %v460_v50  ;;  %3055 = vmatpush1.bf16.msra.mxu0 %v2697_v51  ;;  %v2659_v49 = vld [vmem:[%s5217_s1 + $0xe0] sm:$0xff]   ;;  %v583_v50 = vld [vmem:[%s5218_s0 + $0x548] sm:$0xff]  ;;  %v589_v51 = vld [vmem:[%s5218_s0 + $0x578] sm:$0xff] }
  0x4c   :  { %2911 = vmatpush1.bf16.msra.mxu1 %v2649_v52  ;;  %3056 = vmatprep.subr.bf16.mxu0 %v3466_v0  ;;  %v597_v52 = vld [vmem:[%s5218_s0 + $0x5b8] sm:$0xff] }
  0x4d   :  { %2912 = vmatprep.subr.bf16.mxu1 %v3466_v0  ;;  %902 = vmatmul.mubr.f32.gmra.mrb[6].mxu1 %v453_v53  ;;  %v603_v53 = vld [vmem:[%s5218_s0 + $0x5e8] sm:$0xff] }
  0x4e   :  { %1472 = vmatmul.mubr.f32.gmra.mrb[6].mxu0 %v459_v54  ;;  %906 = vmatprep.mubr.f32.mxu1 %v467_v55  ;;  %v2708_v54 = vld [vmem:[%s5217_s1 + $0x268] sm:$0xff]  }
  0x4f   :  { %1476 = vmatprep.mubr.f32.mxu0 %v473_v56  ;;  %3058 = vmatpush1.bf16.msra.mxu0 %v2698_v57  ;;  %v2660_v55 = vld [vmem:[%s5217_s1 + $0xe8] sm:$0xff]   ;;  %v596_v56 = vld [vmem:[%s5218_s0 + $0x5b0] sm:$0xff]  ;;  %v602_v57 = vld [vmem:[%s5218_s0 + $0x5e0] sm:$0xff] }
  0x50   :  { %2914 = vmatpush1.bf16.msra.mxu1 %v2650_v58  ;;  %3059 = vmatprep.subr.bf16.mxu0 %v3466_v0  ;;  %v610_v58 = vld [vmem:[%s5218_s0 + $0x620] sm:$0xff] }
  0x51   :  { %2915 = vmatprep.subr.bf16.mxu1 %v3466_v0  ;;  %907 = vmatmul.mubr.f32.gmra.mrb[8].mxu1 %v466_v59  ;;  %v616_v59 = vld [vmem:[%s5218_s0 + $0x650] sm:$0xff] }
  0x52   :  { %1477 = vmatmul.mubr.f32.gmra.mrb[8].mxu0 %v472_v60  ;;  %911 = vmatprep.mubr.f32.mxu1 %v480_v61  ;;  %v2709_v60 = vld [vmem:[%s5217_s1 + $0x270] sm:$0xff]  }
  0x53   :  { %1481 = vmatprep.mubr.f32.mxu0 %v486_v62  ;;  %3061 = vmatpush1.bf16.msra.mxu0 %v2699_v63  ;;  %v2661_v61 = vld [vmem:[%s5217_s1 + $0xf0] sm:$0xff]   ;;  %v609_v62 = vld [vmem:[%s5218_s0 + $0x618] sm:$0xff]  ;;  %v615_v63 = vld [vmem:[%s5218_s0 + $0x648] sm:$0xff] }
  0x54   :  { %2917 = vmatpush1.bf16.msra.mxu1 %v2651_v1  ;;  %3062 = vmatprep.subr.bf16.mxu0 %v3466_v0  ;;  %v623_v1 = vld [vmem:[%s5218_s0 + $0x688] sm:$0xff] }
  0x55   :  { %2918 = vmatprep.subr.bf16.mxu1 %v3466_v0  ;;  %912 = vmatmul.mubr.f32.gmra.mrb[10].mxu1 %v479_v2  ;;  %v629_v2 = vld [vmem:[%s5218_s0 + $0x6b8] sm:$0xff] }
  0x56   :  { %1482 = vmatmul.mubr.f32.gmra.mrb[10].mxu0 %v485_v3  ;;  %916 = vmatprep.mubr.f32.mxu1 %v493_v4  ;;  %v2710_v3 = vld [vmem:[%s5217_s1 + $0x278] sm:$0xff]  }
  0x57   :  { %1486 = vmatprep.mubr.f32.mxu0 %v499_v5  ;;  %3064 = vmatpush1.bf16.msra.mxu0 %v2700_v6  ;;  %v2662_v4 = vld [vmem:[%s5217_s1 + $0xf8] sm:$0xff]   ;;  %v622_v5 = vld [vmem:[%s5218_s0 + $0x680] sm:$0xff]  ;;  %v628_v6 = vld [vmem:[%s5218_s0 + $0x6b0] sm:$0xff] }
  0x58   :  { %2920 = vmatpush1.bf16.msra.mxu1 %v2652_v7  ;;  %3065 = vmatprep.subr.bf16.mxu0 %v3466_v0  ;;  %v636_v7 = vld [vmem:[%s5218_s0 + $0x6f0] sm:$0xff] }
  0x59   :  { %2921 = vmatprep.subr.bf16.mxu1 %v3466_v0  ;;  %917 = vmatmul.mubr.f32.gmra.mrb[12].mxu1 %v492_v8  ;;  %v642_v8 = vld [vmem:[%s5218_s0 + $0x720] sm:$0xff] }
  0x5a   :  { %1487 = vmatmul.mubr.f32.gmra.mrb[12].mxu0 %v498_v9  ;;  %921 = vmatprep.mubr.f32.mxu1 %v506_v10  ;;  %v635_v9 = vld [vmem:[%s5218_s0 + $0x6e8] sm:$0xff]  ;;  %v641_v10 = vld [vmem:[%s5218_s0 + $0x718] sm:$0xff] }
  0x5b   :  { %1491 = vmatprep.mubr.f32.mxu0 %v512_v11  ;;  %3067 = vmatpush1.bf16.msra.mxu0 %v2701_v12  ;;  %v649_v11 = vld [vmem:[%s5218_s0 + $0x758] sm:$0xff]  ;;  %v655_v12 = vld [vmem:[%s5218_s0 + $0x788] sm:$0xff] }
  0x5c   :  { %2923 = vmatpush1.bf16.msra.mxu1 %v2653_v13  ;;  %3068 = vmatprep.subr.bf16.mxu0 %v3466_v0  ;;  %v648_v13 = vld [vmem:[%s5218_s0 + $0x750] sm:$0xff] }
  0x5d   :  { %2924 = vmatprep.subr.bf16.mxu1 %v3466_v0  ;;  %922 = vmatmul.mubr.f32.gmra.mrb[14].mxu1 %v505_v14  ;;  %v654_v14 = vld [vmem:[%s5218_s0 + $0x780] sm:$0xff] }
  0x5e   :  { %1492 = vmatmul.mubr.f32.gmra.mrb[14].mxu0 %v511_v15  ;;  %926 = vmatprep.mubr.f32.mxu1 %v519_v16  ;;  %v662_v15 = vld [vmem:[%s5218_s0 + $0x7c0] sm:$0xff]  ;;  %v668_v16 = vld [vmem:[%s5218_s0 + $0x7f0] sm:$0xff] }
  0x5f   :  { %1496 = vmatprep.mubr.f32.mxu0 %v525_v17  ;;  %3070 = vmatpush1.bf16.msra.mxu0 %v2702_v18  ;;  %v661_v17 = vld [vmem:[%s5218_s0 + $0x7b8] sm:$0xff]  ;;  %v667_v18 = vld [vmem:[%s5218_s0 + $0x7e8] sm:$0xff] }
  0x60   :  { %2926 = vmatpush1.bf16.msra.mxu1 %v2654_v19  ;;  %3071 = vmatprep.subr.bf16.mxu0 %v3466_v0  ;;  %v675_v19 = vld [vmem:[%s5218_s0 + $0x828] sm:$0xff] }
  0x61   :  { %2927 = vmatprep.subr.bf16.mxu1 %v3466_v0  ;;  %927 = vmatmul.mubr.f32.gmra.mrb[16].mxu1 %v518_v20  ;;  %v681_v20 = vld [vmem:[%s5218_s0 + $0x858] sm:$0xff] }
  0x62   :  { %1497 = vmatmul.mubr.f32.gmra.mrb[16].mxu0 %v524_v21  ;;  %931 = vmatprep.mubr.f32.mxu1 %v532_v22  ;;  %v674_v21 = vld [vmem:[%s5218_s0 + $0x820] sm:$0xff]  ;;  %v680_v22 = vld [vmem:[%s5218_s0 + $0x850] sm:$0xff] }
  0x63   :  { %1501 = vmatprep.mubr.f32.mxu0 %v538_v23  ;;  %3073 = vmatpush1.bf16.msra.mxu0 %v2703_v24  ;;  %v688_v23 = vld [vmem:[%s5218_s0 + $0x890] sm:$0xff]  ;;  %v694_v24 = vld [vmem:[%s5218_s0 + $0x8c0] sm:$0xff] }
  0x64   :  { %2929 = vmatpush1.bf16.msra.mxu1 %v2655_v25  ;;  %3074 = vmatprep.subr.bf16.mxu0 %v3466_v0  ;;  %v687_v25 = vld [vmem:[%s5218_s0 + $0x888] sm:$0xff] }
  0x65   :  { %2930 = vmatprep.subr.bf16.mxu1 %v3466_v0  ;;  %932 = vmatmul.mubr.f32.gmra.mrb[18].mxu1 %v531_v26  ;;  %v693_v26 = vld [vmem:[%s5218_s0 + $0x8b8] sm:$0xff] }
  0x66   :  { %1502 = vmatmul.mubr.f32.gmra.mrb[18].mxu0 %v537_v27  ;;  %936 = vmatprep.mubr.f32.mxu1 %v545_v28  ;;  %v701_v27 = vld [vmem:[%s5218_s0 + $0x8f8] sm:$0xff]  ;;  %v707_v28 = vld [vmem:[%s5218_s0 + $0x928] sm:$0xff] }
  0x67   :  { %1506 = vmatprep.mubr.f32.mxu0 %v551_v29  ;;  %3076 = vmatpush1.bf16.msra.mxu0 %v2704_v30  ;;  %v700_v29 = vld [vmem:[%s5218_s0 + $0x8f0] sm:$0xff]  ;;  %v706_v30 = vld [vmem:[%s5218_s0 + $0x920] sm:$0xff] }
  0x68   :  { %2932 = vmatpush1.bf16.msra.mxu1 %v2656_v31  ;;  %3077 = vmatprep.subr.bf16.mxu0 %v3466_v0  ;;  %v714_v31 = vld [vmem:[%s5218_s0 + $0x960] sm:$0xff] }
  0x69   :  { %2933 = vmatprep.subr.bf16.mxu1 %v3466_v0  ;;  %937 = vmatmul.mubr.f32.gmra.mrb[20].mxu1 %v544_v32  ;;  %v720_v32 = vld [vmem:[%s5218_s0 + $0x990] sm:$0xff] }
  0x6a   :  { %1507 = vmatmul.mubr.f32.gmra.mrb[20].mxu0 %v550_v33  ;;  %941 = vmatprep.mubr.f32.mxu1 %v558_v34  ;;  %v713_v33 = vld [vmem:[%s5218_s0 + $0x958] sm:$0xff]  ;;  %v719_v34 = vld [vmem:[%s5218_s0 + $0x988] sm:$0xff] }
  0x6b   :  { %1511 = vmatprep.mubr.f32.mxu0 %v564_v35  ;;  %3079 = vmatpush1.bf16.msra.mxu0 %v2705_v36  ;;  %v727_v35 = vld [vmem:[%s5218_s0 + $0x9c8] sm:$0xff]  ;;  %v733_v36 = vld [vmem:[%s5218_s0 + $0x9f8] sm:$0xff] }
  0x6c   :  { %2935 = vmatpush1.bf16.msra.mxu1 %v2657_v37  ;;  %3080 = vmatprep.subr.bf16.mxu0 %v3466_v0  ;;  %v726_v37 = vld [vmem:[%s5218_s0 + $0x9c0] sm:$0xff] }
  0x6d   :  { %2936 = vmatprep.subr.bf16.mxu1 %v3466_v0  ;;  %942 = vmatmul.mubr.f32.gmra.mrb[22].mxu1 %v557_v38  ;;  %v732_v38 = vld [vmem:[%s5218_s0 + $0x9f0] sm:$0xff] }
  0x6e   :  { %1512 = vmatmul.mubr.f32.gmra.mrb[22].mxu0 %v563_v39  ;;  %946 = vmatprep.mubr.f32.mxu1 %v571_v40  ;;  %v417_v39 = vld [vmem:[%s5218_s0 + $0x18] sm:$0xff]  ;;  %v423_v40 = vld [vmem:[%s5218_s0 + $0x48] sm:$0xff] }
  0x6f   :  { %1516 = vmatprep.mubr.f32.mxu0 %v577_v41  ;;  %3082 = vmatpush1.bf16.msra.mxu0 %v2706_v42  ;;  %v416_v41 = vld [vmem:[%s5218_s0 + $0x10] sm:$0xff]  ;;  %v422_v42 = vld [vmem:[%s5218_s0 + $0x40] sm:$0xff] }
  0x70   :  { %2938 = vmatpush1.bf16.msra.mxu1 %v2658_v43  ;;  %3083 = vmatprep.subr.bf16.mxu0 %v3466_v0  ;;  %v4062_v43 = vld [vmem:[%s5217_s1 + $0x280] sm:$0xff]  }
  0x71   :  { %2939 = vmatprep.subr.bf16.mxu1 %v3466_v0  ;;  %947 = vmatmul.mubr.f32.gmra.mrb[24].mxu1 %v570_v44  ;;  %v430_v44 = vld [vmem:[%s5218_s0 + $0x80] sm:$0xff] }
  0x72   :  { %1517 = vmatmul.mubr.f32.gmra.mrb[24].mxu0 %v576_v45  ;;  %951 = vmatprep.mubr.f32.mxu1 %v584_v46  ;;  %v2663_v45 = vld [vmem:[%s5217_s1 + $0x100] sm:$0xff]   ;;  %v436_v46 = vld [vmem:[%s5218_s0 + $0xb0] sm:$0xff] }
  0x73   :  { %1521 = vmatprep.mubr.f32.mxu0 %v590_v47  ;;  %3085 = vmatpush1.bf16.msra.mxu0 %v2707_v48  ;;  %v429_v47 = vld [vmem:[%s5218_s0 + $0x78] sm:$0xff]  ;;  %v435_v48 = vld [vmem:[%s5218_s0 + $0xa8] sm:$0xff] }
  0x74   :  { %2941 = vmatpush1.bf16.msra.mxu1 %v2659_v49  ;;  %3086 = vmatprep.subr.bf16.mxu0 %v3466_v0  ;;  %v443_v49 = vld [vmem:[%s5218_s0 + $0xe8] sm:$0xff] }
  0x75   :  { %2942 = vmatprep.subr.bf16.mxu1 %v3466_v0  ;;  %952 = vmatmul.mubr.f32.gmra.mrb[26].mxu1 %v583_v50  ;;  %v449_v50 = vld [vmem:[%s5218_s0 + $0x118] sm:$0xff] }
  0x76   :  { %1522 = vmatmul.mubr.f32.gmra.mrb[26].mxu0 %v589_v51  ;;  %956 = vmatprep.mubr.f32.mxu1 %v597_v52  ;;  %v4090_v51 = vld [vmem:[%s5217_s1 + $0x288] sm:$0xff]  }
  0x77   :  { %1526 = vmatprep.mubr.f32.mxu0 %v603_v53  ;;  %3088 = vmatpush1.bf16.msra.mxu0 %v2708_v54  ;;  %v2664_v52 = vld [vmem:[%s5217_s1 + $0x108] sm:$0xff]   ;;  %v442_v53 = vld [vmem:[%s5218_s0 + $0xe0] sm:$0xff]  ;;  %v448_v54 = vld [vmem:[%s5218_s0 + $0x110] sm:$0xff] }
  0x78   :  { %2944 = vmatpush1.bf16.msra.mxu1 %v2660_v55  ;;  %3089 = vmatprep.subr.bf16.mxu0 %v3466_v0  ;;  %v456_v55 = vld [vmem:[%s5218_s0 + $0x150] sm:$0xff] }
  0x79   :  { %2945 = vmatprep.subr.bf16.mxu1 %v3466_v0  ;;  %957 = vmatmul.mubr.f32.gmra.mrb[28].mxu1 %v596_v56  ;;  %v462_v56 = vld [vmem:[%s5218_s0 + $0x180] sm:$0xff] }
  0x7a   :  { %1527 = vmatmul.mubr.f32.gmra.mrb[28].mxu0 %v602_v57  ;;  %961 = vmatprep.mubr.f32.mxu1 %v610_v58  ;;  %v4113_v57 = vld [vmem:[%s5217_s1 + $0x290] sm:$0xff]  }
  0x7b   :  { %1531 = vmatprep.mubr.f32.mxu0 %v616_v59  ;;  %3091 = vmatpush1.bf16.msra.mxu0 %v2709_v60  ;;  %v2665_v58 = vld [vmem:[%s5217_s1 + $0x110] sm:$0xff]   ;;  %v455_v59 = vld [vmem:[%s5218_s0 + $0x148] sm:$0xff]  ;;  %v461_v60 = vld [vmem:[%s5218_s0 + $0x178] sm:$0xff] }
  0x7c   :  { %2947 = vmatpush1.bf16.msra.mxu1 %v2661_v61  ;;  %3092 = vmatprep.subr.bf16.mxu0 %v3466_v0  ;;  %v469_v61 = vld [vmem:[%s5218_s0 + $0x1b8] sm:$0xff] }
  0x7d   :  { %2948 = vmatprep.subr.bf16.mxu1 %v3466_v0  ;;  %962 = vmatmul.mubr.f32.gmra.mrb[30].mxu1 %v609_v62  ;;  %v475_v62 = vld [vmem:[%s5218_s0 + $0x1e8] sm:$0xff] }
  0x7e   :  { %1532 = vmatmul.mubr.f32.gmra.mrb[30].mxu0 %v615_v63  ;;  %966 = vmatprep.mubr.f32.mxu1 %v623_v1  ;;  %v4136_v63 = vld [vmem:[%s5217_s1 + $0x298] sm:$0xff]  }
  0x7f   :  { %1536 = vmatprep.mubr.f32.mxu0 %v629_v2  ;;  %3094 = vmatpush1.bf16.msra.mxu0 %v2710_v3  ;;  %v2666_v1 = vld [vmem:[%s5217_s1 + $0x118] sm:$0xff]   ;;  %v468_v2 = vld [vmem:[%s5218_s0 + $0x1b0] sm:$0xff]  ;;  %v474_v3 = vld [vmem:[%s5218_s0 + $0x1e0] sm:$0xff] }
  0x80   :  { %2950 = vmatpush1.bf16.msra.mxu1 %v2662_v4  ;;  %3095 = vmatprep.subr.bf16.mxu0 %v3466_v0  ;;  %v482_v4 = vld [vmem:[%s5218_s0 + $0x220] sm:$0xff] }
  0x81   :  { %2951 = vmatprep.subr.bf16.mxu1 %v3466_v0  ;;  %967 = vmatmul.mubr.f32.gmra.mrb[32].mxu1 %v622_v5  ;;  %v488_v5 = vld [vmem:[%s5218_s0 + $0x250] sm:$0xff] }
  0x82   :  { %1537 = vmatmul.mubr.f32.gmra.mrb[32].mxu0 %v628_v6  ;;  %971 = vmatprep.mubr.f32.mxu1 %v636_v7  ;;  %v4159_v6 = vld [vmem:[%s5217_s1 + $0x2a0] sm:$0xff]  }
  0x83   :  { %1541 = vmatprep.mubr.f32.mxu0 %v642_v8  ;;  %v2667_v7 = vld [vmem:[%s5217_s1 + $0x120] sm:$0xff]   ;;  %v481_v8 = vld [vmem:[%s5218_s0 + $0x218] sm:$0xff] }
  0x85   :  { %972 = vmatmul.mubr.f32.gmra.mrb[34].mxu1 %v635_v9  ;;  %v487_v9 = vld [vmem:[%s5218_s0 + $0x248] sm:$0xff] }
  0x86   :  { %1542 = vmatmul.mubr.f32.gmra.mrb[34].mxu0 %v641_v10  ;;  %976 = vmatprep.mubr.f32.mxu1 %v649_v11  ;;  %v495_v10 = vld [vmem:[%s5218_s0 + $0x288] sm:$0xff]  ;;  %v501_v11 = vld [vmem:[%s5218_s0 + $0x2b8] sm:$0xff] }
  0x87   :  { %1546 = vmatprep.mubr.f32.mxu0 %v655_v12  ;;  %v4182_v12 = vld [vmem:[%s5217_s1 + $0x2a8] sm:$0xff]  }
  0x89   :  { %977 = vmatmul.mubr.f32.gmra.mrb[36].mxu1 %v648_v13  ;;  %v2668_v13 = vld [vmem:[%s5217_s1 + $0x128] sm:$0xff]  }
  0x8a   :  { %1547 = vmatmul.mubr.f32.gmra.mrb[36].mxu0 %v654_v14  ;;  %981 = vmatprep.mubr.f32.mxu1 %v662_v15  ;;  %v494_v14 = vld [vmem:[%s5218_s0 + $0x280] sm:$0xff]  ;;  %v500_v15 = vld [vmem:[%s5218_s0 + $0x2b0] sm:$0xff] }
  0x8b   :  { %1551 = vmatprep.mubr.f32.mxu0 %v668_v16  ;;  %v508_v16 = vld [vmem:[%s5218_s0 + $0x2f0] sm:$0xff] }
  0x8d   :  { %982 = vmatmul.mubr.f32.gmra.mrb[38].mxu1 %v661_v17  ;;  %v514_v17 = vld [vmem:[%s5218_s0 + $0x320] sm:$0xff] }
  0x8e   :  { %1552 = vmatmul.mubr.f32.gmra.mrb[38].mxu0 %v667_v18  ;;  %986 = vmatprep.mubr.f32.mxu1 %v675_v19  ;;  %v4205_v18 = vld [vmem:[%s5217_s1 + $0x2b0] sm:$0xff]  }
  0x8f   :  { %1556 = vmatprep.mubr.f32.mxu0 %v681_v20  ;;  %v2669_v19 = vld [vmem:[%s5217_s1 + $0x130] sm:$0xff]   ;;  %v507_v20 = vld [vmem:[%s5218_s0 + $0x2e8] sm:$0xff] }
  0x91   :  { %987 = vmatmul.mubr.f32.gmra.mrb[40].mxu1 %v674_v21  ;;  %v513_v21 = vld [vmem:[%s5218_s0 + $0x318] sm:$0xff] }
  0x92   :  { %1557 = vmatmul.mubr.f32.gmra.mrb[40].mxu0 %v680_v22  ;;  %991 = vmatprep.mubr.f32.mxu1 %v688_v23  ;;  %v521_v22 = vld [vmem:[%s5218_s0 + $0x358] sm:$0xff]  ;;  %v527_v23 = vld [vmem:[%s5218_s0 + $0x388] sm:$0xff] }
  0x93   :  { %1561 = vmatprep.mubr.f32.mxu0 %v694_v24  ;;  %v4228_v24 = vld [vmem:[%s5217_s1 + $0x2b8] sm:$0xff]  }
  0x95   :  { %992 = vmatmul.mubr.f32.gmra.mrb[42].mxu1 %v687_v25  ;;  %v2670_v25 = vld [vmem:[%s5217_s1 + $0x138] sm:$0xff]  }
  0x96   :  { %1562 = vmatmul.mubr.f32.gmra.mrb[42].mxu0 %v693_v26  ;;  %996 = vmatprep.mubr.f32.mxu1 %v701_v27  ;;  %v520_v26 = vld [vmem:[%s5218_s0 + $0x350] sm:$0xff]  ;;  %v526_v27 = vld [vmem:[%s5218_s0 + $0x380] sm:$0xff] }
  0x97   :  { %1566 = vmatprep.mubr.f32.mxu0 %v707_v28  ;;  %v534_v28 = vld [vmem:[%s5218_s0 + $0x3c0] sm:$0xff] }
  0x99   :  { %997 = vmatmul.mubr.f32.gmra.mrb[44].mxu1 %v700_v29  ;;  %v540_v29 = vld [vmem:[%s5218_s0 + $0x3f0] sm:$0xff] }
  0x9a   :  { %1567 = vmatmul.mubr.f32.gmra.mrb[44].mxu0 %v706_v30  ;;  %1001 = vmatprep.mubr.f32.mxu1 %v714_v31  ;;  %v4251_v30 = vld [vmem:[%s5217_s1 + $0x2c0] sm:$0xff]  }
  0x9b   :  { %1571 = vmatprep.mubr.f32.mxu0 %v720_v32  ;;  %v2671_v31 = vld [vmem:[%s5217_s1 + $0x140] sm:$0xff]   ;;  %v533_v32 = vld [vmem:[%s5218_s0 + $0x3b8] sm:$0xff] }
  0x9d   :  { %1002 = vmatmul.mubr.f32.gmra.mrb[46].mxu1 %v713_v33  ;;  %v539_v33 = vld [vmem:[%s5218_s0 + $0x3e8] sm:$0xff] }
  0x9e   :  { %1572 = vmatmul.mubr.f32.gmra.mrb[46].mxu0 %v719_v34  ;;  %1006 = vmatprep.mubr.f32.mxu1 %v727_v35  ;;  %v547_v34 = vld [vmem:[%s5218_s0 + $0x428] sm:$0xff]  ;;  %v553_v35 = vld [vmem:[%s5218_s0 + $0x458] sm:$0xff] }
  0x9f   :  { %1576 = vmatprep.mubr.f32.mxu0 %v733_v36  ;;  %v4274_v36 = vld [vmem:[%s5217_s1 + $0x2c8] sm:$0xff]  }
  0xa1   :  { %1007 = vmatmul.mubr.f32.gmra.mrb[48].mxu1 %v726_v37  ;;  %v2672_v37 = vld [vmem:[%s5217_s1 + $0x148] sm:$0xff]  }
  0xa2   :  { %1577 = vmatmul.mubr.f32.gmra.mrb[48].mxu0 %v732_v38  ;;  %1076 = vmatprep.mubr.f32.mxu1 %v417_v39  ;;  %v546_v38 = vld [vmem:[%s5218_s0 + $0x420] sm:$0xff]  ;;  %v552_v39 = vld [vmem:[%s5218_s0 + $0x450] sm:$0xff] }
  0xa3   :  { %1646 = vmatprep.mubr.f32.mxu0 %v423_v40  ;;  %v560_v40 = vld [vmem:[%s5218_s0 + $0x490] sm:$0xff] }
  0xa5   :  { %1077 = vmatmul.mubr.f32.vlgmr.msra.gmra.mrb[0].mxu1 %v416_v41  ;;  %v566_v41 = vld [vmem:[%s5218_s0 + $0x4c0] sm:$0xff] }
  0xa6   :  { %1647 = vmatmul.mubr.f32.vlgmr.msra.gmra.mrb[0].mxu0 %v422_v42  ;;  %1081 = vmatprep.mubr.f32.mxu1 %v430_v44  ;;  %v4297_v42 = vld [vmem:[%s5217_s1 + $0x2d0] sm:$0xff]  }
  0xa7   :  { %3097 = vmatpush1.bf16.msra.mxu0 %v4062_v43  ;;  %2953 = vmatpush1.bf16.msra.mxu1 %v2663_v45  ;;  %v2673_v44 = vld [vmem:[%s5217_s1 + $0x150] sm:$0xff]   ;;  %v559_v45 = vld [vmem:[%s5218_s0 + $0x488] sm:$0xff] }
  0xa8   :  { %1651 = vmatprep.mubr.f32.mxu0 %v436_v46  ;;  %3098 = vmatprep.subr.bf16.mxu0 %v3466_v0  ;;  %v565_v46 = vld [vmem:[%s5218_s0 + $0x4b8] sm:$0xff] }
  0xa9   :  { %2954 = vmatprep.subr.bf16.mxu1 %v3466_v0  ;;  %1082 = vmatmul.mubr.f32.gmra.mrb[2].mxu1 %v429_v47  ;;  %v573_v47 = vld [vmem:[%s5218_s0 + $0x4f8] sm:$0xff] }
  0xaa   :  { %1652 = vmatmul.mubr.f32.gmra.mrb[2].mxu0 %v435_v48  ;;  %1086 = vmatprep.mubr.f32.mxu1 %v443_v49  ;;  %v579_v48 = vld [vmem:[%s5218_s0 + $0x528] sm:$0xff]  ;;  %v4320_v49 = vld [vmem:[%s5217_s1 + $0x2d8] sm:$0xff]  }
  0xab   :  { %1656 = vmatprep.mubr.f32.mxu0 %v449_v50  ;;  %3100 = vmatpush1.bf16.msra.mxu0 %v4090_v51  ;;  %v2674_v50 = vld [vmem:[%s5217_s1 + $0x158] sm:$0xff]  }
  0xac   :  { %2956 = vmatpush1.bf16.msra.mxu1 %v2664_v52  ;;  %3101 = vmatprep.subr.bf16.mxu0 %v3466_v0  ;;  %v572_v52 = vld [vmem:[%s5218_s0 + $0x4f0] sm:$0xff] }
  0xad   :  { %2957 = vmatprep.subr.bf16.mxu1 %v3466_v0  ;;  %1087 = vmatmul.mubr.f32.gmra.mrb[4].mxu1 %v442_v53  ;;  %v578_v53 = vld [vmem:[%s5218_s0 + $0x520] sm:$0xff] }
  0xae   :  { %1657 = vmatmul.mubr.f32.gmra.mrb[4].mxu0 %v448_v54  ;;  %1091 = vmatprep.mubr.f32.mxu1 %v456_v55  ;;  %v586_v54 = vld [vmem:[%s5218_s0 + $0x560] sm:$0xff]  ;;  %v592_v55 = vld [vmem:[%s5218_s0 + $0x590] sm:$0xff] }
  0xaf   :  { %1661 = vmatprep.mubr.f32.mxu0 %v462_v56  ;;  %3103 = vmatpush1.bf16.msra.mxu0 %v4113_v57  ;;  %v4343_v56 = vld [vmem:[%s5217_s1 + $0x2e0] sm:$0xff]  }
  0xb0   :  { %2959 = vmatpush1.bf16.msra.mxu1 %v2665_v58  ;;  %3104 = vmatprep.subr.bf16.mxu0 %v3466_v0  ;;  %v2675_v58 = vld [vmem:[%s5217_s1 + $0x160] sm:$0xff]  }
  0xb1   :  { %2960 = vmatprep.subr.bf16.mxu1 %v3466_v0  ;;  %1092 = vmatmul.mubr.f32.gmra.mrb[6].mxu1 %v455_v59  ;;  %v585_v59 = vld [vmem:[%s5218_s0 + $0x558] sm:$0xff] }
  0xb2   :  { %1662 = vmatmul.mubr.f32.gmra.mrb[6].mxu0 %v461_v60  ;;  %1096 = vmatprep.mubr.f32.mxu1 %v469_v61  ;;  %v591_v60 = vld [vmem:[%s5218_s0 + $0x588] sm:$0xff] }
  0xb3   :  { %1666 = vmatprep.mubr.f32.mxu0 %v475_v62  ;;  %3106 = vmatpush1.bf16.msra.mxu0 %v4136_v63  ;;  %v599_v61 = vld [vmem:[%s5218_s0 + $0x5c8] sm:$0xff]  ;;  %v605_v62 = vld [vmem:[%s5218_s0 + $0x5f8] sm:$0xff] }
  0xb4   :  { %2962 = vmatpush1.bf16.msra.mxu1 %v2666_v1  ;;  %3107 = vmatprep.subr.bf16.mxu0 %v3466_v0  ;;  %v4366_v1 = vld [vmem:[%s5217_s1 + $0x2e8] sm:$0xff]  }
  0xb5   :  { %2963 = vmatprep.subr.bf16.mxu1 %v3466_v0  ;;  %1097 = vmatmul.mubr.f32.gmra.mrb[8].mxu1 %v468_v2  ;;  %v2676_v2 = vld [vmem:[%s5217_s1 + $0x168] sm:$0xff]  }
  0xb6   :  { %1667 = vmatmul.mubr.f32.gmra.mrb[8].mxu0 %v474_v3  ;;  %1101 = vmatprep.mubr.f32.mxu1 %v482_v4  ;;  %v598_v3 = vld [vmem:[%s5218_s0 + $0x5c0] sm:$0xff]  ;;  %v604_v4 = vld [vmem:[%s5218_s0 + $0x5f0] sm:$0xff] }
  0xb7   :  { %1671 = vmatprep.mubr.f32.mxu0 %v488_v5  ;;  %3109 = vmatpush1.bf16.msra.mxu0 %v4159_v6  ;;  %v612_v5 = vld [vmem:[%s5218_s0 + $0x630] sm:$0xff] }
  0xb8   :  { %2965 = vmatpush1.bf16.msra.mxu1 %v2667_v7  ;;  %3110 = vmatprep.subr.bf16.mxu0 %v3466_v0  ;;  %v618_v7 = vld [vmem:[%s5218_s0 + $0x660] sm:$0xff] }
  0xb9   :  { %2966 = vmatprep.subr.bf16.mxu1 %v3466_v0  ;;  %1102 = vmatmul.mubr.f32.gmra.mrb[10].mxu1 %v481_v8  ;;  %v4389_v8 = vld [vmem:[%s5217_s1 + $0x2f0] sm:$0xff]  }
  0xba   :  { %1672 = vmatmul.mubr.f32.gmra.mrb[10].mxu0 %v487_v9  ;;  %1106 = vmatprep.mubr.f32.mxu1 %v495_v10  ;;  %v2677_v9 = vld [vmem:[%s5217_s1 + $0x170] sm:$0xff]   ;;  %v611_v10 = vld [vmem:[%s5218_s0 + $0x628] sm:$0xff] }
  0xbb   :  { %1676 = vmatprep.mubr.f32.mxu0 %v501_v11  ;;  %3112 = vmatpush1.bf16.msra.mxu0 %v4182_v12  ;;  %v617_v11 = vld [vmem:[%s5218_s0 + $0x658] sm:$0xff] }
  0xbc   :  { %2968 = vmatpush1.bf16.msra.mxu1 %v2668_v13  ;;  %3113 = vmatprep.subr.bf16.mxu0 %v3466_v0  ;;  %v625_v13 = vld [vmem:[%s5218_s0 + $0x698] sm:$0xff] }
  0xbd   :  { %2969 = vmatprep.subr.bf16.mxu1 %v3466_v0  ;;  %1107 = vmatmul.mubr.f32.gmra.mrb[12].mxu1 %v494_v14  ;;  %v631_v14 = vld [vmem:[%s5218_s0 + $0x6c8] sm:$0xff] }
  0xbe   :  { %1677 = vmatmul.mubr.f32.gmra.mrb[12].mxu0 %v500_v15  ;;  %1111 = vmatprep.mubr.f32.mxu1 %v508_v16  ;;  %v4412_v15 = vld [vmem:[%s5217_s1 + $0x2f8] sm:$0xff]  }
  0xbf   :  { %1681 = vmatprep.mubr.f32.mxu0 %v514_v17  ;;  %3115 = vmatpush1.bf16.msra.mxu0 %v4205_v18  ;;  %v2678_v16 = vld [vmem:[%s5217_s1 + $0x178] sm:$0xff]   ;;  %v624_v17 = vld [vmem:[%s5218_s0 + $0x690] sm:$0xff] }
  0xc0   :  { %2971 = vmatpush1.bf16.msra.mxu1 %v2669_v19  ;;  %3116 = vmatprep.subr.bf16.mxu0 %v3466_v0  ;;  %v630_v19 = vld [vmem:[%s5218_s0 + $0x6c0] sm:$0xff] }
  0xc1   :  { %2972 = vmatprep.subr.bf16.mxu1 %v3466_v0  ;;  %1112 = vmatmul.mubr.f32.gmra.mrb[14].mxu1 %v507_v20  ;;  %v638_v20 = vld [vmem:[%s5218_s0 + $0x700] sm:$0xff] }
  0xc2   :  { %1682 = vmatmul.mubr.f32.gmra.mrb[14].mxu0 %v513_v21  ;;  %1116 = vmatprep.mubr.f32.mxu1 %v521_v22  ;;  %v644_v21 = vld [vmem:[%s5218_s0 + $0x730] sm:$0xff]  ;;  %v637_v22 = vld [vmem:[%s5218_s0 + $0x6f8] sm:$0xff] }
  0xc3   :  { %1686 = vmatprep.mubr.f32.mxu0 %v527_v23  ;;  %3118 = vmatpush1.bf16.msra.mxu0 %v4228_v24  ;;  %v643_v23 = vld [vmem:[%s5218_s0 + $0x728] sm:$0xff] }
  0xc4   :  { %2974 = vmatpush1.bf16.msra.mxu1 %v2670_v25  ;;  %3119 = vmatprep.subr.bf16.mxu0 %v3466_v0  ;;  %v651_v25 = vld [vmem:[%s5218_s0 + $0x768] sm:$0xff] }
  0xc5   :  { %2975 = vmatprep.subr.bf16.mxu1 %v3466_v0  ;;  %1117 = vmatmul.mubr.f32.gmra.mrb[16].mxu1 %v520_v26  ;;  %v657_v26 = vld [vmem:[%s5218_s0 + $0x798] sm:$0xff] }
  0xc6   :  { %1687 = vmatmul.mubr.f32.gmra.mrb[16].mxu0 %v526_v27  ;;  %1121 = vmatprep.mubr.f32.mxu1 %v534_v28  ;;  %v650_v27 = vld [vmem:[%s5218_s0 + $0x760] sm:$0xff]  ;;  %v656_v28 = vld [vmem:[%s5218_s0 + $0x790] sm:$0xff] }
  0xc7   :  { %1691 = vmatprep.mubr.f32.mxu0 %v540_v29  ;;  %3121 = vmatpush1.bf16.msra.mxu0 %v4251_v30  ;;  %v664_v29 = vld [vmem:[%s5218_s0 + $0x7d0] sm:$0xff] }
  0xc8   :  { %2977 = vmatpush1.bf16.msra.mxu1 %v2671_v31  ;;  %3122 = vmatprep.subr.bf16.mxu0 %v3466_v0  ;;  %v670_v31 = vld [vmem:[%s5218_s0 + $0x800] sm:$0xff] }
  0xc9   :  { %2978 = vmatprep.subr.bf16.mxu1 %v3466_v0  ;;  %1122 = vmatmul.mubr.f32.gmra.mrb[18].mxu1 %v533_v32  ;;  %v663_v32 = vld [vmem:[%s5218_s0 + $0x7c8] sm:$0xff] }
  0xca   :  { %1692 = vmatmul.mubr.f32.gmra.mrb[18].mxu0 %v539_v33  ;;  %1126 = vmatprep.mubr.f32.mxu1 %v547_v34  ;;  %v669_v33 = vld [vmem:[%s5218_s0 + $0x7f8] sm:$0xff] }
  0xcb   :  { %1696 = vmatprep.mubr.f32.mxu0 %v553_v35  ;;  %3124 = vmatpush1.bf16.msra.mxu0 %v4274_v36  ;;  %v677_v34 = vld [vmem:[%s5218_s0 + $0x838] sm:$0xff]  ;;  %v683_v35 = vld [vmem:[%s5218_s0 + $0x868] sm:$0xff] }
  0xcc   :  { %2980 = vmatpush1.bf16.msra.mxu1 %v2672_v37  ;;  %3125 = vmatprep.subr.bf16.mxu0 %v3466_v0  ;;  %v676_v37 = vld [vmem:[%s5218_s0 + $0x830] sm:$0xff] }
  0xcd   :  { %2981 = vmatprep.subr.bf16.mxu1 %v3466_v0  ;;  %1127 = vmatmul.mubr.f32.gmra.mrb[20].mxu1 %v546_v38  ;;  %v682_v38 = vld [vmem:[%s5218_s0 + $0x860] sm:$0xff] }
  0xce   :  { %1697 = vmatmul.mubr.f32.gmra.mrb[20].mxu0 %v552_v39  ;;  %1131 = vmatprep.mubr.f32.mxu1 %v560_v40  ;;  %v690_v39 = vld [vmem:[%s5218_s0 + $0x8a0] sm:$0xff]  ;;  %v696_v40 = vld [vmem:[%s5218_s0 + $0x8d0] sm:$0xff] }
  0xcf   :  { %1701 = vmatprep.mubr.f32.mxu0 %v566_v41  ;;  %3127 = vmatpush1.bf16.msra.mxu0 %v4297_v42  ;;  %v689_v41 = vld [vmem:[%s5218_s0 + $0x898] sm:$0xff] }
  0xd0   :  { %2983 = vmatpush1.bf16.msra.mxu1 %v2673_v44  ;;  %3128 = vmatprep.subr.bf16.mxu0 %v3466_v0  ;;  %v695_v44 = vld [vmem:[%s5218_s0 + $0x8c8] sm:$0xff] }
  0xd1   :  { %2984 = vmatprep.subr.bf16.mxu1 %v3466_v0  ;;  %1132 = vmatmul.mubr.f32.gmra.mrb[22].mxu1 %v559_v45  ;;  %v703_v45 = vld [vmem:[%s5218_s0 + $0x908] sm:$0xff] }
  0xd2   :  { %1702 = vmatmul.mubr.f32.gmra.mrb[22].mxu0 %v565_v46  ;;  %1136 = vmatprep.mubr.f32.mxu1 %v573_v47  ;;  %v709_v46 = vld [vmem:[%s5218_s0 + $0x938] sm:$0xff]  ;;  %v702_v47 = vld [vmem:[%s5218_s0 + $0x900] sm:$0xff] }
  0xd3   :  { %1706 = vmatprep.mubr.f32.mxu0 %v579_v48  ;;  %3130 = vmatpush1.bf16.msra.mxu0 %v4320_v49  ;;  %v708_v48 = vld [vmem:[%s5218_s0 + $0x930] sm:$0xff] }
  0xd4   :  { %2986 = vmatpush1.bf16.msra.mxu1 %v2674_v50  ;;  %3131 = vmatprep.subr.bf16.mxu0 %v3466_v0  ;;  %v716_v50 = vld [vmem:[%s5218_s0 + $0x970] sm:$0xff] }
  0xd5   :  { %2987 = vmatprep.subr.bf16.mxu1 %v3466_v0  ;;  %1137 = vmatmul.mubr.f32.gmra.mrb[24].mxu1 %v572_v52  ;;  %v722_v52 = vld [vmem:[%s5218_s0 + $0x9a0] sm:$0xff] }
  0xd6   :  { %1707 = vmatmul.mubr.f32.gmra.mrb[24].mxu0 %v578_v53  ;;  %1141 = vmatprep.mubr.f32.mxu1 %v586_v54  ;;  %v715_v53 = vld [vmem:[%s5218_s0 + $0x968] sm:$0xff]  ;;  %v721_v54 = vld [vmem:[%s5218_s0 + $0x998] sm:$0xff] }
  0xd7   :  { %1711 = vmatprep.mubr.f32.mxu0 %v592_v55  ;;  %3133 = vmatpush1.bf16.msra.mxu0 %v4343_v56  ;;  %v729_v55 = vld [vmem:[%s5218_s0 + $0x9d8] sm:$0xff] }
  0xd8   :  { %2989 = vmatpush1.bf16.msra.mxu1 %v2675_v58  ;;  %3134 = vmatprep.subr.bf16.mxu0 %v3466_v0  ;;  %v735_v58 = vld [vmem:[%s5218_s0 + $0xa08] sm:$0xff] }
  0xd9   :  { %2990 = vmatprep.subr.bf16.mxu1 %v3466_v0  ;;  %1142 = vmatmul.mubr.f32.gmra.mrb[26].mxu1 %v585_v59  ;;  %v728_v59 = vld [vmem:[%s5218_s0 + $0x9d0] sm:$0xff] }
  0xda   :  { %1712 = vmatmul.mubr.f32.gmra.mrb[26].mxu0 %v591_v60  ;;  %1146 = vmatprep.mubr.f32.mxu1 %v599_v61  ;;  %v734_v60 = vld [vmem:[%s5218_s0 + $0xa00] sm:$0xff]  ;;  %v419_v61 = vld [vmem:[%s5218_s0 + $0x28] sm:$0xff] }
  0xdb   :  { %1716 = vmatprep.mubr.f32.mxu0 %v605_v62  ;;  %3136 = vmatpush1.bf16.msra.mxu0 %v4366_v1  ;;  %v425_v62 = vld [vmem:[%s5218_s0 + $0x58] sm:$0xff] }
  0xdc   :  { %2992 = vmatpush1.bf16.msra.mxu1 %v2676_v2  ;;  %3137 = vmatprep.subr.bf16.mxu0 %v3466_v0  ;;  %v418_v2 = vld [vmem:[%s5218_s0 + $0x20] sm:$0xff] }
  0xdd   :  { %2993 = vmatprep.subr.bf16.mxu1 %v3466_v0  ;;  %1147 = vmatmul.mubr.f32.gmra.mrb[28].mxu1 %v598_v3  ;;  %v424_v3 = vld [vmem:[%s5218_s0 + $0x50] sm:$0xff] }
  0xde   :  { %1717 = vmatmul.mubr.f32.gmra.mrb[28].mxu0 %v604_v4  ;;  %1151 = vmatprep.mubr.f32.mxu1 %v612_v5  ;;  %v2727_v4 = vld [vmem:[%s5217_s1 + $0x300] sm:$0xff]   ;;  %v432_v5 = vld [vmem:[%s5218_s0 + $0x90] sm:$0xff] }
  0xdf   :  { %1721 = vmatprep.mubr.f32.mxu0 %v618_v7  ;;  %3139 = vmatpush1.bf16.msra.mxu0 %v4389_v8  ;;  %v438_v7 = vld [vmem:[%s5218_s0 + $0xc0] sm:$0xff] }
  0xe0   :  { %2995 = vmatpush1.bf16.msra.mxu1 %v2677_v9  ;;  %3140 = vmatprep.subr.bf16.mxu0 %v3466_v0  ;;  %v431_v9 = vld [vmem:[%s5218_s0 + $0x88] sm:$0xff] }
  0xe1   :  { %2996 = vmatprep.subr.bf16.mxu1 %v3466_v0  ;;  %1152 = vmatmul.mubr.f32.gmra.mrb[30].mxu1 %v611_v10  ;;  %v437_v10 = vld [vmem:[%s5218_s0 + $0xb8] sm:$0xff] }
  0xe2   :  { %1722 = vmatmul.mubr.f32.gmra.mrb[30].mxu0 %v617_v11  ;;  %1156 = vmatprep.mubr.f32.mxu1 %v625_v13  ;;  %v445_v11 = vld [vmem:[%s5218_s0 + $0xf8] sm:$0xff]  ;;  %v451_v13 = vld [vmem:[%s5218_s0 + $0x128] sm:$0xff] }
  0xe3   :  { %1726 = vmatprep.mubr.f32.mxu0 %v631_v14  ;;  %3142 = vmatpush1.bf16.msra.mxu0 %v4412_v15  ;;  %v2728_v14 = vld [vmem:[%s5217_s1 + $0x308] sm:$0xff]  }
  0xe4   :  { %2998 = vmatpush1.bf16.msra.mxu1 %v2678_v16  ;;  %3143 = vmatprep.subr.bf16.mxu0 %v3466_v0  ;;  %v450_v16 = vld [vmem:[%s5218_s0 + $0x120] sm:$0xff] }
  0xe5   :  { %3155 = vmatprep.subr.bf16.mxu1 %v3466_v0  ;;  %1157 = vmatmul.mubr.f32.gmra.mrb[32].mxu1 %v624_v17  ;;  %v458_v17 = vld [vmem:[%s5218_s0 + $0x160] sm:$0xff] }
  0xe6   :  { %1727 = vmatmul.mubr.f32.gmra.mrb[32].mxu0 %v630_v19  ;;  %1161 = vmatprep.mubr.f32.mxu1 %v638_v20  ;;  %v464_v19 = vld [vmem:[%s5218_s0 + $0x190] sm:$0xff] }
  0xe7   :  { %1731 = vmatprep.mubr.f32.mxu0 %v644_v21  ;;  %v2729_v20 = vld [vmem:[%s5217_s1 + $0x310] sm:$0xff]   ;;  %v463_v21 = vld [vmem:[%s5218_s0 + $0x188] sm:$0xff] }
  0xe9   :  { %1162 = vmatmul.mubr.f32.gmra.mrb[34].mxu1 %v637_v22  ;;  %v471_v22 = vld [vmem:[%s5218_s0 + $0x1c8] sm:$0xff] }
  0xea   :  { %1732 = vmatmul.mubr.f32.gmra.mrb[34].mxu0 %v643_v23  ;;  %1166 = vmatprep.mubr.f32.mxu1 %v651_v25  ;;  %v477_v23 = vld [vmem:[%s5218_s0 + $0x1f8] sm:$0xff] }
  0xeb   :  { %1736 = vmatprep.mubr.f32.mxu0 %v657_v26  ;;  %v2730_v25 = vld [vmem:[%s5217_s1 + $0x318] sm:$0xff]   ;;  %v470_v26 = vld [vmem:[%s5218_s0 + $0x1c0] sm:$0xff] }
  0xed   :  { %1167 = vmatmul.mubr.f32.gmra.mrb[36].mxu1 %v650_v27  ;;  %v484_v27 = vld [vmem:[%s5218_s0 + $0x230] sm:$0xff] }
  0xee   :  { %1737 = vmatmul.mubr.f32.gmra.mrb[36].mxu0 %v656_v28  ;;  %1171 = vmatprep.mubr.f32.mxu1 %v664_v29  ;;  %v490_v28 = vld [vmem:[%s5218_s0 + $0x260] sm:$0xff]  ;;  %v483_v29 = vld [vmem:[%s5218_s0 + $0x228] sm:$0xff] }
  0xef   :  { %1741 = vmatprep.mubr.f32.mxu0 %v670_v31  ;;  %v489_v31 = vld [vmem:[%s5218_s0 + $0x258] sm:$0xff] }
  0xf1   :  { %1172 = vmatmul.mubr.f32.gmra.mrb[38].mxu1 %v663_v32  ;;  %v497_v32 = vld [vmem:[%s5218_s0 + $0x298] sm:$0xff] }
  0xf2   :  { %1742 = vmatmul.mubr.f32.gmra.mrb[38].mxu0 %v669_v33  ;;  %1176 = vmatprep.mubr.f32.mxu1 %v677_v34  ;;  %v496_v33 = vld [vmem:[%s5218_s0 + $0x290] sm:$0xff]  ;;  %v502_v34 = vld [vmem:[%s5218_s0 + $0x2c0] sm:$0xff] }
  0xf3   :  { %1746 = vmatprep.mubr.f32.mxu0 %v683_v35  ;;  %v510_v35 = vld [vmem:[%s5218_s0 + $0x300] sm:$0xff] }
  0xf5   :  { %1177 = vmatmul.mubr.f32.gmra.mrb[40].mxu1 %v676_v37  ;;  %v509_v37 = vld [vmem:[%s5218_s0 + $0x2f8] sm:$0xff] }
  0xf6   :  { %1747 = vmatmul.mubr.f32.gmra.mrb[40].mxu0 %v682_v38  ;;  %1181 = vmatprep.mubr.f32.mxu1 %v690_v39  ;;  %v515_v38 = vld [vmem:[%s5218_s0 + $0x328] sm:$0xff] }
  0xf7   :  { %1751 = vmatprep.mubr.f32.mxu0 %v696_v40  ;;  %v523_v39 = vld [vmem:[%s5218_s0 + $0x368] sm:$0xff]  ;;  %v522_v40 = vld [vmem:[%s5218_s0 + $0x360] sm:$0xff] }
  0xf9   :  { %1182 = vmatmul.mubr.f32.gmra.mrb[42].mxu1 %v689_v41  ;;  %v528_v41 = vld [vmem:[%s5218_s0 + $0x390] sm:$0xff] }
  0xfa   :  { %1752 = vmatmul.mubr.f32.gmra.mrb[42].mxu0 %v695_v44  ;;  %1186 = vmatprep.mubr.f32.mxu1 %v703_v45  ;;  %v536_v44 = vld [vmem:[%s5218_s0 + $0x3d0] sm:$0xff]  ;;  %v535_v45 = vld [vmem:[%s5218_s0 + $0x3c8] sm:$0xff] }
  0xfb   :  { %1756 = vmatprep.mubr.f32.mxu0 %v709_v46  ;;  %v541_v46 = vld [vmem:[%s5218_s0 + $0x3f8] sm:$0xff] }
  0xfd   :  { %1187 = vmatmul.mubr.f32.gmra.mrb[44].mxu1 %v702_v47  ;;  %v549_v47 = vld [vmem:[%s5218_s0 + $0x438] sm:$0xff] }
  0xfe   :  { %1757 = vmatmul.mubr.f32.gmra.mrb[44].mxu0 %v708_v48  ;;  %1191 = vmatprep.mubr.f32.mxu1 %v716_v50  ;;  %v548_v48 = vld [vmem:[%s5218_s0 + $0x430] sm:$0xff]  ;;  %v554_v50 = vld [vmem:[%s5218_s0 + $0x460] sm:$0xff] }
  0xff   :  { %1761 = vmatprep.mubr.f32.mxu0 %v722_v52  ;;  %v562_v52 = vld [vmem:[%s5218_s0 + $0x4a0] sm:$0xff] }
 0x101   :  { %1192 = vmatmul.mubr.f32.gmra.mrb[46].mxu1 %v715_v53  ;;  %v561_v53 = vld [vmem:[%s5218_s0 + $0x498] sm:$0xff] }
 0x102   :  { %1762 = vmatmul.mubr.f32.gmra.mrb[46].mxu0 %v721_v54  ;;  %1196 = vmatprep.mubr.f32.mxu1 %v729_v55  ;;  %v567_v54 = vld [vmem:[%s5218_s0 + $0x4c8] sm:$0xff] }
 0x103   :  { %1766 = vmatprep.mubr.f32.mxu0 %v735_v58  ;;  %v575_v55 = vld [vmem:[%s5218_s0 + $0x508] sm:$0xff]  ;;  %v574_v58 = vld [vmem:[%s5218_s0 + $0x500] sm:$0xff] }
 0x105   :  { %1197 = vmatmul.mubr.f32.gmra.mrb[48].mxu1 %v728_v59  ;;  %v580_v59 = vld [vmem:[%s5218_s0 + $0x530] sm:$0xff] }
 0x106   :  { %1767 = vmatmul.mubr.f32.gmra.mrb[48].mxu0 %v734_v60  ;;  %1266 = vmatprep.mubr.f32.mxu1 %v419_v61  ;;  %v588_v60 = vld [vmem:[%s5218_s0 + $0x570] sm:$0xff]  ;;  %v587_v61 = vld [vmem:[%s5218_s0 + $0x568] sm:$0xff] }
 0x107   :  { %1836 = vmatprep.mubr.f32.mxu0 %v425_v62  ;;  %v426_v62 = vld [vmem:[%s5218_s0 + $0x60] sm:$0xff] }
 0x109   :  { %1267 = vmatmul.mubr.f32.vlgmr.msra.gmra.mrb[0].mxu1 %v418_v2  ;;  %v600_v2 = vld [vmem:[%s5218_s0 + $0x5d0] sm:$0xff] }
 0x10a   :  { %1837 = vmatmul.mubr.f32.vlgmr.msra.gmra.mrb[0].mxu0 %v424_v3  ;;  %1271 = vmatprep.mubr.f32.mxu1 %v432_v5  ;;  %v439_v3 = vld [vmem:[%s5218_s0 + $0xc8] sm:$0xff]  ;;  %v452_v5 = vld [vmem:[%s5218_s0 + $0x130] sm:$0xff] }
 0x10b   :  { %3145 = vmatpush3.bf16.msra.mxu0 %v2727_v4  ;;  %3171 = vmatpush1.bf16.msra.mxu1 %v4062_v43  ;;  %v444_v43 = vld [vmem:[%s5218_s0 + $0xf0] sm:$0xff]  ;;  %v613_v4 = vld [vmem:[%s5218_s0 + $0x638] sm:$0xff] }
 0x10c   :  { %1841 = vmatprep.mubr.f32.mxu0 %v438_v7  ;;  %3156 = vmatprep.subr.bf16.mxu1 %v3466_v0  ;;  %v626_v7 = vld [vmem:[%s5218_s0 + $0x6a0] sm:$0xff] }
 0x10d   :  { %3146 = vmatprep.subr.bf16.mxu0 %v3466_v0  ;;  %1272 = vmatmul.mubr.f32.gmra.mrb[2].mxu1 %v431_v9  ;;  %v465_v9 = vld [vmem:[%s5218_s0 + $0x198] sm:$0xff] }
 0x10e   :  { %1842 = vmatmul.mubr.f32.gmra.mrb[2].mxu0 %v437_v10  ;;  %1276 = vmatprep.mubr.f32.mxu1 %v445_v11  ;;  %v478_v10 = vld [vmem:[%s5218_s0 + $0x200] sm:$0xff]  ;;  %v653_v11 = vld [vmem:[%s5218_s0 + $0x778] sm:$0xff] }
 0x10f   :  { %1846 = vmatprep.mubr.f32.mxu0 %v451_v13  ;;  %3172 = vmatpush1.bf16.msra.mxu1 %v4090_v51  ;;  %v457_v51 = vld [vmem:[%s5218_s0 + $0x158] sm:$0xff]  ;;  %v491_v13 = vld [vmem:[%s5218_s0 + $0x268] sm:$0xff] }
 0x110   :  { %3148 = vmatpush3.bf16.msra.mxu0 %v2728_v14  ;;  %3157 = vmatprep.subr.bf16.mxu1 %v3466_v0  ;;  %v666_v14 = vld [vmem:[%s5218_s0 + $0x7e0] sm:$0xff] }
 0x111   :  { %3149 = vmatprep.subr.bf16.mxu0 %v3466_v0  ;;  %1277 = vmatmul.mubr.f32.gmra.mrb[4].mxu1 %v444_v43  ;;  %v665_v43 = vld [vmem:[%s5218_s0 + $0x7d8] sm:$0xff] }
 0x112   :  { %1847 = vmatmul.mubr.f32.gmra.mrb[4].mxu0 %v450_v16  ;;  %1281 = vmatprep.mubr.f32.mxu1 %v458_v17  ;;  %v504_v16 = vld [vmem:[%s5218_s0 + $0x2d0] sm:$0xff]  ;;  %v679_v17 = vld [vmem:[%s5218_s0 + $0x848] sm:$0xff] }
 0x113   :  { %1851 = vmatprep.mubr.f32.mxu0 %v464_v19  ;;  %3173 = vmatpush1.bf16.msra.mxu1 %v4113_v57  ;;  %v476_v57 = vld [vmem:[%s5218_s0 + $0x1f0] sm:$0xff]  ;;  %v678_v19 = vld [vmem:[%s5218_s0 + $0x840] sm:$0xff] }
 0x114   :  { %3151 = vmatpush3.bf16.msra.mxu0 %v2729_v20  ;;  %3158 = vmatprep.subr.bf16.mxu1 %v3466_v0  ;;  %v517_v20 = vld [vmem:[%s5218_s0 + $0x338] sm:$0xff] }
 0x115   :  { %3152 = vmatprep.subr.bf16.mxu0 %v3466_v0  ;;  %1282 = vmatmul.mubr.f32.gmra.mrb[6].mxu1 %v457_v51  ;;  %v692_v51 = vld [vmem:[%s5218_s0 + $0x8b0] sm:$0xff] }
 0x116   :  { %1852 = vmatmul.mubr.f32.gmra.mrb[6].mxu0 %v463_v21  ;;  %1286 = vmatprep.mubr.f32.mxu1 %v471_v22  ;;  %v691_v21 = vld [vmem:[%s5218_s0 + $0x8a8] sm:$0xff]  ;;  %v530_v22 = vld [vmem:[%s5218_s0 + $0x3a0] sm:$0xff] }
 0x117   :  { %1856 = vmatprep.mubr.f32.mxu0 %v477_v23  ;;  %3174 = vmatpush1.bf16.msra.mxu1 %v4136_v63  ;;  %v503_v63 = vld [vmem:[%s5218_s0 + $0x2c8] sm:$0xff]  ;;  %v705_v23 = vld [vmem:[%s5218_s0 + $0x918] sm:$0xff] }
 0x118   :  { %3154 = vmatpush3.bf16.msra.mxu0 %v2730_v25  ;;  %3159 = vmatprep.subr.bf16.mxu1 %v3466_v0  ;;  %v704_v25 = vld [vmem:[%s5218_s0 + $0x910] sm:$0xff] }
 0x119   :  { %1287 = vmatmul.mubr.f32.gmra.mrb[8].mxu1 %v470_v26  ;;  %v543_v26 = vld [vmem:[%s5218_s0 + $0x408] sm:$0xff] }
 0x11a   :  { %1857 = vmatmul.mubr.f32.gmra.mrb[8].mxu0 %v476_v57  ;;  %1291 = vmatprep.mubr.f32.mxu1 %v484_v27  ;;  %v718_v57 = vld [vmem:[%s5218_s0 + $0x980] sm:$0xff]  ;;  %v717_v27 = vld [vmem:[%s5218_s0 + $0x978] sm:$0xff] }
 0x11b   :  { %1861 = vmatprep.mubr.f32.mxu0 %v490_v28  ;;  %3175 = vmatpush1.bf16.msra.mxu1 %v4159_v6  ;;  %v516_v6 = vld [vmem:[%s5218_s0 + $0x330] sm:$0xff] }
 0x11c   :  { %3160 = vmatprep.subr.bf16.mxu1 %v3466_v0  ;;  %v556_v28 = vld [vmem:[%s5218_s0 + $0x470] sm:$0xff] }
 0x11d   :  { %1292 = vmatmul.mubr.f32.gmra.mrb[10].mxu1 %v483_v29  ;;  %v731_v29 = vld [vmem:[%s5218_s0 + $0x9e8] sm:$0xff] }
 0x11e   :  { %1862 = vmatmul.mubr.f32.gmra.mrb[10].mxu0 %v489_v31  ;;  %1296 = vmatprep.mubr.f32.mxu1 %v497_v32  ;;  %v730_v31 = vld [vmem:[%s5218_s0 + $0x9e0] sm:$0xff]  ;;  %v569_v32 = vld [vmem:[%s5218_s0 + $0x4d8] sm:$0xff] }
 0x11f   :  { %1866 = vmatprep.mubr.f32.mxu0 %v503_v63  ;;  %3176 = vmatpush1.bf16.msra.mxu1 %v4182_v12  ;;  %v529_v12 = vld [vmem:[%s5218_s0 + $0x398] sm:$0xff]  ;;  %v594_v63 = vld [vmem:[%s5218_s0 + $0x5a0] sm:$0xff] }
 0x120   :  { %3161 = vmatprep.subr.bf16.mxu1 %v3466_v0 }
 0x121   :  { %1297 = vmatmul.mubr.f32.gmra.mrb[12].mxu1 %v496_v33  ;;  %v593_v33 = vld [vmem:[%s5218_s0 + $0x598] sm:$0xff] }
 0x122   :  { %1867 = vmatmul.mubr.f32.gmra.mrb[12].mxu0 %v502_v34  ;;  %1301 = vmatprep.mubr.f32.mxu1 %v510_v35  ;;  %v582_v34 = vld [vmem:[%s5218_s0 + $0x540] sm:$0xff]  ;;  %v607_v35 = vld [vmem:[%s5218_s0 + $0x608] sm:$0xff] }
 0x123   :  { %1871 = vmatprep.mubr.f32.mxu0 %v516_v6  ;;  %3177 = vmatpush1.bf16.msra.mxu1 %v4205_v18  ;;  %v542_v18 = vld [vmem:[%s5218_s0 + $0x400] sm:$0xff] }
 0x124   :  { %3162 = vmatprep.subr.bf16.mxu1 %v3466_v0  ;;  %v606_v6 = vld [vmem:[%s5218_s0 + $0x600] sm:$0xff] }
 0x125   :  { %1302 = vmatmul.mubr.f32.gmra.mrb[14].mxu1 %v509_v37  ;;  %v595_v37 = vld [vmem:[%s5218_s0 + $0x5a8] sm:$0xff] }
 0x126   :  { %1872 = vmatmul.mubr.f32.gmra.mrb[14].mxu0 %v515_v38  ;;  %1306 = vmatprep.mubr.f32.mxu1 %v523_v39  ;;  %v620_v38 = vld [vmem:[%s5218_s0 + $0x670] sm:$0xff]  ;;  %v619_v39 = vld [vmem:[%s5218_s0 + $0x668] sm:$0xff] }
 0x127   :  { %1876 = vmatprep.mubr.f32.mxu0 %v529_v12  ;;  %3178 = vmatpush1.bf16.msra.mxu1 %v4228_v24  ;;  %v555_v24 = vld [vmem:[%s5218_s0 + $0x468] sm:$0xff]  ;;  %v608_v12 = vld [vmem:[%s5218_s0 + $0x610] sm:$0xff] }
 0x128   :  { %3163 = vmatprep.subr.bf16.mxu1 %v3466_v0 }
 0x129   :  { %1307 = vmatmul.mubr.f32.gmra.mrb[16].mxu1 %v522_v40  ;;  %v633_v40 = vld [vmem:[%s5218_s0 + $0x6d8] sm:$0xff] }
 0x12a   :  { %1877 = vmatmul.mubr.f32.gmra.mrb[16].mxu0 %v528_v41  ;;  %1311 = vmatprep.mubr.f32.mxu1 %v536_v44  ;;  %v632_v41 = vld [vmem:[%s5218_s0 + $0x6d0] sm:$0xff]  ;;  %v621_v44 = vld [vmem:[%s5218_s0 + $0x678] sm:$0xff] }
 0x12b   :  { %1881 = vmatprep.mubr.f32.mxu0 %v542_v18  ;;  %3179 = vmatpush1.bf16.msra.mxu1 %v4251_v30  ;;  %v568_v30 = vld [vmem:[%s5218_s0 + $0x4d0] sm:$0xff]  ;;  %v646_v18 = vld [vmem:[%s5218_s0 + $0x740] sm:$0xff] }
 0x12c   :  { %3164 = vmatprep.subr.bf16.mxu1 %v3466_v0 }
 0x12d   :  { %1312 = vmatmul.mubr.f32.gmra.mrb[18].mxu1 %v535_v45  ;;  %v645_v45 = vld [vmem:[%s5218_s0 + $0x738] sm:$0xff] }
 0x12e   :  { %1882 = vmatmul.mubr.f32.gmra.mrb[18].mxu0 %v541_v46  ;;  %1316 = vmatprep.mubr.f32.mxu1 %v549_v47  ;;  %v634_v46 = vld [vmem:[%s5218_s0 + $0x6e0] sm:$0xff]  ;;  %v659_v47 = vld [vmem:[%s5218_s0 + $0x7a8] sm:$0xff] }
 0x12f   :  { %1886 = vmatprep.mubr.f32.mxu0 %v555_v24  ;;  %3180 = vmatpush1.bf16.msra.mxu1 %v4274_v36  ;;  %v581_v36 = vld [vmem:[%s5218_s0 + $0x538] sm:$0xff]  ;;  %v658_v24 = vld [vmem:[%s5218_s0 + $0x7a0] sm:$0xff] }
 0x130   :  { %3165 = vmatprep.subr.bf16.mxu1 %v3466_v0 }
 0x131   :  { %1317 = vmatmul.mubr.f32.gmra.mrb[20].mxu1 %v548_v48  ;;  %v647_v48 = vld [vmem:[%s5218_s0 + $0x748] sm:$0xff] }
 0x132   :  { %1887 = vmatmul.mubr.f32.gmra.mrb[20].mxu0 %v554_v50  ;;  %1321 = vmatprep.mubr.f32.mxu1 %v562_v52  ;;  %v672_v50 = vld [vmem:[%s5218_s0 + $0x810] sm:$0xff]  ;;  %v671_v52 = vld [vmem:[%s5218_s0 + $0x808] sm:$0xff] }
 0x133   :  { %1891 = vmatprep.mubr.f32.mxu0 %v568_v30  ;;  %3181 = vmatpush1.bf16.msra.mxu1 %v4297_v42  ;;  %v3468_v42 = vmov 0.0   ;;  %v660_v30 = vld [vmem:[%s5218_s0 + $0x7b0] sm:$0xff] }
 0x134   :  { %3166 = vmatprep.subr.bf16.mxu1 %v3466_v0 }
 0x135   :  { %1322 = vmatmul.mubr.f32.gmra.mrb[22].mxu1 %v561_v53  ;;  %v685_v53 = vld [vmem:[%s5218_s0 + $0x878] sm:$0xff] }
 0x136   :  { %1892 = vmatmul.mubr.f32.gmra.mrb[22].mxu0 %v567_v54  ;;  %1326 = vmatprep.mubr.f32.mxu1 %v575_v55  ;;  %v684_v54 = vld [vmem:[%s5218_s0 + $0x870] sm:$0xff]  ;;  %v673_v55 = vld [vmem:[%s5218_s0 + $0x818] sm:$0xff] }
 0x137   :  { %1896 = vmatprep.mubr.f32.mxu0 %v581_v36  ;;  %3182 = vmatpush1.bf16.msra.mxu1 %v4320_v49  ;;  %v601_v49 = vld [vmem:[%s5218_s0 + $0x5d8] sm:$0xff]  ;;  %v698_v36 = vld [vmem:[%s5218_s0 + $0x8e0] sm:$0xff] }
 0x138   :  { %3167 = vmatprep.subr.bf16.mxu1 %v3466_v0 }
 0x139   :  { %1327 = vmatmul.mubr.f32.gmra.mrb[24].mxu1 %v574_v58  ;;  %v697_v58 = vld [vmem:[%s5218_s0 + $0x8d8] sm:$0xff] }
 0x13a   :  { %1897 = vmatmul.mubr.f32.gmra.mrb[24].mxu0 %v580_v59  ;;  %1331 = vmatprep.mubr.f32.mxu1 %v588_v60  ;;  %v686_v59 = vld [vmem:[%s5218_s0 + $0x880] sm:$0xff]  ;;  %v711_v60 = vld [vmem:[%s5218_s0 + $0x948] sm:$0xff] }
 0x13b   :  { %2780 = vmatprep.mubr.msk.f32.mxu0 %vm3467_vm0, %v3468_v42  ;;  %3183 = vmatpush1.bf16.msra.mxu1 %v4343_v56  ;;  %v614_v56 = vld [vmem:[%s5218_s0 + $0x640] sm:$0xff] }
 0x13c   :  { %3168 = vmatprep.subr.bf16.mxu1 %v3466_v0 }
 0x13d   :  { %1332 = vmatmul.mubr.f32.gmra.mrb[26].mxu1 %v587_v61  ;;  %v710_v61 = vld [vmem:[%s5218_s0 + $0x940] sm:$0xff] }
 0x13e   :  { %2781 = vmatmul.mubr.msk.f32.vlgmr.msra.gmra.mrb[0].mxu0 %vm746_vm1, %v426_v62  ;;  %1336 = vmatprep.mubr.f32.mxu1 %v601_v49  ;;  %v699_v62 = vld [vmem:[%s5218_s0 + $0x8e8] sm:$0xff]  ;;  %v724_v49 = vld [vmem:[%s5218_s0 + $0x9b0] sm:$0xff] }
 0x13f   :  { %2783 = vmatprep.mubr.msk.f32.mxu0 %vm3467_vm0, %v3468_v42  ;;  %3184 = vmatpush1.bf16.msra.mxu1 %v4366_v1  ;;  %v627_v1 = vld [vmem:[%s5218_s0 + $0x6a8] sm:$0xff] }
 0x140   :  { %3169 = vmatprep.subr.bf16.mxu1 %v3466_v0 }
 0x141   :  { %1337 = vmatmul.mubr.f32.gmra.mrb[28].mxu1 %v600_v2  ;;  %v723_v2 = vld [vmem:[%s5218_s0 + $0x9a8] sm:$0xff] }
 0x142   :  { %2784 = vmatmul.mubr.msk.f32.gmra.mrb[2].mxu0 %vm746_vm1, %v439_v3  ;;  %1341 = vmatprep.mubr.f32.mxu1 %v614_v56  ;;  %v712_v3 = vld [vmem:[%s5218_s0 + $0x950] sm:$0xff]  ;;  %v737_v56 = vld [vmem:[%s5218_s0 + $0xa18] sm:$0xff] }
 0x143   :  { %2786 = vmatprep.mubr.msk.f32.mxu0 %vm3467_vm0, %v3468_v42  ;;  %3185 = vmatpush1.bf16.msra.mxu1 %v4389_v8  ;;  %v640_v8 = vld [vmem:[%s5218_s0 + $0x710] sm:$0xff] }
 0x144   :  { %3170 = vmatprep.subr.bf16.mxu1 %v3466_v0  ;;  %v639_v0 = vld [vmem:[%s5218_s0 + $0x708] sm:$0xff] }
 0x145   :  { %1342 = vmatmul.mubr.f32.gmra.mrb[30].mxu1 %v613_v4  ;;  %v736_v4 = vld [vmem:[%s5218_s0 + $0xa10] sm:$0xff] }
 0x146   :  { %2787 = vmatmul.mubr.msk.f32.gmra.mrb[4].mxu0 %vm746_vm1, %v452_v5  ;;  %1346 = vmatprep.mubr.f32.mxu1 %v627_v1  ;;  %v725_v5 = vld [vmem:[%s5218_s0 + $0x9b8] sm:$0xff]  ;;  %v738_v1 = vld [vmem:[%s5218_s0 + $0xa20] sm:$0xff] }
 0x147   :  { %2789 = vmatprep.mubr.msk.f32.mxu0 %vm3467_vm0, %v3468_v42  ;;  %3186 = vmatpush1.bf16.msra.mxu1 %v4412_v15  ;;  %v652_v15 = vld [vmem:[%s5218_s0 + $0x770] sm:$0xff] }
 0x149   :  { %1347 = vmatmul.mubr.f32.gmra.mrb[32].mxu1 %v626_v7 }
 0x14a   :  { %2790 = vmatmul.mubr.msk.f32.gmra.mrb[6].mxu0 %vm746_vm1, %v465_v9  ;;  %1351 = vmatprep.mubr.f32.mxu1 %v640_v8 }
 0x14b   :  { %2792 = vmatprep.mubr.msk.f32.mxu0 %vm3467_vm0, %v3468_v42 }
 0x14d   :  { %1352 = vmatmul.mubr.f32.gmra.mrb[34].mxu1 %v639_v0 }
 0x14e   :  { %2793 = vmatmul.mubr.msk.f32.gmra.mrb[8].mxu0 %vm746_vm1, %v478_v10  ;;  %1356 = vmatprep.mubr.f32.mxu1 %v653_v11 }
 0x14f   :  { %2795 = vmatprep.mubr.msk.f32.mxu0 %vm3467_vm0, %v3468_v42 }
 0x151   :  { %1357 = vmatmul.mubr.f32.gmra.mrb[36].mxu1 %v652_v15 }
 0x152   :  { %2796 = vmatmul.mubr.msk.f32.gmra.mrb[10].mxu0 %vm746_vm1, %v491_v13  ;;  %1361 = vmatprep.mubr.f32.mxu1 %v666_v14 }
 0x153   :  { %2798 = vmatprep.mubr.msk.f32.mxu0 %vm3467_vm0, %v3468_v42 }
 0x155   :  { %1362 = vmatmul.mubr.f32.gmra.mrb[38].mxu1 %v665_v43 }
 0x156   :  { %2799 = vmatmul.mubr.msk.f32.gmra.mrb[12].mxu0 %vm746_vm1, %v504_v16  ;;  %1366 = vmatprep.mubr.f32.mxu1 %v679_v17 }
 0x157   :  { %2801 = vmatprep.mubr.msk.f32.mxu0 %vm3467_vm0, %v3468_v42 }
 0x159   :  { %1367 = vmatmul.mubr.f32.gmra.mrb[40].mxu1 %v678_v19 }
 0x15a   :  { %2802 = vmatmul.mubr.msk.f32.gmra.mrb[14].mxu0 %vm746_vm1, %v517_v20  ;;  %1371 = vmatprep.mubr.f32.mxu1 %v692_v51 }
 0x15b   :  { %2804 = vmatprep.mubr.msk.f32.mxu0 %vm3467_vm0, %v3468_v42 }
 0x15d   :  { %1372 = vmatmul.mubr.f32.gmra.mrb[42].mxu1 %v691_v21 }
 0x15e   :  { %2805 = vmatmul.mubr.msk.f32.gmra.mrb[16].mxu0 %vm746_vm1, %v530_v22  ;;  %1376 = vmatprep.mubr.f32.mxu1 %v705_v23 }
 0x15f   :  { %2807 = vmatprep.mubr.msk.f32.mxu0 %vm3467_vm0, %v3468_v42 }
 0x161   :  { %1377 = vmatmul.mubr.f32.gmra.mrb[44].mxu1 %v704_v25 }
 0x162   :  { %2808 = vmatmul.mubr.msk.f32.gmra.mrb[18].mxu0 %vm746_vm1, %v543_v26  ;;  %1381 = vmatprep.mubr.f32.mxu1 %v718_v57 }
 0x163   :  { %2810 = vmatprep.mubr.msk.f32.mxu0 %vm3467_vm0, %v3468_v42 }
 0x165   :  { %1382 = vmatmul.mubr.f32.gmra.mrb[46].mxu1 %v717_v27 }
 0x166   :  { %2811 = vmatmul.mubr.msk.f32.gmra.mrb[20].mxu0 %vm746_vm1, %v556_v28  ;;  %1386 = vmatprep.mubr.f32.mxu1 %v731_v29 }
 0x167   :  { %2813 = vmatprep.mubr.msk.f32.mxu0 %vm3467_vm0, %v3468_v42 }
 0x169   :  { %1387 = vmatmul.mubr.f32.gmra.mrb[48].mxu1 %v730_v31 }
 0x16a   :  { %2814 = vmatmul.mubr.msk.f32.gmra.mrb[22].mxu0 %vm746_vm1, %v569_v32  ;;  %1901 = vmatprep.mubr.f32.mxu1 %v594_v63 }
 0x16b   :  { %2816 = vmatprep.mubr.msk.f32.mxu0 %vm3467_vm0, %v3468_v42 }
 0x16d   :  { %1902 = vmatmul.mubr.f32.vlgmr.msra.gmra.mrb[50].mxu1 %v593_v33 }
 0x16e   :  { %2817 = vmatmul.mubr.msk.f32.gmra.mrb[24].mxu0 %vm746_vm1, %v582_v34  ;;  %1906 = vmatprep.mubr.f32.mxu1 %v607_v35 }
 0x16f   :  { %2819 = vmatprep.mubr.msk.f32.mxu0 %vm3467_vm0, %v3468_v42 }
 0x171   :  { %1907 = vmatmul.mubr.f32.gmra.mrb[52].mxu1 %v606_v6 }
 0x172   :  { %2820 = vmatmul.mubr.msk.f32.gmra.mrb[50].mxu0 %vm746_vm1, %v595_v37  ;;  %1911 = vmatprep.mubr.f32.mxu1 %v620_v38 }
 0x173   :  { %2822 = vmatprep.mubr.msk.f32.mxu0 %vm3467_vm0, %v3468_v42 }
 0x175   :  { %1912 = vmatmul.mubr.f32.gmra.mrb[54].mxu1 %v619_v39 }
 0x176   :  { %2823 = vmatmul.mubr.msk.f32.gmra.mrb[52].mxu0 %vm746_vm1, %v608_v12  ;;  %1916 = vmatprep.mubr.f32.mxu1 %v633_v40 }
 0x177   :  { %2825 = vmatprep.mubr.msk.f32.mxu0 %vm3467_vm0, %v3468_v42 }
 0x179   :  { %1917 = vmatmul.mubr.f32.gmra.mrb[56].mxu1 %v632_v41 }
 0x17a   :  { %2826 = vmatmul.mubr.msk.f32.gmra.mrb[54].mxu0 %vm746_vm1, %v621_v44  ;;  %1921 = vmatprep.mubr.f32.mxu1 %v646_v18 }
 0x17b   :  { %2828 = vmatprep.mubr.msk.f32.mxu0 %vm3467_vm0, %v3468_v42 }
 0x17d   :  { %1922 = vmatmul.mubr.f32.gmra.mrb[58].mxu1 %v645_v45 }
 0x17e   :  { %2829 = vmatmul.mubr.msk.f32.gmra.mrb[56].mxu0 %vm746_vm1, %v634_v46  ;;  %1926 = vmatprep.mubr.f32.mxu1 %v659_v47 }
 0x17f   :  { %2831 = vmatprep.mubr.msk.f32.mxu0 %vm3467_vm0, %v3468_v42 }
 0x181   :  { %1927 = vmatmul.mubr.f32.gmra.mrb[60].mxu1 %v658_v24 }
 0x182   :  { %2832 = vmatmul.mubr.msk.f32.gmra.mrb[58].mxu0 %vm746_vm1, %v647_v48  ;;  %1931 = vmatprep.mubr.f32.mxu1 %v672_v50 }
 0x183   :  { %2834 = vmatprep.mubr.msk.f32.mxu0 %vm3467_vm0, %v3468_v42 }
 0x185   :  { %1932 = vmatmul.mubr.f32.gmra.mrb[62].mxu1 %v671_v52 }
 0x186   :  { %2835 = vmatmul.mubr.msk.f32.gmra.mrb[60].mxu0 %vm746_vm1, %v660_v30  ;;  %1936 = vmatprep.mubr.f32.mxu1 %v685_v53  ;;  %v5058_v53 = vld [vmem:[%s5219_s2] ss:$0 sm:$0xff] }
 0x187   :  { %2837 = vmatprep.mubr.msk.f32.mxu0 %vm3467_vm0, %v3468_v42 }
 0x189   :  { %1937 = vmatmul.mubr.f32.gmra.mrb[64].mxu1 %v684_v54 }
 0x18a   :  { %2838 = vmatmul.mubr.msk.f32.gmra.mrb[62].mxu0 %vm746_vm1, %v673_v55  ;;  %1941 = vmatprep.mubr.f32.mxu1 %v698_v36 }
 0x18b   :  { %2840 = vmatprep.mubr.msk.f32.mxu0 %vm3467_vm0, %v3468_v42 }
 0x18d   :  { %1942 = vmatmul.mubr.f32.gmra.mrb[66].mxu1 %v697_v58 }
 0x18e   :  { %2841 = vmatmul.mubr.msk.f32.gmra.mrb[64].mxu0 %vm746_vm1, %v686_v59  ;;  %1946 = vmatprep.mubr.f32.mxu1 %v711_v60 }
 0x18f   :  { %2843 = vmatprep.mubr.msk.f32.mxu0 %vm3467_vm0, %v3468_v42 }
 0x191   :  { %1947 = vmatmul.mubr.f32.gmra.mrb[68].mxu1 %v710_v61 }
 0x192   :  { %2844 = vmatmul.mubr.msk.f32.gmra.mrb[66].mxu0 %vm746_vm1, %v699_v62  ;;  %1951 = vmatprep.mubr.f32.mxu1 %v724_v49 }
 0x193   :  { %2846 = vmatprep.mubr.msk.f32.mxu0 %vm3467_vm0, %v3468_v42 }
 0x195   :  { %1952 = vmatmul.mubr.f32.gmra.mrb[70].mxu1 %v723_v2 }
 0x196   :  { %2847 = vmatmul.mubr.msk.f32.gmra.mrb[68].mxu0 %vm746_vm1, %v712_v3  ;;  %1956 = vmatprep.mubr.f32.mxu1 %v737_v56 }
 0x197   :  { %2849 = vmatprep.mubr.msk.f32.mxu0 %vm3467_vm0, %v3468_v42 }
 0x199   :  { %1957 = vmatmul.mubr.f32.gmra.mrb[72].mxu1 %v736_v4 }
 0x19a   :  { %2850 = vmatmul.mubr.msk.f32.gmra.mrb[70].mxu0 %vm746_vm1, %v725_v5 }
 0x19b   :  { %2852 = vmatprep.mubr.msk.f32.mxu0 %vm3467_vm0, %v3468_v42 }
 0x19e   :  { %2853 = vmatmul.mubr.msk.f32.gmra.mrb[72].mxu0 %vm746_vm1, %v738_v1 }
 0x1ad   :  { %v1713_v7 = vpop.f32.mrb[26].mxu0 }
 0x1ae   :  { %v1715_v9 = vpop.f32.mrb[27].mxu0 }
 0x1b1   :  { %v5019_v8 = vpop.f32.mrb[28].mxu0 }
 0x1b2   :  { %v1720_v0 = vpop.f32.mrb[29].mxu0 }
 0x1b5   :  { %v5021_v10 = vpop.f32.mrb[30].mxu0 }
 0x1b6   :  { %v1725_v11 = vpop.f32.mrb[31].mxu0 }
 0x1b9   :  { %v5023_v15 = vpop.f32.mrb[32].mxu0 }
 0x1ba   :  { %v1730_v13 = vpop.f32.mrb[33].mxu0 }
 0x1bd   :  { %v5025_v14 = vpop.f32.mrb[34].mxu0 }
 0x1be   :  { %v1735_v42 = vpop.f32.mrb[35].mxu0 }
 0x1c1   :  { %v5027_v43 = vpop.f32.mrb[36].mxu0 }
 0x1c2   :  { %v1740_v16 = vpop.f32.mrb[37].mxu0 }
 0x1c5   :  { %v5029_v17 = vpop.f32.mrb[38].mxu0 }
 0x1c6   :  { %v1745_v19 = vpop.f32.mrb[39].mxu0 }
 0x1c9   :  { %v5031_v20 = vpop.f32.mrb[40].mxu0 }
 0x1ca   :  { %v1750_v51 = vpop.f32.mrb[41].mxu0 }
 0x1cd   :  { %v5033_v21 = vpop.f32.mrb[42].mxu0 }
 0x1ce   :  { %v1755_v22 = vpop.f32.mrb[43].mxu0 }
 0x1d1   :  { %v5035_v23 = vpop.f32.mrb[44].mxu0 }
 0x1d2   :  { %v1760_v25 = vpop.f32.mrb[45].mxu0 }
 0x1d5   :  { %v5037_v26 = vpop.f32.mrb[46].mxu0 }
 0x1d6   :  { %v1765_v57 = vpop.f32.mrb[47].mxu0 }
 0x1d9   :  { %v5039_v27 = vpop.f32.mrb[48].mxu0 }
 0x1da   :  { %v1770_v28 = vpop.f32.mrb[49].mxu0 }
 0x1dc   :  { %v1268_v29 = vpop.f32.mrb[0].mxu1 }
 0x1dd   :  { %v1270_v31 = vpop.f32.mrb[1].mxu1  ;;  %v3187_v36 = vadd.f32 %v5058_v53, %v1268_v29 }
 0x1e0   :  { %v1273_v32 = vpop.f32.mrb[2].mxu1 }
 0x1e1   :  { %v1275_v63 = vpop.f32.mrb[3].mxu1  ;;  %v3189_v2 = vadd.f32 %v5058_v53, %v1273_v32 }
 0x1e4   :  { %v1278_v33 = vpop.f32.mrb[4].mxu1 }
 0x1e5   :  { %v1280_v34 = vpop.f32.mrb[5].mxu1  ;;  %v3191_v13 = vadd.f32 %v5058_v53, %v1278_v33 }
 0x1e8   :  { %v1283_v35 = vpop.f32.mrb[6].mxu1 }
 0x1e9   :  { %v1285_v6 = vpop.f32.mrb[7].mxu1  ;;  %v3193_v28 = vadd.f32 %v5058_v53, %v1283_v35 }
 0x1ec   :  { %v1288_v37 = vpop.f32.mrb[8].mxu1 }
 0x1ed   :  { %v1290_v38 = vpop.f32.mrb[9].mxu1 }
 0x1ee   :  { %v3195_v38 = vadd.f32 %v5058_v53, %v1288_v37 }
 0x1f0   :  { %v5041_v39 = vpop.f32.mrb[10].mxu1 }
 0x1f1   :  { %v1295_v12 = vpop.f32.mrb[11].mxu1 }
 0x1f4   :  { %v5043_v40 = vpop.f32.mrb[12].mxu1 }
 0x1f5   :  { %v1300_v41 = vpop.f32.mrb[13].mxu1 }
 0x1f8   :  { %v5045_v44 = vpop.f32.mrb[14].mxu1 }
 0x1f9   :  { %v1305_v18 = vpop.f32.mrb[15].mxu1 }
 0x1fc   :  { %v5047_v45 = vpop.f32.mrb[16].mxu1 }
 0x1fd   :  { %v1310_v46 = vpop.f32.mrb[17].mxu1 }
 0x200   :  { %v5049_v47 = vpop.f32.mrb[18].mxu1 }
 0x201   :  { %v1315_v24 = vpop.f32.mrb[19].mxu1 }
 0x204   :  { %v5051_v48 = vpop.f32.mrb[20].mxu1 }
 0x205   :  { %v1320_v50 = vpop.f32.mrb[21].mxu1 }
 0x208   :  { %v5053_v52 = vpop.f32.mrb[22].mxu1 }
 0x209   :  { %v1325_v30 = vpop.f32.mrb[23].mxu1 }
 0x20a   :  { %v3197_v30 = vadd.f32 %v5058_v53, %v5041_v39 }
 0x20c   :  { %v5060_v54 = vpop.f32.mrb[24].mxu1 }
 0x20d   :  { %v1330_v55 = vpop.f32.mrb[25].mxu1 }
 0x210   :  { %v1333_v58 = vpop.f32.mrb[26].mxu1 }
 0x211   :  { %v2028_v59 = vpop.f32.mrb[0].mxu0  ;;  %v3213_v60 = vadd.f32 %v5058_v53, %v1333_v58  ;;  %v1335_v62 = vpop.f32.mrb[27].mxu1 }
 0x212   :  { %v3188_v61 = vadd.f32 %v3187_v36, %v2028_v59  ;;  %v2782_v49 = vpop.f32.mrb[1].mxu0  ;;  %v3199_v62 = vadd.f32 %v5058_v53, %v5043_v40 }
 0x213   :  { %v5065_v56 = vadd.f32 %v3213_v60, %v1713_v7 }
 0x214   :  { %v2152_v3 = vmax.f32 %v3188_v61, 0.0  ;;  %v1338_v4 = vpop.f32.mrb[28].mxu1 }
 0x215   :  { %v2033_v5 = vpop.f32.mrb[2].mxu0  ;;  %v3217_v1 = vadd.f32 %v5058_v53, %v1338_v4  ;;  %v1340_v0 = vpop.f32.mrb[29].mxu1 }
 0x216   :  { %2177 = vst [vmem:[%s5220_s3] sm:$0xff] %v2152_v3  ;;  %v3190_v9 = vadd.f32 %v3189_v2, %v2033_v5  ;;  %v2785_v11 = vpop.f32.mrb[3].mxu0 }
 0x217   :  { %v5073_v16 = vadd.f32 %v3217_v1, %v5019_v8 }
 0x218   :  { %v2153_v42 = vmax.f32 %v3190_v9, 0.0  ;;  %v1343_v19 = vpop.f32.mrb[30].mxu1  ;;  %v3201_v9 = vadd.f32 %v5058_v53, %v5045_v44 }
 0x219   :  { %v2038_v7 = vpop.f32.mrb[4].mxu0  ;;  %v3221_v51 = vadd.f32 %v5058_v53, %v1343_v19  ;;  %v1345_v25 = vpop.f32.mrb[31].mxu1 }
 0x21a   :  { %2178 = vst [vmem:[%s5220_s3 + $0x8] sm:$0xff] %v2153_v42  ;;  %v3192_v22 = vadd.f32 %v3191_v13, %v2038_v7  ;;  %v2788_v57 = vpop.f32.mrb[5].mxu0 }
 0x21b   :  { %v5081_v31 = vadd.f32 %v3221_v51, %v5021_v10  ;;  %v3203_v51 = vadd.f32 %v5058_v53, %v5047_v45 }
 0x21c   :  { %v2154_v29 = vmax.f32 %v3192_v22, 0.0  ;;  %v1348_v32 = vpop.f32.mrb[32].mxu1 }
 0x21d   :  { %v2043_v8 = vpop.f32.mrb[6].mxu0  ;;  %v3225_v63 = vadd.f32 %v5058_v53, %v1348_v32  ;;  %v1350_v34 = vpop.f32.mrb[33].mxu1 }
 0x21e   :  { %2179 = vst [vmem:[%s5220_s3 + $0x10] sm:$0xff] %v2154_v29  ;;  %v3194_v33 = vadd.f32 %v3193_v28, %v2043_v8  ;;  %v2791_v6 = vpop.f32.mrb[7].mxu0  ;;  %v3205_v8 = vadd.f32 %v5058_v53, %v5049_v47 }
 0x21f   :  { %v5089_v35 = vadd.f32 %v3225_v63, %v5023_v15 }
 0x220   :  { %v2155_v12 = vmax.f32 %v3194_v33, 0.0  ;;  %v1353_v41 = vpop.f32.mrb[34].mxu1 }
 0x221   :  { %v2048_v10 = vpop.f32.mrb[8].mxu0  ;;  %v3229_v18 = vadd.f32 %v5058_v53, %v1353_v41  ;;  %v1355_v24 = vpop.f32.mrb[35].mxu1  ;;  %v3207_v41 = vadd.f32 %v5058_v53, %v5051_v48 }
 0x222   :  { %2180 = vst [vmem:[%s5220_s3 + $0x18] sm:$0xff] %v2155_v12  ;;  %v3196_v46 = vadd.f32 %v3195_v38, %v2048_v10  ;;  %v2794_v50 = vpop.f32.mrb[9].mxu0 }
 0x223   :  { %v5098_v37 = vadd.f32 %v3229_v18, %v5025_v14 }
 0x224   :  { %v2156_v55 = vmax.f32 %v3196_v46, 0.0  ;;  %v1358_v15 = vpop.f32.mrb[36].mxu1 }
 0x225   :  { %v2053_v36 = vpop.f32.mrb[10].mxu0  ;;  %v3233_v58 = vadd.f32 %v5058_v53, %v1358_v15  ;;  %v1360_v60 = vpop.f32.mrb[37].mxu1 }
 0x226   :  { %2181 = vst [vmem:[%s5220_s3 + $0x20] sm:$0xff] %v2156_v55  ;;  %v3198_v59 = vadd.f32 %v3197_v30, %v2053_v36  ;;  %v2797_v61 = vpop.f32.mrb[11].mxu0  ;;  %v3209_v55 = vadd.f32 %v5058_v53, %v5053_v52 }
 0x227   :  { %v5107_v39 = vadd.f32 %v3233_v58, %v5027_v43 }
 0x228   :  { %v2157_v49 = vmax.f32 %v3198_v59, 0.0  ;;  %v1363_v14 = vpop.f32.mrb[38].mxu1 }
 0x229   :  { %v2058_v2 = vpop.f32.mrb[12].mxu0  ;;  %v3237_v3 = vadd.f32 %v5058_v53, %v1363_v14  ;;  %v1365_v5 = vpop.f32.mrb[39].mxu1 }
 0x22a   :  { %2182 = vst [vmem:[%s5220_s3 + $0x28] sm:$0xff] %v2157_v49  ;;  %v3200_v4 = vadd.f32 %v3199_v62, %v2058_v2  ;;  %v2800_v1 = vpop.f32.mrb[13].mxu0  ;;  %v3211_v62 = vadd.f32 %v5058_v53, %v5060_v54 }
 0x22b   :  { %v5116_v40 = vadd.f32 %v3237_v3, %v5029_v17 }
 0x22c   :  { %v2158_v0 = vmax.f32 %v3200_v4, 0.0  ;;  %v1368_v43 = vpop.f32.mrb[40].mxu1 }
 0x22d   :  { %v2063_v11 = vpop.f32.mrb[14].mxu0  ;;  %v3241_v13 = vadd.f32 %v5058_v53, %v1368_v43  ;;  %v1370_v19 = vpop.f32.mrb[41].mxu1 }
 0x22e   :  { %2183 = vst [vmem:[%s5220_s3 + $0x30] sm:$0xff] %v2158_v0  ;;  %v3202_v42 = vadd.f32 %v3201_v9, %v2063_v11  ;;  %v2803_v7 = vpop.f32.mrb[15].mxu0 }
 0x22f   :  { %v5125_v44 = vadd.f32 %v3241_v13, %v5031_v20 }
 0x230   :  { %v2159_v22 = vmax.f32 %v3202_v42, 0.0  ;;  %v1373_v17 = vpop.f32.mrb[42].mxu1 }
 0x231   :  { %v2068_v25 = vpop.f32.mrb[16].mxu0  ;;  %v3245_v57 = vadd.f32 %v5058_v53, %v1373_v17  ;;  %v1375_v29 = vpop.f32.mrb[43].mxu1 }
 0x232   :  { %2184 = vst [vmem:[%s5220_s3 + $0x38] sm:$0xff] %v2159_v22  ;;  %v3204_v28 = vadd.f32 %v3203_v51, %v2068_v25  ;;  %v2806_v32 = vpop.f32.mrb[17].mxu0 }
 0x233   :  { %v5134_v45 = vadd.f32 %v3245_v57, %v5033_v21 }
 0x234   :  { %v2160_v63 = vmax.f32 %v3204_v28, 0.0  ;;  %v1378_v20 = vpop.f32.mrb[44].mxu1 }
 0x235   :  { %v2073_v33 = vpop.f32.mrb[18].mxu0  ;;  %v3249_v34 = vadd.f32 %v5058_v53, %v1378_v20  ;;  %v1380_v38 = vpop.f32.mrb[45].mxu1 }
 0x236   :  { %2185 = vst [vmem:[%s5220_s3 + $0x40] sm:$0xff] %v2160_v63  ;;  %v3206_v6 = vadd.f32 %v3205_v8, %v2073_v33  ;;  %v2809_v12 = vpop.f32.mrb[19].mxu0 }
 0x237   :  { %v5143_v47 = vadd.f32 %v3249_v34, %v5035_v23 }
 0x238   :  { %v2161_v10 = vmax.f32 %v3206_v6, 0.0  ;;  %v1383_v21 = vpop.f32.mrb[46].mxu1 }
 0x239   :  { %v2078_v18 = vpop.f32.mrb[20].mxu0  ;;  %v3253_v46 = vadd.f32 %v5058_v53, %v1383_v21  ;;  %v1385_v50 = vpop.f32.mrb[47].mxu1 }
 0x23a   :  { %2186 = vst [vmem:[%s5220_s3 + $0x48] sm:$0xff] %v2161_v10  ;;  %v3208_v24 = vadd.f32 %v3207_v41, %v2078_v18  ;;  %v2812_v30 = vpop.f32.mrb[21].mxu0 }
 0x23b   :  { %v5152_v48 = vadd.f32 %v3253_v46, %v5037_v26 }
 0x23c   :  { %v2162_v15 = vmax.f32 %v3208_v24, 0.0  ;;  %v1388_v23 = vpop.f32.mrb[48].mxu1 }
 0x23d   :  { %v2083_v36 = vpop.f32.mrb[22].mxu0  ;;  %v3257_v58 = vadd.f32 %v5058_v53, %v1388_v23  ;;  %v1390_v60 = vpop.f32.mrb[49].mxu1 }
 0x23e   :  { %2187 = vst [vmem:[%s5220_s3 + $0x50] sm:$0xff] %v2162_v15  ;;  %v3210_v59 = vadd.f32 %v3209_v55, %v2083_v36  ;;  %v2815_v61 = vpop.f32.mrb[23].mxu0 }
 0x23f   :  { %v5161_v52 = vadd.f32 %v3257_v58, %v5039_v27 }
 0x240   :  { %v2163_v49 = vmax.f32 %v3210_v59, 0.0  ;;  %v1903_v26 = vpop.f32.mrb[50].mxu1 }
 0x241   :  { %v2088_v14 = vpop.f32.mrb[24].mxu0  ;;  %v3215_v2 = vadd.f32 %v5065_v56, %v1903_v26  ;;  %v1905_v5 = vpop.f32.mrb[51].mxu1 }
 0x242   :  { %2188 = vst [vmem:[%s5220_s3 + $0x58] sm:$0xff] %v2163_v49  ;;  %v3212_v3 = vadd.f32 %v3211_v62, %v2088_v14  ;;  %v2818_v4 = vpop.f32.mrb[25].mxu0 }
 0x244   :  { %v2164_v1 = vmax.f32 %v3212_v3, 0.0  ;;  %v1908_v9 = vpop.f32.mrb[52].mxu1 }
 0x245   :  { %v2093_v0 = vpop.f32.mrb[50].mxu0  ;;  %v3219_v27 = vadd.f32 %v5073_v16, %v1908_v9  ;;  %v1910_v43 = vpop.f32.mrb[53].mxu1 }
 0x246   :  { %2189 = vst [vmem:[%s5220_s3 + $0x60] sm:$0xff] %v2164_v1  ;;  %v3216_v53 = vadd.f32 %v3215_v2, %v2093_v0  ;;  %v2821_v54 = vpop.f32.mrb[51].mxu0 }
 0x248   :  { %v2165_v11 = vmax.f32 %v3216_v53, 0.0  ;;  %v1913_v13 = vpop.f32.mrb[54].mxu1 }
 0x249   :  { %v2098_v42 = vpop.f32.mrb[52].mxu0  ;;  %v3223_v56 = vadd.f32 %v5081_v31, %v1913_v13  ;;  %v1915_v51 = vpop.f32.mrb[55].mxu1 }
 0x24a   :  { %2190 = vst [vmem:[%s5220_s3 + $0x68] sm:$0xff] %v2165_v11  ;;  %v3220_v19 = vadd.f32 %v3219_v27, %v2098_v42  ;;  %v2824_v7 = vpop.f32.mrb[53].mxu0 }
 0x24c   :  { %v2166_v22 = vmax.f32 %v3220_v19, 0.0  ;;  %v1918_v17 = vpop.f32.mrb[56].mxu1 }
 0x24d   :  { %v2103_v25 = vpop.f32.mrb[54].mxu0  ;;  %v3227_v16 = vadd.f32 %v5089_v35, %v1918_v17  ;;  %v1920_v29 = vpop.f32.mrb[57].mxu1 }
 0x24e   :  { %2191 = vst [vmem:[%s5220_s3 + $0x70] sm:$0xff] %v2166_v22  ;;  %v3224_v57 = vadd.f32 %v3223_v56, %v2103_v25  ;;  %v2827_v28 = vpop.f32.mrb[55].mxu0 }
 0x250   :  { %v2167_v32 = vmax.f32 %v3224_v57, 0.0  ;;  %v1923_v8 = vpop.f32.mrb[58].mxu1 }
 0x251   :  { %v2108_v63 = vpop.f32.mrb[56].mxu0  ;;  %v3231_v31 = vadd.f32 %v5098_v37, %v1923_v8  ;;  %v1925_v34 = vpop.f32.mrb[59].mxu1 }
 0x252   :  { %2192 = vst [vmem:[%s5220_s3 + $0x78] sm:$0xff] %v2167_v32  ;;  %v3228_v20 = vadd.f32 %v3227_v16, %v2108_v63  ;;  %v2830_v33 = vpop.f32.mrb[57].mxu0 }
 0x254   :  { %v2168_v6 = vmax.f32 %v3228_v20, 0.0  ;;  %v1928_v38 = vpop.f32.mrb[60].mxu1 }
 0x255   :  { %v2113_v12 = vpop.f32.mrb[58].mxu0  ;;  %v3235_v35 = vadd.f32 %v5107_v39, %v1928_v38  ;;  %v1930_v21 = vpop.f32.mrb[61].mxu1 }
 0x256   :  { %2193 = vst [vmem:[%s5220_s3 + $0x80] sm:$0xff] %v2168_v6  ;;  %v3232_v41 = vadd.f32 %v3231_v31, %v2113_v12  ;;  %v2833_v10 = vpop.f32.mrb[59].mxu0 }
 0x258   :  { %v2169_v18 = vmax.f32 %v3232_v41, 0.0  ;;  %v1933_v46 = vpop.f32.mrb[62].mxu1 }
 0x259   :  { %v2118_v24 = vpop.f32.mrb[60].mxu0  ;;  %v3239_v37 = vadd.f32 %v5116_v40, %v1933_v46  ;;  %v1935_v55 = vpop.f32.mrb[63].mxu1 }
 0x25a   :  { %2194 = vst [vmem:[%s5220_s3 + $0x88] sm:$0xff] %v2169_v18  ;;  %v3236_v50 = vadd.f32 %v3235_v35, %v2118_v24  ;;  %v2836_v30 = vpop.f32.mrb[61].mxu0 }
 0x25c   :  { %v2170_v15 = vmax.f32 %v3236_v50, 0.0  ;;  %v1938_v23 = vpop.f32.mrb[64].mxu1 }
 0x25d   :  { %v2123_v36 = vpop.f32.mrb[62].mxu0  ;;  %v3243_v39 = vadd.f32 %v5125_v44, %v1938_v23  ;;  %v1940_v60 = vpop.f32.mrb[65].mxu1 }
 0x25e   :  { %2195 = vst [vmem:[%s5220_s3 + $0x90] sm:$0xff] %v2170_v15  ;;  %v3240_v58 = vadd.f32 %v3239_v37, %v2123_v36  ;;  %v2839_v59 = vpop.f32.mrb[63].mxu0 }
 0x260   :  { %v2171_v61 = vmax.f32 %v3240_v58, 0.0  ;;  %v1943_v62 = vpop.f32.mrb[66].mxu1 }
 0x261   :  { %v2128_v49 = vpop.f32.mrb[64].mxu0  ;;  %v3247_v40 = vadd.f32 %v5134_v45, %v1943_v62  ;;  %v1945_v2 = vpop.f32.mrb[67].mxu1 }
 0x262   :  { %2196 = vst [vmem:[%s5220_s3 + $0x98] sm:$0xff] %v2171_v61  ;;  %v3244_v26 = vadd.f32 %v3243_v39, %v2128_v49  ;;  %v2842_v14 = vpop.f32.mrb[65].mxu0 }
 0x264   :  { %v2172_v3 = vmax.f32 %v3244_v26, 0.0  ;;  %v1948_v4 = vpop.f32.mrb[68].mxu1 }
 0x265   :  { %v2133_v5 = vpop.f32.mrb[66].mxu0  ;;  %v3251_v44 = vadd.f32 %v5143_v47, %v1948_v4  ;;  %v1950_v0 = vpop.f32.mrb[69].mxu1 }
 0x266   :  { %2197 = vst [vmem:[%s5220_s3 + $0xa0] sm:$0xff] %v2172_v3  ;;  %v3248_v1 = vadd.f32 %v3247_v40, %v2133_v5  ;;  %v2845_v9 = vpop.f32.mrb[67].mxu0 }
 0x268   :  { %v2173_v27 = vmax.f32 %v3248_v1, 0.0  ;;  %v1953_v53 = vpop.f32.mrb[70].mxu1 }
 0x269   :  { %v2138_v54 = vpop.f32.mrb[68].mxu0  ;;  %v3255_v45 = vadd.f32 %v5152_v48, %v1953_v53  ;;  %v1955_v13 = vpop.f32.mrb[71].mxu1 }
 0x26a   :  { %2198 = vst [vmem:[%s5220_s3 + $0xa8] sm:$0xff] %v2173_v27  ;;  %v3252_v43 = vadd.f32 %v3251_v44, %v2138_v54  ;;  %v2848_v11 = vpop.f32.mrb[69].mxu0 }
 0x26c   :  { %v2174_v42 = vmax.f32 %v3252_v43, 0.0  ;;  %v1958_v56 = vpop.f32.mrb[72].mxu1 }
 0x26d   :  { %v2143_v19 = vpop.f32.mrb[70].mxu0  ;;  %v3259_v47 = vadd.f32 %v5161_v52, %v1958_v56  ;;  %v1960_v22 = vpop.f32.mrb[73].mxu1 }
 0x26e   :  { %2199 = vst [vmem:[%s5220_s3 + $0xb0] sm:$0xff] %v2174_v42  ;;  %v3256_v7 = vadd.f32 %v3255_v45, %v2143_v19  ;;  %v2851_v51 = vpop.f32.mrb[71].mxu0 }
 0x270   :  { %v2175_v17 = vmax.f32 %v3256_v7, 0.0 }
 0x271   :  { %v2148_v25 = vpop.f32.mrb[72].mxu0 }
 0x272   :  { %2200 = vst [vmem:[%s5220_s3 + $0xb8] sm:$0xff] %v2175_v17  ;;  %v3260_v48 = vadd.f32 %v3259_v47, %v2148_v25  ;;  %v2854_v16 = vpop.f32.mrb[73].mxu0 }
 0x274   :  { %v2176_v57 = vmax.f32 %v3260_v48, 0.0 }
 0x276   :  { %2201 = vst [vmem:[%s5220_s3 + $0xc0] sm:$0xff] %v2176_v57 }

// kernel: dann_source_forward.7
= control target key start
LH: loop header
LB: loop body
LE: loop exit
PB: predicated region body
PF: predicated region fallthrough
CT: control target
= control target key end

     0   :  { %vm4538_vm0 = vmmov 0   ;;  %s5940_s1 = inlined_call_operand.vmem [shape: bf16[3200,256], index: 1, kind: input, shape index: {}]   ;;  %s5941_s0 = inlined_call_operand.vmem [shape: f32[8,3200], index: 0, kind: input, shape index: {}]   ;;  %s5942_s3 = inlined_call_operand.vmem [shape: bf16[256,128], index: 3, kind: input, shape index: {}]   ;;  %s5943_s2 = inlined_call_operand.vmem [shape: f32[1,256], index: 2, kind: input, shape index: {}]   ;;  %s5944_s5 = inlined_call_operand.vmem [shape: bf16[128,128], index: 5, kind: input, shape index: {}]   ;;  %s5945_s4 = inlined_call_operand.vmem [shape: f32[1,128], index: 4, kind: input, shape index: {}]   ;;  %s5946_s6 = inlined_call_operand.vmem [shape: f32[1,128], index: 6, kind: input, shape index: {}]   ;;  %s5947_s7 = inlined_call_operand.vmem [shape: f32[8,128], index: 7, kind: output, shape index: {}]  }
   0x1   :  { %v3936_v0 = vld [vmem:[%s5940_s1 + $0x4] ss:$8 sps:$4 sm:$0xff]   ;;  %v3940_v2 = vld [vmem:[%s5940_s1] ss:$8 sps:$4 sm:$0xff]   ;;  %v3942_v4 = vld [vmem:[%s5940_s1 + $0x14] ss:$8 sps:$4 sm:$0xff]  }
   0x2   :  { %v3938_v1 = vld [vmem:[%s5940_s1 + $0x604] ss:$8 sps:$4 sm:$0xff]   ;;  %2652 = vmatprep.subr.bf16.mxu1 %v3936_v0  ;;  %v3941_v3 = vld [vmem:[%s5940_s1 + $0x600] ss:$8 sps:$4 sm:$0xff]   ;;  %v3944_v5 = vld [vmem:[%s5940_s1 + $0x614] ss:$8 sps:$4 sm:$0xff]  }
   0x3   :  { %3036 = vmatprep.subr.bf16.mxu0 %v3938_v1  ;;  %2654 = vmatpush1.bf16.msra.mxu1 %v3940_v2  ;;  %v3946_v6 = vld [vmem:[%s5940_s1 + $0x10] ss:$8 sps:$4 sm:$0xff]   ;;  %v3948_v8 = vld [vmem:[%s5940_s1 + $0x24] ss:$8 sps:$4 sm:$0xff]   ;;  %v3952_v10 = vld [vmem:[%s5940_s1 + $0x20] ss:$8 sps:$4 sm:$0xff]  }
   0x4   :  { %3038 = vmatpush1.bf16.msra.mxu0 %v3941_v3  ;;  %2656 = vmatprep.subr.bf16.mxu1 %v3942_v4  ;;  %v3947_v7 = vld [vmem:[%s5940_s1 + $0x610] ss:$8 sps:$4 sm:$0xff]   ;;  %v3950_v9 = vld [vmem:[%s5940_s1 + $0x624] ss:$8 sps:$4 sm:$0xff]   ;;  %v3953_v11 = vld [vmem:[%s5940_s1 + $0x620] ss:$8 sps:$4 sm:$0xff]  }
   0x5   :  { %3040 = vmatprep.subr.bf16.mxu0 %v3944_v5  ;;  %v3954_v12 = vld [vmem:[%s5940_s1 + $0x34] ss:$8 sps:$4 sm:$0xff]   ;;  %v3958_v14 = vld [vmem:[%s5940_s1 + $0x30] ss:$8 sps:$4 sm:$0xff]   ;;  %v3960_v16 = vld [vmem:[%s5940_s1 + $0x44] ss:$8 sps:$4 sm:$0xff]  }
   0x6   :  { %v3956_v13 = vld [vmem:[%s5940_s1 + $0x634] ss:$8 sps:$4 sm:$0xff]   ;;  %v3959_v15 = vld [vmem:[%s5940_s1 + $0x630] ss:$8 sps:$4 sm:$0xff]   ;;  %v3962_v17 = vld [vmem:[%s5940_s1 + $0x644] ss:$8 sps:$4 sm:$0xff]  }
   0x7   :  { %2658 = vmatpush1.bf16.msra.mxu1 %v3946_v6  ;;  %v3964_v18 = vld [vmem:[%s5940_s1 + $0x40] ss:$8 sps:$4 sm:$0xff]   ;;  %v3966_v20 = vld [vmem:[%s5940_s1 + $0x54] ss:$8 sps:$4 sm:$0xff]   ;;  %v3970_v22 = vld [vmem:[%s5940_s1 + $0x50] ss:$8 sps:$4 sm:$0xff]  }
   0x8   :  { %3042 = vmatpush1.bf16.msra.mxu0 %v3947_v7  ;;  %2660 = vmatprep.subr.bf16.mxu1 %v3948_v8  ;;  %v3965_v19 = vld [vmem:[%s5940_s1 + $0x640] ss:$8 sps:$4 sm:$0xff]   ;;  %v3968_v21 = vld [vmem:[%s5940_s1 + $0x654] ss:$8 sps:$4 sm:$0xff]   ;;  %v3971_v23 = vld [vmem:[%s5940_s1 + $0x650] ss:$8 sps:$4 sm:$0xff]  }
   0x9   :  { %3044 = vmatprep.subr.bf16.mxu0 %v3950_v9  ;;  %v3972_v24 = vld [vmem:[%s5940_s1 + $0x64] ss:$8 sps:$4 sm:$0xff]   ;;  %v3976_v26 = vld [vmem:[%s5940_s1 + $0x60] ss:$8 sps:$4 sm:$0xff]   ;;  %v3978_v28 = vld [vmem:[%s5940_s1 + $0x74] ss:$8 sps:$4 sm:$0xff]  }
   0xa   :  { %v3974_v25 = vld [vmem:[%s5940_s1 + $0x664] ss:$8 sps:$4 sm:$0xff]   ;;  %v3977_v27 = vld [vmem:[%s5940_s1 + $0x660] ss:$8 sps:$4 sm:$0xff]   ;;  %v3980_v29 = vld [vmem:[%s5940_s1 + $0x674] ss:$8 sps:$4 sm:$0xff]  }
   0xb   :  { %2662 = vmatpush1.bf16.msra.mxu1 %v3952_v10  ;;  %v3982_v30 = vld [vmem:[%s5940_s1 + $0x70] ss:$8 sps:$4 sm:$0xff]   ;;  %v3984_v32 = vld [vmem:[%s5940_s1 + $0x84] ss:$8 sps:$4 sm:$0xff]   ;;  %v3988_v34 = vld [vmem:[%s5940_s1 + $0x80] ss:$8 sps:$4 sm:$0xff]  }
   0xc   :  { %3046 = vmatpush1.bf16.msra.mxu0 %v3953_v11  ;;  %2664 = vmatprep.subr.bf16.mxu1 %v3954_v12  ;;  %v3983_v31 = vld [vmem:[%s5940_s1 + $0x670] ss:$8 sps:$4 sm:$0xff]   ;;  %v3986_v33 = vld [vmem:[%s5940_s1 + $0x684] ss:$8 sps:$4 sm:$0xff]   ;;  %v3989_v35 = vld [vmem:[%s5940_s1 + $0x680] ss:$8 sps:$4 sm:$0xff]  }
   0xd   :  { %3048 = vmatprep.subr.bf16.mxu0 %v3956_v13  ;;  %v3990_v36 = vld [vmem:[%s5940_s1 + $0x94] ss:$8 sps:$4 sm:$0xff]   ;;  %v3994_v38 = vld [vmem:[%s5940_s1 + $0x90] ss:$8 sps:$4 sm:$0xff]   ;;  %v3996_v40 = vld [vmem:[%s5940_s1 + $0xa4] ss:$8 sps:$4 sm:$0xff]  }
   0xe   :  { %v3992_v37 = vld [vmem:[%s5940_s1 + $0x694] ss:$8 sps:$4 sm:$0xff]   ;;  %v3995_v39 = vld [vmem:[%s5940_s1 + $0x690] ss:$8 sps:$4 sm:$0xff]   ;;  %v3998_v41 = vld [vmem:[%s5940_s1 + $0x6a4] ss:$8 sps:$4 sm:$0xff]  }
   0xf   :  { %2666 = vmatpush1.bf16.msra.mxu1 %v3958_v14  ;;  %v4000_v42 = vld [vmem:[%s5940_s1 + $0xa0] ss:$8 sps:$4 sm:$0xff]   ;;  %v4002_v44 = vld [vmem:[%s5940_s1 + $0xb4] ss:$8 sps:$4 sm:$0xff]   ;;  %v4006_v47 = vld [vmem:[%s5940_s1 + $0xb0] ss:$8 sps:$4 sm:$0xff]  }
  0x10   :  { %3050 = vmatpush1.bf16.msra.mxu0 %v3959_v15  ;;  %2668 = vmatprep.subr.bf16.mxu1 %v3960_v16  ;;  %v4001_v43 = vld [vmem:[%s5940_s1 + $0x6a0] ss:$8 sps:$4 sm:$0xff]   ;;  %v4004_v45 = vld [vmem:[%s5940_s1 + $0x6b4] ss:$8 sps:$4 sm:$0xff]   ;;  %v4007_v48 = vld [vmem:[%s5940_s1 + $0x6b0] ss:$8 sps:$4 sm:$0xff]  }
  0x11   :  { %3052 = vmatprep.subr.bf16.mxu0 %v3962_v17  ;;  %v27_v46 = vld [vmem:[%s5941_s0 + $0x8] sm:$0xff]  ;;  %v4014_v54 = vld [vmem:[%s5940_s1 + $0xd4] ss:$8 sps:$4 sm:$0xff]   ;;  %v4018_v56 = vld [vmem:[%s5940_s1 + $0xd0] ss:$8 sps:$4 sm:$0xff]  }
  0x12   :  { %1327 = vmatprep.mubr.f32.mxu1 %v27_v46  ;;  %v39_v49 = vld [vmem:[%s5941_s0 + $0x68] sm:$0xff]  ;;  %v4016_v55 = vld [vmem:[%s5940_s1 + $0x6d4] ss:$8 sps:$4 sm:$0xff]   ;;  %v4019_v57 = vld [vmem:[%s5940_s1 + $0x6d0] ss:$8 sps:$4 sm:$0xff]  }
  0x13   :  { %2670 = vmatpush1.bf16.msra.mxu1 %v3964_v18  ;;  %v4008_v50 = vld [vmem:[%s5940_s1 + $0xc4] ss:$8 sps:$4 sm:$0xff]   ;;  %1753 = vmatprep.mubr.f32.mxu0 %v39_v49  ;;  %v4012_v52 = vld [vmem:[%s5940_s1 + $0xc0] ss:$8 sps:$4 sm:$0xff]   ;;  %v4026_v62 = vld [vmem:[%s5940_s1 + $0xf4] ss:$8 sps:$4 sm:$0xff]  }
  0x14   :  { %3054 = vmatpush1.bf16.msra.mxu0 %v3965_v19  ;;  %2672 = vmatprep.subr.bf16.mxu1 %v3966_v20  ;;  %v4010_v51 = vld [vmem:[%s5940_s1 + $0x6c4] ss:$8 sps:$4 sm:$0xff]   ;;  %v4013_v53 = vld [vmem:[%s5940_s1 + $0x6c0] ss:$8 sps:$4 sm:$0xff]   ;;  %v4028_v63 = vld [vmem:[%s5940_s1 + $0x6f4] ss:$8 sps:$4 sm:$0xff]  }
  0x15   :  { %3056 = vmatprep.subr.bf16.mxu0 %v3968_v21  ;;  %v4020_v58 = vld [vmem:[%s5940_s1 + $0xe4] ss:$8 sps:$4 sm:$0xff]   ;;  %v4024_v60 = vld [vmem:[%s5940_s1 + $0xe0] ss:$8 sps:$4 sm:$0xff]   ;;  %v4030_v0 = vld [vmem:[%s5940_s1 + $0xf0] ss:$8 sps:$4 sm:$0xff]  }
  0x16   :  { %v4022_v59 = vld [vmem:[%s5940_s1 + $0x6e4] ss:$8 sps:$4 sm:$0xff]   ;;  %v4025_v61 = vld [vmem:[%s5940_s1 + $0x6e0] ss:$8 sps:$4 sm:$0xff]   ;;  %v4031_v1 = vld [vmem:[%s5940_s1 + $0x6f0] ss:$8 sps:$4 sm:$0xff]  }
  0x17   :  { %2674 = vmatpush1.bf16.msra.mxu1 %v3970_v22  ;;  %v4032_v2 = vld [vmem:[%s5940_s1 + $0x104] ss:$8 sps:$4 sm:$0xff]   ;;  %v4034_v4 = vld [vmem:[%s5940_s1 + $0x100] ss:$8 sps:$4 sm:$0xff]   ;;  %v4038_v8 = vld [vmem:[%s5940_s1 + $0x114] ss:$8 sps:$4 sm:$0xff]  }
  0x18   :  { %3058 = vmatpush1.bf16.msra.mxu0 %v3971_v23  ;;  %2676 = vmatprep.subr.bf16.mxu1 %v3972_v24  ;;  %v4035_v3 = vld [vmem:[%s5940_s1 + $0x704] ss:$8 sps:$4 sm:$0xff]   ;;  %v4037_v5 = vld [vmem:[%s5940_s1 + $0x700] ss:$8 sps:$4 sm:$0xff]   ;;  %v4041_v9 = vld [vmem:[%s5940_s1 + $0x714] ss:$8 sps:$4 sm:$0xff]  }
  0x19   :  { %3060 = vmatprep.subr.bf16.mxu0 %v3974_v25  ;;  %v26_v6 = vld [vmem:[%s5941_s0] sm:$0xff]  ;;  %v4040_v10 = vld [vmem:[%s5940_s1 + $0x110] ss:$8 sps:$4 sm:$0xff]   ;;  %v4050_v16 = vld [vmem:[%s5940_s1 + $0x134] ss:$8 sps:$4 sm:$0xff]  }
  0x1a   :  { %v38_v7 = vld [vmem:[%s5941_s0 + $0x60] sm:$0xff]  ;;  %v4043_v11 = vld [vmem:[%s5940_s1 + $0x710] ss:$8 sps:$4 sm:$0xff]   ;;  %v4053_v17 = vld [vmem:[%s5940_s1 + $0x734] ss:$8 sps:$4 sm:$0xff]  }
  0x1b   :  { %2678 = vmatpush1.bf16.msra.mxu1 %v3976_v26  ;;  %v4044_v12 = vld [vmem:[%s5940_s1 + $0x124] ss:$8 sps:$4 sm:$0xff]   ;;  %v4046_v14 = vld [vmem:[%s5940_s1 + $0x120] ss:$8 sps:$4 sm:$0xff]   ;;  %v4052_v18 = vld [vmem:[%s5940_s1 + $0x130] ss:$8 sps:$4 sm:$0xff]  }
  0x1c   :  { %3062 = vmatpush1.bf16.msra.mxu0 %v3977_v27  ;;  %2680 = vmatprep.subr.bf16.mxu1 %v3978_v28  ;;  %v4047_v13 = vld [vmem:[%s5940_s1 + $0x724] ss:$8 sps:$4 sm:$0xff]   ;;  %v4049_v15 = vld [vmem:[%s5940_s1 + $0x720] ss:$8 sps:$4 sm:$0xff]   ;;  %v4055_v19 = vld [vmem:[%s5940_s1 + $0x730] ss:$8 sps:$4 sm:$0xff]  }
  0x1d   :  { %3064 = vmatprep.subr.bf16.mxu0 %v3980_v29  ;;  %v4056_v20 = vld [vmem:[%s5940_s1 + $0x144] ss:$8 sps:$4 sm:$0xff]   ;;  %v4058_v22 = vld [vmem:[%s5940_s1 + $0x140] ss:$8 sps:$4 sm:$0xff]   ;;  %v4062_v24 = vld [vmem:[%s5940_s1 + $0x154] ss:$8 sps:$4 sm:$0xff]  }
  0x1e   :  { %v4059_v21 = vld [vmem:[%s5940_s1 + $0x744] ss:$8 sps:$4 sm:$0xff]   ;;  %v4061_v23 = vld [vmem:[%s5940_s1 + $0x740] ss:$8 sps:$4 sm:$0xff]   ;;  %v4065_v25 = vld [vmem:[%s5940_s1 + $0x754] ss:$8 sps:$4 sm:$0xff]  }
  0x1f   :  { %2682 = vmatpush1.bf16.msra.mxu1 %v3982_v30  ;;  %v4064_v26 = vld [vmem:[%s5940_s1 + $0x150] ss:$8 sps:$4 sm:$0xff]   ;;  %v4068_v28 = vld [vmem:[%s5940_s1 + $0x164] ss:$8 sps:$4 sm:$0xff]   ;;  %v4097_v49 = vld [vmem:[%s5940_s1 + $0x7a0] ss:$8 sps:$4 sm:$0xff]  }
  0x20   :  { %3066 = vmatpush1.bf16.msra.mxu0 %v3983_v31  ;;  %2684 = vmatprep.subr.bf16.mxu1 %v3984_v32  ;;  %v4067_v27 = vld [vmem:[%s5940_s1 + $0x750] ss:$8 sps:$4 sm:$0xff]   ;;  %v4071_v29 = vld [vmem:[%s5940_s1 + $0x764] ss:$8 sps:$4 sm:$0xff]   ;;  %v4070_v31 = vld [vmem:[%s5940_s1 + $0x160] ss:$8 sps:$4 sm:$0xff]  }
  0x21   :  { %3068 = vmatprep.subr.bf16.mxu0 %v3986_v33  ;;  %v29_v30 = vld [vmem:[%s5941_s0 + $0x18] sm:$0xff]  ;;  %v4073_v32 = vld [vmem:[%s5940_s1 + $0x760] ss:$8 sps:$4 sm:$0xff]   ;;  %v4092_v46 = vld [vmem:[%s5940_s1 + $0x1a4] ss:$8 sps:$4 sm:$0xff]  }
  0x22   :  { %v41_v33 = vld [vmem:[%s5941_s0 + $0x78] sm:$0xff] }
  0x23   :  { %2686 = vmatpush1.bf16.msra.mxu1 %v3988_v34  ;;  %v4074_v34 = vld [vmem:[%s5940_s1 + $0x174] ss:$8 sps:$4 sm:$0xff]  }
  0x24   :  { %3070 = vmatpush1.bf16.msra.mxu0 %v3989_v35  ;;  %2688 = vmatprep.subr.bf16.mxu1 %v3990_v36  ;;  %v4077_v35 = vld [vmem:[%s5940_s1 + $0x774] ss:$8 sps:$4 sm:$0xff]   ;;  %v4076_v36 = vld [vmem:[%s5940_s1 + $0x170] ss:$8 sps:$4 sm:$0xff]  }
  0x25   :  { %3072 = vmatprep.subr.bf16.mxu0 %v3992_v37  ;;  %v4079_v37 = vld [vmem:[%s5940_s1 + $0x770] ss:$8 sps:$4 sm:$0xff]  }
  0x27   :  { %2690 = vmatpush1.bf16.msra.mxu1 %v3994_v38  ;;  %v4080_v38 = vld [vmem:[%s5940_s1 + $0x184] ss:$8 sps:$4 sm:$0xff]  }
  0x28   :  { %3074 = vmatpush1.bf16.msra.mxu0 %v3995_v39  ;;  %2692 = vmatprep.subr.bf16.mxu1 %v3996_v40  ;;  %v4083_v39 = vld [vmem:[%s5940_s1 + $0x784] ss:$8 sps:$4 sm:$0xff]   ;;  %v4082_v40 = vld [vmem:[%s5940_s1 + $0x180] ss:$8 sps:$4 sm:$0xff]  }
  0x29   :  { %3076 = vmatprep.subr.bf16.mxu0 %v3998_v41  ;;  %v4085_v41 = vld [vmem:[%s5940_s1 + $0x780] ss:$8 sps:$4 sm:$0xff]  }
  0x2b   :  { %2694 = vmatpush1.bf16.msra.mxu1 %v4000_v42  ;;  %v4086_v42 = vld [vmem:[%s5940_s1 + $0x194] ss:$8 sps:$4 sm:$0xff]  }
  0x2c   :  { %3078 = vmatpush1.bf16.msra.mxu0 %v4001_v43  ;;  %2696 = vmatprep.subr.bf16.mxu1 %v4002_v44  ;;  %v4089_v43 = vld [vmem:[%s5940_s1 + $0x794] ss:$8 sps:$4 sm:$0xff]   ;;  %v4088_v44 = vld [vmem:[%s5940_s1 + $0x190] ss:$8 sps:$4 sm:$0xff]  }
  0x2d   :  { %3080 = vmatprep.subr.bf16.mxu0 %v4004_v45  ;;  %v4091_v45 = vld [vmem:[%s5940_s1 + $0x790] ss:$8 sps:$4 sm:$0xff]  }
  0x2f   :  { %2698 = vmatpush1.bf16.msra.mxu1 %v4006_v47  ;;  %v4095_v47 = vld [vmem:[%s5940_s1 + $0x7a4] ss:$8 sps:$4 sm:$0xff]  }
  0x30   :  { %3082 = vmatpush1.bf16.msra.mxu0 %v4007_v48  ;;  %2700 = vmatprep.subr.bf16.mxu1 %v4008_v50  ;;  %v4094_v48 = vld [vmem:[%s5940_s1 + $0x1a0] ss:$8 sps:$4 sm:$0xff]   ;;  %v4098_v50 = vld [vmem:[%s5940_s1 + $0x1b4] ss:$8 sps:$4 sm:$0xff]  }
  0x31   :  { %3084 = vmatprep.subr.bf16.mxu0 %v4010_v51  ;;  %v4101_v51 = vld [vmem:[%s5940_s1 + $0x7b4] ss:$8 sps:$4 sm:$0xff]  }
  0x33   :  { %2702 = vmatpush1.bf16.msra.mxu1 %v4012_v52  ;;  %v4100_v52 = vld [vmem:[%s5940_s1 + $0x1b0] ss:$8 sps:$4 sm:$0xff]  }
  0x34   :  { %3086 = vmatpush1.bf16.msra.mxu0 %v4013_v53  ;;  %2704 = vmatprep.subr.bf16.mxu1 %v4014_v54  ;;  %v4103_v53 = vld [vmem:[%s5940_s1 + $0x7b0] ss:$8 sps:$4 sm:$0xff]   ;;  %v4104_v54 = vld [vmem:[%s5940_s1 + $0x1c4] ss:$8 sps:$4 sm:$0xff]  }
  0x35   :  { %3088 = vmatprep.subr.bf16.mxu0 %v4016_v55  ;;  %v4107_v55 = vld [vmem:[%s5940_s1 + $0x7c4] ss:$8 sps:$4 sm:$0xff]  }
  0x37   :  { %2706 = vmatpush1.bf16.msra.mxu1 %v4018_v56  ;;  %v4106_v56 = vld [vmem:[%s5940_s1 + $0x1c0] ss:$8 sps:$4 sm:$0xff]  }
  0x38   :  { %3090 = vmatpush1.bf16.msra.mxu0 %v4019_v57  ;;  %2708 = vmatprep.subr.bf16.mxu1 %v4020_v58  ;;  %v4109_v57 = vld [vmem:[%s5940_s1 + $0x7c0] ss:$8 sps:$4 sm:$0xff]   ;;  %v4110_v58 = vld [vmem:[%s5940_s1 + $0x1d4] ss:$8 sps:$4 sm:$0xff]  }
  0x39   :  { %3092 = vmatprep.subr.bf16.mxu0 %v4022_v59  ;;  %v4113_v59 = vld [vmem:[%s5940_s1 + $0x7d4] ss:$8 sps:$4 sm:$0xff]  }
  0x3b   :  { %2710 = vmatpush1.bf16.msra.mxu1 %v4024_v60  ;;  %v4112_v60 = vld [vmem:[%s5940_s1 + $0x1d0] ss:$8 sps:$4 sm:$0xff]  }
  0x3c   :  { %3094 = vmatpush1.bf16.msra.mxu0 %v4025_v61  ;;  %2712 = vmatprep.subr.bf16.mxu1 %v4026_v62  ;;  %v4115_v61 = vld [vmem:[%s5940_s1 + $0x7d0] ss:$8 sps:$4 sm:$0xff]   ;;  %v4116_v62 = vld [vmem:[%s5940_s1 + $0x1e4] ss:$8 sps:$4 sm:$0xff]  }
  0x3d   :  { %3096 = vmatprep.subr.bf16.mxu0 %v4028_v63  ;;  %v4119_v63 = vld [vmem:[%s5940_s1 + $0x7e4] ss:$8 sps:$4 sm:$0xff]  }
  0x3f   :  { %2714 = vmatpush1.bf16.msra.mxu1 %v4030_v0  ;;  %v4118_v0 = vld [vmem:[%s5940_s1 + $0x1e0] ss:$8 sps:$4 sm:$0xff]  }
  0x40   :  { %3098 = vmatpush1.bf16.msra.mxu0 %v4031_v1  ;;  %2716 = vmatprep.subr.bf16.mxu1 %v4032_v2  ;;  %v4121_v1 = vld [vmem:[%s5940_s1 + $0x7e0] ss:$8 sps:$4 sm:$0xff]   ;;  %v4122_v2 = vld [vmem:[%s5940_s1 + $0x1f4] ss:$8 sps:$4 sm:$0xff]  }
  0x41   :  { %3100 = vmatprep.subr.bf16.mxu0 %v4035_v3  ;;  %v4125_v3 = vld [vmem:[%s5940_s1 + $0x7f4] ss:$8 sps:$4 sm:$0xff]  }
  0x42   :  { %1328 = vmatmul.mubr.f32.vlgmr.msra.gmra.mrb[0].mxu1 %v26_v6  ;;  %v4128_v6 = vld [vmem:[%s5940_s1 + $0x204] ss:$8 sps:$4 sm:$0xff]  }
  0x43   :  { %1754 = vmatmul.mubr.f32.vlgmr.msra.gmra.mrb[0].mxu0 %v38_v7  ;;  %2718 = vmatpush1.bf16.msra.mxu1 %v4034_v4  ;;  %v4124_v4 = vld [vmem:[%s5940_s1 + $0x1f0] ss:$8 sps:$4 sm:$0xff]   ;;  %v4131_v7 = vld [vmem:[%s5940_s1 + $0x804] ss:$8 sps:$4 sm:$0xff]  }
  0x44   :  { %3102 = vmatpush1.bf16.msra.mxu0 %v4037_v5  ;;  %2720 = vmatprep.subr.bf16.mxu1 %v4038_v8  ;;  %v4127_v5 = vld [vmem:[%s5940_s1 + $0x7f0] ss:$8 sps:$4 sm:$0xff]   ;;  %v4130_v8 = vld [vmem:[%s5940_s1 + $0x200] ss:$8 sps:$4 sm:$0xff]  }
  0x45   :  { %3104 = vmatprep.subr.bf16.mxu0 %v4041_v9  ;;  %1398 = vmatprep.mubr.f32.mxu1 %v29_v30  ;;  %v4133_v9 = vld [vmem:[%s5940_s1 + $0x800] ss:$8 sps:$4 sm:$0xff]   ;;  %v4158_v30 = vld [vmem:[%s5940_s1 + $0x254] ss:$8 sps:$4 sm:$0xff]  }
  0x46   :  { %1824 = vmatprep.mubr.f32.mxu0 %v41_v33  ;;  %v4163_v33 = vld [vmem:[%s5940_s1 + $0x850] ss:$8 sps:$4 sm:$0xff]  }
  0x47   :  { %2722 = vmatpush1.bf16.msra.mxu1 %v4040_v10  ;;  %v28_v10 = vld [vmem:[%s5941_s0 + $0x10] sm:$0xff] }
  0x48   :  { %3106 = vmatpush1.bf16.msra.mxu0 %v4043_v11  ;;  %2724 = vmatprep.subr.bf16.mxu1 %v4044_v12  ;;  %v40_v11 = vld [vmem:[%s5941_s0 + $0x70] sm:$0xff] }
  0x49   :  { %3108 = vmatprep.subr.bf16.mxu0 %v4047_v13  ;;  %v4134_v12 = vld [vmem:[%s5940_s1 + $0x214] ss:$8 sps:$4 sm:$0xff]  }
  0x4a   :  { %v4137_v13 = vld [vmem:[%s5940_s1 + $0x814] ss:$8 sps:$4 sm:$0xff]  }
  0x4b   :  { %2726 = vmatpush1.bf16.msra.mxu1 %v4046_v14  ;;  %v4136_v14 = vld [vmem:[%s5940_s1 + $0x210] ss:$8 sps:$4 sm:$0xff]  }
  0x4c   :  { %3110 = vmatpush1.bf16.msra.mxu0 %v4049_v15  ;;  %2728 = vmatprep.subr.bf16.mxu1 %v4050_v16  ;;  %v31_v15 = vld [vmem:[%s5941_s0 + $0x28] sm:$0xff]  ;;  %v4139_v16 = vld [vmem:[%s5940_s1 + $0x810] ss:$8 sps:$4 sm:$0xff]  }
  0x4d   :  { %3112 = vmatprep.subr.bf16.mxu0 %v4053_v17  ;;  %v43_v17 = vld [vmem:[%s5941_s0 + $0x88] sm:$0xff] }
  0x4f   :  { %2730 = vmatpush1.bf16.msra.mxu1 %v4052_v18  ;;  %v4140_v18 = vld [vmem:[%s5940_s1 + $0x224] ss:$8 sps:$4 sm:$0xff]  }
  0x50   :  { %3114 = vmatpush1.bf16.msra.mxu0 %v4055_v19  ;;  %2732 = vmatprep.subr.bf16.mxu1 %v4056_v20  ;;  %v4143_v19 = vld [vmem:[%s5940_s1 + $0x824] ss:$8 sps:$4 sm:$0xff]   ;;  %v4142_v20 = vld [vmem:[%s5940_s1 + $0x220] ss:$8 sps:$4 sm:$0xff]  }
  0x51   :  { %3116 = vmatprep.subr.bf16.mxu0 %v4059_v21  ;;  %v4145_v21 = vld [vmem:[%s5940_s1 + $0x820] ss:$8 sps:$4 sm:$0xff]  }
  0x53   :  { %2734 = vmatpush1.bf16.msra.mxu1 %v4058_v22  ;;  %v4146_v22 = vld [vmem:[%s5940_s1 + $0x234] ss:$8 sps:$4 sm:$0xff]  }
  0x54   :  { %3118 = vmatpush1.bf16.msra.mxu0 %v4061_v23  ;;  %2736 = vmatprep.subr.bf16.mxu1 %v4062_v24  ;;  %v4149_v23 = vld [vmem:[%s5940_s1 + $0x834] ss:$8 sps:$4 sm:$0xff]   ;;  %v4148_v24 = vld [vmem:[%s5940_s1 + $0x230] ss:$8 sps:$4 sm:$0xff]  }
  0x55   :  { %3120 = vmatprep.subr.bf16.mxu0 %v4065_v25  ;;  %v4151_v25 = vld [vmem:[%s5940_s1 + $0x830] ss:$8 sps:$4 sm:$0xff]  }
  0x57   :  { %2738 = vmatpush1.bf16.msra.mxu1 %v4064_v26  ;;  %v4152_v26 = vld [vmem:[%s5940_s1 + $0x244] ss:$8 sps:$4 sm:$0xff]  }
  0x58   :  { %3122 = vmatpush1.bf16.msra.mxu0 %v4067_v27  ;;  %2740 = vmatprep.subr.bf16.mxu1 %v4068_v28  ;;  %v4155_v27 = vld [vmem:[%s5940_s1 + $0x844] ss:$8 sps:$4 sm:$0xff]   ;;  %v4154_v28 = vld [vmem:[%s5940_s1 + $0x240] ss:$8 sps:$4 sm:$0xff]  }
  0x59   :  { %3124 = vmatprep.subr.bf16.mxu0 %v4071_v29  ;;  %v4157_v29 = vld [vmem:[%s5940_s1 + $0x840] ss:$8 sps:$4 sm:$0xff]  }
  0x5b   :  { %2742 = vmatpush1.bf16.msra.mxu1 %v4070_v31  ;;  %v4161_v31 = vld [vmem:[%s5940_s1 + $0x854] ss:$8 sps:$4 sm:$0xff]  }
  0x5c   :  { %3126 = vmatpush1.bf16.msra.mxu0 %v4073_v32  ;;  %2744 = vmatprep.subr.bf16.mxu1 %v4074_v34  ;;  %v4160_v32 = vld [vmem:[%s5940_s1 + $0x250] ss:$8 sps:$4 sm:$0xff]   ;;  %v4164_v34 = vld [vmem:[%s5940_s1 + $0x264] ss:$8 sps:$4 sm:$0xff]  }
  0x5d   :  { %3128 = vmatprep.subr.bf16.mxu0 %v4077_v35  ;;  %v4167_v35 = vld [vmem:[%s5940_s1 + $0x864] ss:$8 sps:$4 sm:$0xff]  }
  0x5f   :  { %2746 = vmatpush1.bf16.msra.mxu1 %v4076_v36  ;;  %v4166_v36 = vld [vmem:[%s5940_s1 + $0x260] ss:$8 sps:$4 sm:$0xff]  }
  0x60   :  { %3130 = vmatpush1.bf16.msra.mxu0 %v4079_v37  ;;  %2748 = vmatprep.subr.bf16.mxu1 %v4080_v38  ;;  %v4169_v37 = vld [vmem:[%s5940_s1 + $0x860] ss:$8 sps:$4 sm:$0xff]   ;;  %v4170_v38 = vld [vmem:[%s5940_s1 + $0x274] ss:$8 sps:$4 sm:$0xff]  }
  0x61   :  { %3132 = vmatprep.subr.bf16.mxu0 %v4083_v39  ;;  %v4173_v39 = vld [vmem:[%s5940_s1 + $0x874] ss:$8 sps:$4 sm:$0xff]  }
  0x63   :  { %2750 = vmatpush1.bf16.msra.mxu1 %v4082_v40  ;;  %v4172_v40 = vld [vmem:[%s5940_s1 + $0x270] ss:$8 sps:$4 sm:$0xff]  }
  0x64   :  { %3134 = vmatpush1.bf16.msra.mxu0 %v4085_v41  ;;  %2752 = vmatprep.subr.bf16.mxu1 %v4086_v42  ;;  %v4175_v41 = vld [vmem:[%s5940_s1 + $0x870] ss:$8 sps:$4 sm:$0xff]   ;;  %v4176_v42 = vld [vmem:[%s5940_s1 + $0x284] ss:$8 sps:$4 sm:$0xff]  }
  0x65   :  { %3136 = vmatprep.subr.bf16.mxu0 %v4089_v43  ;;  %v4179_v43 = vld [vmem:[%s5940_s1 + $0x884] ss:$8 sps:$4 sm:$0xff]  }
  0x67   :  { %2754 = vmatpush1.bf16.msra.mxu1 %v4088_v44  ;;  %v4178_v44 = vld [vmem:[%s5940_s1 + $0x280] ss:$8 sps:$4 sm:$0xff]  }
  0x68   :  { %3138 = vmatpush1.bf16.msra.mxu0 %v4091_v45  ;;  %2756 = vmatprep.subr.bf16.mxu1 %v4092_v46  ;;  %v4181_v45 = vld [vmem:[%s5940_s1 + $0x880] ss:$8 sps:$4 sm:$0xff]   ;;  %v4182_v46 = vld [vmem:[%s5940_s1 + $0x294] ss:$8 sps:$4 sm:$0xff]  }
  0x69   :  { %3140 = vmatprep.subr.bf16.mxu0 %v4095_v47  ;;  %v4185_v47 = vld [vmem:[%s5940_s1 + $0x894] ss:$8 sps:$4 sm:$0xff]  }
  0x6b   :  { %2758 = vmatpush1.bf16.msra.mxu1 %v4094_v48  ;;  %v4184_v48 = vld [vmem:[%s5940_s1 + $0x290] ss:$8 sps:$4 sm:$0xff]  }
  0x6c   :  { %3142 = vmatpush1.bf16.msra.mxu0 %v4097_v49  ;;  %2760 = vmatprep.subr.bf16.mxu1 %v4098_v50  ;;  %v4187_v49 = vld [vmem:[%s5940_s1 + $0x890] ss:$8 sps:$4 sm:$0xff]   ;;  %v4188_v50 = vld [vmem:[%s5940_s1 + $0x2a4] ss:$8 sps:$4 sm:$0xff]  }
  0x6d   :  { %3144 = vmatprep.subr.bf16.mxu0 %v4101_v51  ;;  %v4191_v51 = vld [vmem:[%s5940_s1 + $0x8a4] ss:$8 sps:$4 sm:$0xff]  }
  0x6f   :  { %2762 = vmatpush1.bf16.msra.mxu1 %v4100_v52  ;;  %v4190_v52 = vld [vmem:[%s5940_s1 + $0x2a0] ss:$8 sps:$4 sm:$0xff]  }
  0x70   :  { %3146 = vmatpush1.bf16.msra.mxu0 %v4103_v53  ;;  %2764 = vmatprep.subr.bf16.mxu1 %v4104_v54  ;;  %v4193_v53 = vld [vmem:[%s5940_s1 + $0x8a0] ss:$8 sps:$4 sm:$0xff]   ;;  %v4194_v54 = vld [vmem:[%s5940_s1 + $0x2b4] ss:$8 sps:$4 sm:$0xff]  }
  0x71   :  { %3148 = vmatprep.subr.bf16.mxu0 %v4107_v55  ;;  %v4197_v55 = vld [vmem:[%s5940_s1 + $0x8b4] ss:$8 sps:$4 sm:$0xff]  }
  0x73   :  { %2766 = vmatpush1.bf16.msra.mxu1 %v4106_v56  ;;  %v4196_v56 = vld [vmem:[%s5940_s1 + $0x2b0] ss:$8 sps:$4 sm:$0xff]  }
  0x74   :  { %3150 = vmatpush1.bf16.msra.mxu0 %v4109_v57  ;;  %2768 = vmatprep.subr.bf16.mxu1 %v4110_v58  ;;  %v4199_v57 = vld [vmem:[%s5940_s1 + $0x8b0] ss:$8 sps:$4 sm:$0xff]   ;;  %v4200_v58 = vld [vmem:[%s5940_s1 + $0x2c4] ss:$8 sps:$4 sm:$0xff]  }
  0x75   :  { %3152 = vmatprep.subr.bf16.mxu0 %v4113_v59  ;;  %v4203_v59 = vld [vmem:[%s5940_s1 + $0x8c4] ss:$8 sps:$4 sm:$0xff]  }
  0x77   :  { %2770 = vmatpush1.bf16.msra.mxu1 %v4112_v60  ;;  %v4202_v60 = vld [vmem:[%s5940_s1 + $0x2c0] ss:$8 sps:$4 sm:$0xff]  }
  0x78   :  { %3154 = vmatpush1.bf16.msra.mxu0 %v4115_v61  ;;  %2772 = vmatprep.subr.bf16.mxu1 %v4116_v62  ;;  %v4205_v61 = vld [vmem:[%s5940_s1 + $0x8c0] ss:$8 sps:$4 sm:$0xff]   ;;  %v4206_v62 = vld [vmem:[%s5940_s1 + $0x2d4] ss:$8 sps:$4 sm:$0xff]  }
  0x79   :  { %3156 = vmatprep.subr.bf16.mxu0 %v4119_v63  ;;  %v4209_v63 = vld [vmem:[%s5940_s1 + $0x8d4] ss:$8 sps:$4 sm:$0xff]  }
  0x7b   :  { %2774 = vmatpush1.bf16.msra.mxu1 %v4118_v0  ;;  %v4208_v0 = vld [vmem:[%s5940_s1 + $0x2d0] ss:$8 sps:$4 sm:$0xff]  }
  0x7c   :  { %3158 = vmatpush1.bf16.msra.mxu0 %v4121_v1  ;;  %2776 = vmatprep.subr.bf16.mxu1 %v4122_v2  ;;  %v4211_v1 = vld [vmem:[%s5940_s1 + $0x8d0] ss:$8 sps:$4 sm:$0xff]   ;;  %v4212_v2 = vld [vmem:[%s5940_s1 + $0x2e4] ss:$8 sps:$4 sm:$0xff]  }
  0x7d   :  { %3160 = vmatprep.subr.bf16.mxu0 %v4125_v3  ;;  %v4215_v3 = vld [vmem:[%s5940_s1 + $0x8e4] ss:$8 sps:$4 sm:$0xff]  }
  0x7f   :  { %2778 = vmatpush1.bf16.msra.mxu1 %v4124_v4  ;;  %v4214_v4 = vld [vmem:[%s5940_s1 + $0x2e0] ss:$8 sps:$4 sm:$0xff]  }
  0x80   :  { %3162 = vmatpush1.bf16.msra.mxu0 %v4127_v5  ;;  %2780 = vmatprep.subr.bf16.mxu1 %v4128_v6  ;;  %v4217_v5 = vld [vmem:[%s5940_s1 + $0x8e0] ss:$8 sps:$4 sm:$0xff]   ;;  %v4218_v6 = vld [vmem:[%s5940_s1 + $0x2f4] ss:$8 sps:$4 sm:$0xff]  }
  0x81   :  { %3164 = vmatprep.subr.bf16.mxu0 %v4131_v7  ;;  %v4221_v7 = vld [vmem:[%s5940_s1 + $0x8f4] ss:$8 sps:$4 sm:$0xff]  }
  0x82   :  { %1399 = vmatmul.mubr.f32.vlgmr.msra.gmra.mrb[0].mxu1 %v28_v10  ;;  %v4224_v10 = vld [vmem:[%s5940_s1 + $0x304] ss:$8 sps:$4 sm:$0xff]  }
  0x83   :  { %1825 = vmatmul.mubr.f32.vlgmr.msra.gmra.mrb[0].mxu0 %v40_v11  ;;  %2782 = vmatpush1.bf16.msra.mxu1 %v4130_v8  ;;  %v4220_v8 = vld [vmem:[%s5940_s1 + $0x2f0] ss:$8 sps:$4 sm:$0xff]   ;;  %v4227_v11 = vld [vmem:[%s5940_s1 + $0x904] ss:$8 sps:$4 sm:$0xff]  }
  0x84   :  { %3166 = vmatpush1.bf16.msra.mxu0 %v4133_v9  ;;  %2784 = vmatprep.subr.bf16.mxu1 %v4134_v12  ;;  %v4223_v9 = vld [vmem:[%s5940_s1 + $0x8f0] ss:$8 sps:$4 sm:$0xff]   ;;  %v4226_v12 = vld [vmem:[%s5940_s1 + $0x300] ss:$8 sps:$4 sm:$0xff]  }
  0x85   :  { %3168 = vmatprep.subr.bf16.mxu0 %v4137_v13  ;;  %1469 = vmatprep.mubr.f32.mxu1 %v31_v15  ;;  %v4229_v13 = vld [vmem:[%s5940_s1 + $0x900] ss:$8 sps:$4 sm:$0xff]  }
  0x86   :  { %1895 = vmatprep.mubr.f32.mxu0 %v43_v17  ;;  %v42_v15 = vld [vmem:[%s5941_s0 + $0x80] sm:$0xff]  ;;  %v4233_v17 = vld [vmem:[%s5940_s1 + $0x914] ss:$8 sps:$4 sm:$0xff]  }
  0x87   :  { %2786 = vmatpush1.bf16.msra.mxu1 %v4136_v14  ;;  %v30_v14 = vld [vmem:[%s5941_s0 + $0x20] sm:$0xff] }
  0x88   :  { %3170 = vmatpush1.bf16.msra.mxu0 %v4139_v16  ;;  %2788 = vmatprep.subr.bf16.mxu1 %v4140_v18  ;;  %v4230_v16 = vld [vmem:[%s5940_s1 + $0x314] ss:$8 sps:$4 sm:$0xff]   ;;  %v4232_v18 = vld [vmem:[%s5940_s1 + $0x310] ss:$8 sps:$4 sm:$0xff]  }
  0x89   :  { %3172 = vmatprep.subr.bf16.mxu0 %v4143_v19  ;;  %v4235_v19 = vld [vmem:[%s5940_s1 + $0x910] ss:$8 sps:$4 sm:$0xff]  }
  0x8b   :  { %2790 = vmatpush1.bf16.msra.mxu1 %v4142_v20  ;;  %v33_v20 = vld [vmem:[%s5941_s0 + $0x38] sm:$0xff] }
  0x8c   :  { %3174 = vmatpush1.bf16.msra.mxu0 %v4145_v21  ;;  %2792 = vmatprep.subr.bf16.mxu1 %v4146_v22  ;;  %v45_v21 = vld [vmem:[%s5941_s0 + $0x98] sm:$0xff]  ;;  %v4236_v22 = vld [vmem:[%s5940_s1 + $0x324] ss:$8 sps:$4 sm:$0xff]  }
  0x8d   :  { %3176 = vmatprep.subr.bf16.mxu0 %v4149_v23  ;;  %v4239_v23 = vld [vmem:[%s5940_s1 + $0x924] ss:$8 sps:$4 sm:$0xff]  }
  0x8f   :  { %2794 = vmatpush1.bf16.msra.mxu1 %v4148_v24  ;;  %v4238_v24 = vld [vmem:[%s5940_s1 + $0x320] ss:$8 sps:$4 sm:$0xff]  }
  0x90   :  { %3178 = vmatpush1.bf16.msra.mxu0 %v4151_v25  ;;  %2796 = vmatprep.subr.bf16.mxu1 %v4152_v26  ;;  %v4241_v25 = vld [vmem:[%s5940_s1 + $0x920] ss:$8 sps:$4 sm:$0xff]   ;;  %v4242_v26 = vld [vmem:[%s5940_s1 + $0x334] ss:$8 sps:$4 sm:$0xff]  }
  0x91   :  { %3180 = vmatprep.subr.bf16.mxu0 %v4155_v27  ;;  %v4245_v27 = vld [vmem:[%s5940_s1 + $0x934] ss:$8 sps:$4 sm:$0xff]  }
  0x93   :  { %2798 = vmatpush1.bf16.msra.mxu1 %v4154_v28  ;;  %v4244_v28 = vld [vmem:[%s5940_s1 + $0x330] ss:$8 sps:$4 sm:$0xff]  }
  0x94   :  { %3182 = vmatpush1.bf16.msra.mxu0 %v4157_v29  ;;  %2800 = vmatprep.subr.bf16.mxu1 %v4158_v30  ;;  %v4247_v29 = vld [vmem:[%s5940_s1 + $0x930] ss:$8 sps:$4 sm:$0xff]   ;;  %v4248_v30 = vld [vmem:[%s5940_s1 + $0x344] ss:$8 sps:$4 sm:$0xff]  }
  0x95   :  { %3184 = vmatprep.subr.bf16.mxu0 %v4161_v31  ;;  %v4251_v31 = vld [vmem:[%s5940_s1 + $0x944] ss:$8 sps:$4 sm:$0xff]  }
  0x97   :  { %2802 = vmatpush1.bf16.msra.mxu1 %v4160_v32  ;;  %v4250_v32 = vld [vmem:[%s5940_s1 + $0x340] ss:$8 sps:$4 sm:$0xff]  }
  0x98   :  { %3186 = vmatpush1.bf16.msra.mxu0 %v4163_v33  ;;  %2804 = vmatprep.subr.bf16.mxu1 %v4164_v34  ;;  %v4253_v33 = vld [vmem:[%s5940_s1 + $0x940] ss:$8 sps:$4 sm:$0xff]   ;;  %v4254_v34 = vld [vmem:[%s5940_s1 + $0x354] ss:$8 sps:$4 sm:$0xff]  }
  0x99   :  { %3188 = vmatprep.subr.bf16.mxu0 %v4167_v35  ;;  %v4257_v35 = vld [vmem:[%s5940_s1 + $0x954] ss:$8 sps:$4 sm:$0xff]  }
  0x9b   :  { %2806 = vmatpush1.bf16.msra.mxu1 %v4166_v36  ;;  %v4256_v36 = vld [vmem:[%s5940_s1 + $0x350] ss:$8 sps:$4 sm:$0xff]  }
  0x9c   :  { %3190 = vmatpush1.bf16.msra.mxu0 %v4169_v37  ;;  %2808 = vmatprep.subr.bf16.mxu1 %v4170_v38  ;;  %v4259_v37 = vld [vmem:[%s5940_s1 + $0x950] ss:$8 sps:$4 sm:$0xff]   ;;  %v4260_v38 = vld [vmem:[%s5940_s1 + $0x364] ss:$8 sps:$4 sm:$0xff]  }
  0x9d   :  { %3192 = vmatprep.subr.bf16.mxu0 %v4173_v39  ;;  %v4263_v39 = vld [vmem:[%s5940_s1 + $0x964] ss:$8 sps:$4 sm:$0xff]  }
  0x9f   :  { %2810 = vmatpush1.bf16.msra.mxu1 %v4172_v40  ;;  %v4262_v40 = vld [vmem:[%s5940_s1 + $0x360] ss:$8 sps:$4 sm:$0xff]  }
  0xa0   :  { %3194 = vmatpush1.bf16.msra.mxu0 %v4175_v41  ;;  %2812 = vmatprep.subr.bf16.mxu1 %v4176_v42  ;;  %v4265_v41 = vld [vmem:[%s5940_s1 + $0x960] ss:$8 sps:$4 sm:$0xff]   ;;  %v4266_v42 = vld [vmem:[%s5940_s1 + $0x374] ss:$8 sps:$4 sm:$0xff]  }
  0xa1   :  { %3196 = vmatprep.subr.bf16.mxu0 %v4179_v43  ;;  %v4269_v43 = vld [vmem:[%s5940_s1 + $0x974] ss:$8 sps:$4 sm:$0xff]  }
  0xa3   :  { %2814 = vmatpush1.bf16.msra.mxu1 %v4178_v44  ;;  %v4268_v44 = vld [vmem:[%s5940_s1 + $0x370] ss:$8 sps:$4 sm:$0xff]  }
  0xa4   :  { %3198 = vmatpush1.bf16.msra.mxu0 %v4181_v45  ;;  %2816 = vmatprep.subr.bf16.mxu1 %v4182_v46  ;;  %v4271_v45 = vld [vmem:[%s5940_s1 + $0x970] ss:$8 sps:$4 sm:$0xff]   ;;  %v4272_v46 = vld [vmem:[%s5940_s1 + $0x384] ss:$8 sps:$4 sm:$0xff]  }
  0xa5   :  { %3200 = vmatprep.subr.bf16.mxu0 %v4185_v47  ;;  %v4275_v47 = vld [vmem:[%s5940_s1 + $0x984] ss:$8 sps:$4 sm:$0xff]  }
  0xa7   :  { %2818 = vmatpush1.bf16.msra.mxu1 %v4184_v48  ;;  %v4274_v48 = vld [vmem:[%s5940_s1 + $0x380] ss:$8 sps:$4 sm:$0xff]  }
  0xa8   :  { %3202 = vmatpush1.bf16.msra.mxu0 %v4187_v49  ;;  %2820 = vmatprep.subr.bf16.mxu1 %v4188_v50  ;;  %v4277_v49 = vld [vmem:[%s5940_s1 + $0x980] ss:$8 sps:$4 sm:$0xff]   ;;  %v4278_v50 = vld [vmem:[%s5940_s1 + $0x394] ss:$8 sps:$4 sm:$0xff]  }
  0xa9   :  { %3204 = vmatprep.subr.bf16.mxu0 %v4191_v51  ;;  %v4281_v51 = vld [vmem:[%s5940_s1 + $0x994] ss:$8 sps:$4 sm:$0xff]  }
  0xab   :  { %2822 = vmatpush1.bf16.msra.mxu1 %v4190_v52  ;;  %v4280_v52 = vld [vmem:[%s5940_s1 + $0x390] ss:$8 sps:$4 sm:$0xff]  }
  0xac   :  { %3206 = vmatpush1.bf16.msra.mxu0 %v4193_v53  ;;  %2824 = vmatprep.subr.bf16.mxu1 %v4194_v54  ;;  %v4283_v53 = vld [vmem:[%s5940_s1 + $0x990] ss:$8 sps:$4 sm:$0xff]   ;;  %v4284_v54 = vld [vmem:[%s5940_s1 + $0x3a4] ss:$8 sps:$4 sm:$0xff]  }
  0xad   :  { %3208 = vmatprep.subr.bf16.mxu0 %v4197_v55  ;;  %v4287_v55 = vld [vmem:[%s5940_s1 + $0x9a4] ss:$8 sps:$4 sm:$0xff]  }
  0xaf   :  { %2826 = vmatpush1.bf16.msra.mxu1 %v4196_v56  ;;  %v4286_v56 = vld [vmem:[%s5940_s1 + $0x3a0] ss:$8 sps:$4 sm:$0xff]  }
  0xb0   :  { %3210 = vmatpush1.bf16.msra.mxu0 %v4199_v57  ;;  %2828 = vmatprep.subr.bf16.mxu1 %v4200_v58  ;;  %v4289_v57 = vld [vmem:[%s5940_s1 + $0x9a0] ss:$8 sps:$4 sm:$0xff]   ;;  %v4290_v58 = vld [vmem:[%s5940_s1 + $0x3b4] ss:$8 sps:$4 sm:$0xff]  }
  0xb1   :  { %3212 = vmatprep.subr.bf16.mxu0 %v4203_v59  ;;  %v4293_v59 = vld [vmem:[%s5940_s1 + $0x9b4] ss:$8 sps:$4 sm:$0xff]  }
  0xb3   :  { %2830 = vmatpush1.bf16.msra.mxu1 %v4202_v60  ;;  %v4292_v60 = vld [vmem:[%s5940_s1 + $0x3b0] ss:$8 sps:$4 sm:$0xff]  }
  0xb4   :  { %3214 = vmatpush1.bf16.msra.mxu0 %v4205_v61  ;;  %2832 = vmatprep.subr.bf16.mxu1 %v4206_v62  ;;  %v4295_v61 = vld [vmem:[%s5940_s1 + $0x9b0] ss:$8 sps:$4 sm:$0xff]   ;;  %v4296_v62 = vld [vmem:[%s5940_s1 + $0x3c4] ss:$8 sps:$4 sm:$0xff]  }
  0xb5   :  { %3216 = vmatprep.subr.bf16.mxu0 %v4209_v63  ;;  %v4299_v63 = vld [vmem:[%s5940_s1 + $0x9c4] ss:$8 sps:$4 sm:$0xff]  }
  0xb7   :  { %2834 = vmatpush1.bf16.msra.mxu1 %v4208_v0  ;;  %v4298_v0 = vld [vmem:[%s5940_s1 + $0x3c0] ss:$8 sps:$4 sm:$0xff]  }
  0xb8   :  { %3218 = vmatpush1.bf16.msra.mxu0 %v4211_v1  ;;  %2836 = vmatprep.subr.bf16.mxu1 %v4212_v2  ;;  %v4301_v1 = vld [vmem:[%s5940_s1 + $0x9c0] ss:$8 sps:$4 sm:$0xff]   ;;  %v4302_v2 = vld [vmem:[%s5940_s1 + $0x3d4] ss:$8 sps:$4 sm:$0xff]  }
  0xb9   :  { %3220 = vmatprep.subr.bf16.mxu0 %v4215_v3  ;;  %v4305_v3 = vld [vmem:[%s5940_s1 + $0x9d4] ss:$8 sps:$4 sm:$0xff]  }
  0xbb   :  { %2838 = vmatpush1.bf16.msra.mxu1 %v4214_v4  ;;  %v4304_v4 = vld [vmem:[%s5940_s1 + $0x3d0] ss:$8 sps:$4 sm:$0xff]  }
  0xbc   :  { %3222 = vmatpush1.bf16.msra.mxu0 %v4217_v5  ;;  %2840 = vmatprep.subr.bf16.mxu1 %v4218_v6  ;;  %v4307_v5 = vld [vmem:[%s5940_s1 + $0x9d0] ss:$8 sps:$4 sm:$0xff]   ;;  %v4308_v6 = vld [vmem:[%s5940_s1 + $0x3e4] ss:$8 sps:$4 sm:$0xff]  }
  0xbd   :  { %3224 = vmatprep.subr.bf16.mxu0 %v4221_v7  ;;  %v4311_v7 = vld [vmem:[%s5940_s1 + $0x9e4] ss:$8 sps:$4 sm:$0xff]  }
  0xbf   :  { %2842 = vmatpush1.bf16.msra.mxu1 %v4220_v8  ;;  %v4310_v8 = vld [vmem:[%s5940_s1 + $0x3e0] ss:$8 sps:$4 sm:$0xff]  }
  0xc0   :  { %3226 = vmatpush1.bf16.msra.mxu0 %v4223_v9  ;;  %2844 = vmatprep.subr.bf16.mxu1 %v4224_v10  ;;  %v4313_v9 = vld [vmem:[%s5940_s1 + $0x9e0] ss:$8 sps:$4 sm:$0xff]   ;;  %v4314_v10 = vld [vmem:[%s5940_s1 + $0x3f4] ss:$8 sps:$4 sm:$0xff]  }
  0xc1   :  { %3228 = vmatprep.subr.bf16.mxu0 %v4227_v11  ;;  %v4317_v11 = vld [vmem:[%s5940_s1 + $0x9f4] ss:$8 sps:$4 sm:$0xff]  }
  0xc2   :  { %1470 = vmatmul.mubr.f32.vlgmr.msra.gmra.mrb[0].mxu1 %v30_v14  ;;  %v4320_v14 = vld [vmem:[%s5940_s1 + $0x404] ss:$8 sps:$4 sm:$0xff]  }
  0xc3   :  { %1896 = vmatmul.mubr.f32.vlgmr.msra.gmra.mrb[0].mxu0 %v42_v15  ;;  %2846 = vmatpush1.bf16.msra.mxu1 %v4226_v12  ;;  %v4316_v12 = vld [vmem:[%s5940_s1 + $0x3f0] ss:$8 sps:$4 sm:$0xff]   ;;  %v4323_v15 = vld [vmem:[%s5940_s1 + $0xa04] ss:$8 sps:$4 sm:$0xff]  }
  0xc4   :  { %3230 = vmatpush1.bf16.msra.mxu0 %v4229_v13  ;;  %2848 = vmatprep.subr.bf16.mxu1 %v4230_v16  ;;  %v4319_v13 = vld [vmem:[%s5940_s1 + $0x9f0] ss:$8 sps:$4 sm:$0xff]   ;;  %v4322_v16 = vld [vmem:[%s5940_s1 + $0x400] ss:$8 sps:$4 sm:$0xff]  }
  0xc5   :  { %3232 = vmatprep.subr.bf16.mxu0 %v4233_v17  ;;  %1540 = vmatprep.mubr.f32.mxu1 %v33_v20  ;;  %v4325_v17 = vld [vmem:[%s5940_s1 + $0xa00] ss:$8 sps:$4 sm:$0xff]   ;;  %v4326_v20 = vld [vmem:[%s5940_s1 + $0x414] ss:$8 sps:$4 sm:$0xff]  }
  0xc6   :  { %1966 = vmatprep.mubr.f32.mxu0 %v45_v21  ;;  %v4329_v21 = vld [vmem:[%s5940_s1 + $0xa14] ss:$8 sps:$4 sm:$0xff]  }
  0xc7   :  { %2850 = vmatpush1.bf16.msra.mxu1 %v4232_v18  ;;  %v32_v18 = vld [vmem:[%s5941_s0 + $0x30] sm:$0xff] }
  0xc8   :  { %3234 = vmatpush1.bf16.msra.mxu0 %v4235_v19  ;;  %2852 = vmatprep.subr.bf16.mxu1 %v4236_v22  ;;  %v44_v19 = vld [vmem:[%s5941_s0 + $0x90] sm:$0xff] }
  0xc9   :  { %3236 = vmatprep.subr.bf16.mxu0 %v4239_v23  ;;  %v4328_v22 = vld [vmem:[%s5940_s1 + $0x410] ss:$8 sps:$4 sm:$0xff]  }
  0xca   :  { %v4331_v23 = vld [vmem:[%s5940_s1 + $0xa10] ss:$8 sps:$4 sm:$0xff]  }
  0xcb   :  { %2854 = vmatpush1.bf16.msra.mxu1 %v4238_v24  ;;  %v35_v24 = vld [vmem:[%s5941_s0 + $0x48] sm:$0xff] }
  0xcc   :  { %3238 = vmatpush1.bf16.msra.mxu0 %v4241_v25  ;;  %2856 = vmatprep.subr.bf16.mxu1 %v4242_v26  ;;  %v47_v25 = vld [vmem:[%s5941_s0 + $0xa8] sm:$0xff] }
  0xcd   :  { %3240 = vmatprep.subr.bf16.mxu0 %v4245_v27  ;;  %v4332_v26 = vld [vmem:[%s5940_s1 + $0x424] ss:$8 sps:$4 sm:$0xff]  }
  0xce   :  { %v4335_v27 = vld [vmem:[%s5940_s1 + $0xa24] ss:$8 sps:$4 sm:$0xff]  }
  0xcf   :  { %2858 = vmatpush1.bf16.msra.mxu1 %v4244_v28  ;;  %v4334_v28 = vld [vmem:[%s5940_s1 + $0x420] ss:$8 sps:$4 sm:$0xff]  }
  0xd0   :  { %3242 = vmatpush1.bf16.msra.mxu0 %v4247_v29  ;;  %2860 = vmatprep.subr.bf16.mxu1 %v4248_v30  ;;  %v4337_v29 = vld [vmem:[%s5940_s1 + $0xa20] ss:$8 sps:$4 sm:$0xff]   ;;  %v4338_v30 = vld [vmem:[%s5940_s1 + $0x434] ss:$8 sps:$4 sm:$0xff]  }
  0xd1   :  { %3244 = vmatprep.subr.bf16.mxu0 %v4251_v31  ;;  %v4341_v31 = vld [vmem:[%s5940_s1 + $0xa34] ss:$8 sps:$4 sm:$0xff]  }
  0xd3   :  { %2862 = vmatpush1.bf16.msra.mxu1 %v4250_v32  ;;  %v4340_v32 = vld [vmem:[%s5940_s1 + $0x430] ss:$8 sps:$4 sm:$0xff]  }
  0xd4   :  { %3246 = vmatpush1.bf16.msra.mxu0 %v4253_v33  ;;  %2864 = vmatprep.subr.bf16.mxu1 %v4254_v34  ;;  %v4343_v33 = vld [vmem:[%s5940_s1 + $0xa30] ss:$8 sps:$4 sm:$0xff]   ;;  %v4344_v34 = vld [vmem:[%s5940_s1 + $0x444] ss:$8 sps:$4 sm:$0xff]  }
  0xd5   :  { %3248 = vmatprep.subr.bf16.mxu0 %v4257_v35  ;;  %v4347_v35 = vld [vmem:[%s5940_s1 + $0xa44] ss:$8 sps:$4 sm:$0xff]  }
  0xd7   :  { %2866 = vmatpush1.bf16.msra.mxu1 %v4256_v36  ;;  %v4346_v36 = vld [vmem:[%s5940_s1 + $0x440] ss:$8 sps:$4 sm:$0xff]  }
  0xd8   :  { %3250 = vmatpush1.bf16.msra.mxu0 %v4259_v37  ;;  %2868 = vmatprep.subr.bf16.mxu1 %v4260_v38  ;;  %v4349_v37 = vld [vmem:[%s5940_s1 + $0xa40] ss:$8 sps:$4 sm:$0xff]   ;;  %v4350_v38 = vld [vmem:[%s5940_s1 + $0x454] ss:$8 sps:$4 sm:$0xff]  }
  0xd9   :  { %3252 = vmatprep.subr.bf16.mxu0 %v4263_v39  ;;  %v4353_v39 = vld [vmem:[%s5940_s1 + $0xa54] ss:$8 sps:$4 sm:$0xff]  }
  0xdb   :  { %2870 = vmatpush1.bf16.msra.mxu1 %v4262_v40  ;;  %v4352_v40 = vld [vmem:[%s5940_s1 + $0x450] ss:$8 sps:$4 sm:$0xff]  }
  0xdc   :  { %3254 = vmatpush1.bf16.msra.mxu0 %v4265_v41  ;;  %2872 = vmatprep.subr.bf16.mxu1 %v4266_v42  ;;  %v4355_v41 = vld [vmem:[%s5940_s1 + $0xa50] ss:$8 sps:$4 sm:$0xff]   ;;  %v4356_v42 = vld [vmem:[%s5940_s1 + $0x464] ss:$8 sps:$4 sm:$0xff]  }
  0xdd   :  { %3256 = vmatprep.subr.bf16.mxu0 %v4269_v43  ;;  %v4359_v43 = vld [vmem:[%s5940_s1 + $0xa64] ss:$8 sps:$4 sm:$0xff]  }
  0xdf   :  { %2874 = vmatpush1.bf16.msra.mxu1 %v4268_v44  ;;  %v4358_v44 = vld [vmem:[%s5940_s1 + $0x460] ss:$8 sps:$4 sm:$0xff]  }
  0xe0   :  { %3258 = vmatpush1.bf16.msra.mxu0 %v4271_v45  ;;  %2876 = vmatprep.subr.bf16.mxu1 %v4272_v46  ;;  %v4361_v45 = vld [vmem:[%s5940_s1 + $0xa60] ss:$8 sps:$4 sm:$0xff]   ;;  %v4362_v46 = vld [vmem:[%s5940_s1 + $0x474] ss:$8 sps:$4 sm:$0xff]  }
  0xe1   :  { %3260 = vmatprep.subr.bf16.mxu0 %v4275_v47  ;;  %v4365_v47 = vld [vmem:[%s5940_s1 + $0xa74] ss:$8 sps:$4 sm:$0xff]  }
  0xe3   :  { %2878 = vmatpush1.bf16.msra.mxu1 %v4274_v48  ;;  %v4364_v48 = vld [vmem:[%s5940_s1 + $0x470] ss:$8 sps:$4 sm:$0xff]  }
  0xe4   :  { %3262 = vmatpush1.bf16.msra.mxu0 %v4277_v49  ;;  %2880 = vmatprep.subr.bf16.mxu1 %v4278_v50  ;;  %v4367_v49 = vld [vmem:[%s5940_s1 + $0xa70] ss:$8 sps:$4 sm:$0xff]   ;;  %v4368_v50 = vld [vmem:[%s5940_s1 + $0x484] ss:$8 sps:$4 sm:$0xff]  }
  0xe5   :  { %3264 = vmatprep.subr.bf16.mxu0 %v4281_v51  ;;  %v4371_v51 = vld [vmem:[%s5940_s1 + $0xa84] ss:$8 sps:$4 sm:$0xff]  }
  0xe7   :  { %2882 = vmatpush1.bf16.msra.mxu1 %v4280_v52  ;;  %v4370_v52 = vld [vmem:[%s5940_s1 + $0x480] ss:$8 sps:$4 sm:$0xff]  }
  0xe8   :  { %3266 = vmatpush1.bf16.msra.mxu0 %v4283_v53  ;;  %2884 = vmatprep.subr.bf16.mxu1 %v4284_v54  ;;  %v4373_v53 = vld [vmem:[%s5940_s1 + $0xa80] ss:$8 sps:$4 sm:$0xff]   ;;  %v4374_v54 = vld [vmem:[%s5940_s1 + $0x494] ss:$8 sps:$4 sm:$0xff]  }
  0xe9   :  { %3268 = vmatprep.subr.bf16.mxu0 %v4287_v55  ;;  %v4377_v55 = vld [vmem:[%s5940_s1 + $0xa94] ss:$8 sps:$4 sm:$0xff]  }
  0xeb   :  { %2886 = vmatpush1.bf16.msra.mxu1 %v4286_v56  ;;  %v4376_v56 = vld [vmem:[%s5940_s1 + $0x490] ss:$8 sps:$4 sm:$0xff]  }
  0xec   :  { %3270 = vmatpush1.bf16.msra.mxu0 %v4289_v57  ;;  %2888 = vmatprep.subr.bf16.mxu1 %v4290_v58  ;;  %v4379_v57 = vld [vmem:[%s5940_s1 + $0xa90] ss:$8 sps:$4 sm:$0xff]   ;;  %v4380_v58 = vld [vmem:[%s5940_s1 + $0x4a4] ss:$8 sps:$4 sm:$0xff]  }
  0xed   :  { %3272 = vmatprep.subr.bf16.mxu0 %v4293_v59  ;;  %v4383_v59 = vld [vmem:[%s5940_s1 + $0xaa4] ss:$8 sps:$4 sm:$0xff]  }
  0xef   :  { %2890 = vmatpush1.bf16.msra.mxu1 %v4292_v60  ;;  %v4382_v60 = vld [vmem:[%s5940_s1 + $0x4a0] ss:$8 sps:$4 sm:$0xff]  }
  0xf0   :  { %3274 = vmatpush1.bf16.msra.mxu0 %v4295_v61  ;;  %2892 = vmatprep.subr.bf16.mxu1 %v4296_v62  ;;  %v4385_v61 = vld [vmem:[%s5940_s1 + $0xaa0] ss:$8 sps:$4 sm:$0xff]   ;;  %v4386_v62 = vld [vmem:[%s5940_s1 + $0x4b4] ss:$8 sps:$4 sm:$0xff]  }
  0xf1   :  { %3276 = vmatprep.subr.bf16.mxu0 %v4299_v63  ;;  %v4389_v63 = vld [vmem:[%s5940_s1 + $0xab4] ss:$8 sps:$4 sm:$0xff]  }
  0xf3   :  { %2894 = vmatpush1.bf16.msra.mxu1 %v4298_v0  ;;  %v4388_v0 = vld [vmem:[%s5940_s1 + $0x4b0] ss:$8 sps:$4 sm:$0xff]  }
  0xf4   :  { %3278 = vmatpush1.bf16.msra.mxu0 %v4301_v1  ;;  %2896 = vmatprep.subr.bf16.mxu1 %v4302_v2  ;;  %v4391_v1 = vld [vmem:[%s5940_s1 + $0xab0] ss:$8 sps:$4 sm:$0xff]   ;;  %v4392_v2 = vld [vmem:[%s5940_s1 + $0x4c4] ss:$8 sps:$4 sm:$0xff]  }
  0xf5   :  { %3280 = vmatprep.subr.bf16.mxu0 %v4305_v3  ;;  %v4395_v3 = vld [vmem:[%s5940_s1 + $0xac4] ss:$8 sps:$4 sm:$0xff]  }
  0xf7   :  { %2898 = vmatpush1.bf16.msra.mxu1 %v4304_v4  ;;  %v4394_v4 = vld [vmem:[%s5940_s1 + $0x4c0] ss:$8 sps:$4 sm:$0xff]  }
  0xf8   :  { %3282 = vmatpush1.bf16.msra.mxu0 %v4307_v5  ;;  %2900 = vmatprep.subr.bf16.mxu1 %v4308_v6  ;;  %v4397_v5 = vld [vmem:[%s5940_s1 + $0xac0] ss:$8 sps:$4 sm:$0xff]   ;;  %v4398_v6 = vld [vmem:[%s5940_s1 + $0x4d4] ss:$8 sps:$4 sm:$0xff]  }
  0xf9   :  { %3284 = vmatprep.subr.bf16.mxu0 %v4311_v7  ;;  %v4401_v7 = vld [vmem:[%s5940_s1 + $0xad4] ss:$8 sps:$4 sm:$0xff]  }
  0xfb   :  { %2902 = vmatpush1.bf16.msra.mxu1 %v4310_v8  ;;  %v4400_v8 = vld [vmem:[%s5940_s1 + $0x4d0] ss:$8 sps:$4 sm:$0xff]  }
  0xfc   :  { %3286 = vmatpush1.bf16.msra.mxu0 %v4313_v9  ;;  %2904 = vmatprep.subr.bf16.mxu1 %v4314_v10  ;;  %v4403_v9 = vld [vmem:[%s5940_s1 + $0xad0] ss:$8 sps:$4 sm:$0xff]   ;;  %v4404_v10 = vld [vmem:[%s5940_s1 + $0x4e4] ss:$8 sps:$4 sm:$0xff]  }
  0xfd   :  { %3288 = vmatprep.subr.bf16.mxu0 %v4317_v11  ;;  %v4407_v11 = vld [vmem:[%s5940_s1 + $0xae4] ss:$8 sps:$4 sm:$0xff]  }
  0xff   :  { %2906 = vmatpush1.bf16.msra.mxu1 %v4316_v12  ;;  %v4406_v12 = vld [vmem:[%s5940_s1 + $0x4e0] ss:$8 sps:$4 sm:$0xff]  }
 0x100   :  { %3290 = vmatpush1.bf16.msra.mxu0 %v4319_v13  ;;  %2908 = vmatprep.subr.bf16.mxu1 %v4320_v14  ;;  %v4409_v13 = vld [vmem:[%s5940_s1 + $0xae0] ss:$8 sps:$4 sm:$0xff]   ;;  %v4410_v14 = vld [vmem:[%s5940_s1 + $0x4f4] ss:$8 sps:$4 sm:$0xff]  }
 0x101   :  { %3292 = vmatprep.subr.bf16.mxu0 %v4323_v15  ;;  %v4413_v15 = vld [vmem:[%s5940_s1 + $0xaf4] ss:$8 sps:$4 sm:$0xff]  }
 0x102   :  { %1541 = vmatmul.mubr.f32.vlgmr.msra.gmra.mrb[0].mxu1 %v32_v18  ;;  %v4416_v18 = vld [vmem:[%s5940_s1 + $0x504] ss:$8 sps:$4 sm:$0xff]  }
 0x103   :  { %1967 = vmatmul.mubr.f32.vlgmr.msra.gmra.mrb[0].mxu0 %v44_v19  ;;  %2910 = vmatpush1.bf16.msra.mxu1 %v4322_v16  ;;  %v4412_v16 = vld [vmem:[%s5940_s1 + $0x4f0] ss:$8 sps:$4 sm:$0xff]   ;;  %v4419_v19 = vld [vmem:[%s5940_s1 + $0xb04] ss:$8 sps:$4 sm:$0xff]  }
 0x104   :  { %3294 = vmatpush1.bf16.msra.mxu0 %v4325_v17  ;;  %2912 = vmatprep.subr.bf16.mxu1 %v4326_v20  ;;  %v4415_v17 = vld [vmem:[%s5940_s1 + $0xaf0] ss:$8 sps:$4 sm:$0xff]   ;;  %v4418_v20 = vld [vmem:[%s5940_s1 + $0x500] ss:$8 sps:$4 sm:$0xff]  }
 0x105   :  { %3296 = vmatprep.subr.bf16.mxu0 %v4329_v21  ;;  %1611 = vmatprep.mubr.f32.mxu1 %v35_v24  ;;  %v4421_v21 = vld [vmem:[%s5940_s1 + $0xb00] ss:$8 sps:$4 sm:$0xff]   ;;  %v4422_v24 = vld [vmem:[%s5940_s1 + $0x514] ss:$8 sps:$4 sm:$0xff]  }
 0x106   :  { %2037 = vmatprep.mubr.f32.mxu0 %v47_v25  ;;  %v4425_v25 = vld [vmem:[%s5940_s1 + $0xb14] ss:$8 sps:$4 sm:$0xff]  }
 0x107   :  { %2914 = vmatpush1.bf16.msra.mxu1 %v4328_v22  ;;  %v34_v22 = vld [vmem:[%s5941_s0 + $0x40] sm:$0xff] }
 0x108   :  { %3298 = vmatpush1.bf16.msra.mxu0 %v4331_v23  ;;  %2916 = vmatprep.subr.bf16.mxu1 %v4332_v26  ;;  %v46_v23 = vld [vmem:[%s5941_s0 + $0xa0] sm:$0xff]  ;;  %v37_v26 = vld [vmem:[%s5941_s0 + $0x58] sm:$0xff] }
 0x109   :  { %3300 = vmatprep.subr.bf16.mxu0 %v4335_v27  ;;  %v49_v27 = vld [vmem:[%s5941_s0 + $0xb8] sm:$0xff] }
 0x10b   :  { %2918 = vmatpush1.bf16.msra.mxu1 %v4334_v28  ;;  %v4424_v28 = vld [vmem:[%s5940_s1 + $0x510] ss:$8 sps:$4 sm:$0xff]  }
 0x10c   :  { %3302 = vmatpush1.bf16.msra.mxu0 %v4337_v29  ;;  %2920 = vmatprep.subr.bf16.mxu1 %v4338_v30  ;;  %v4427_v29 = vld [vmem:[%s5940_s1 + $0xb10] ss:$8 sps:$4 sm:$0xff]   ;;  %v4428_v30 = vld [vmem:[%s5940_s1 + $0x524] ss:$8 sps:$4 sm:$0xff]  }
 0x10d   :  { %3304 = vmatprep.subr.bf16.mxu0 %v4341_v31  ;;  %v4431_v31 = vld [vmem:[%s5940_s1 + $0xb24] ss:$8 sps:$4 sm:$0xff]  }
 0x10f   :  { %2922 = vmatpush1.bf16.msra.mxu1 %v4340_v32  ;;  %v4430_v32 = vld [vmem:[%s5940_s1 + $0x520] ss:$8 sps:$4 sm:$0xff]  }
 0x110   :  { %3306 = vmatpush1.bf16.msra.mxu0 %v4343_v33  ;;  %2924 = vmatprep.subr.bf16.mxu1 %v4344_v34  ;;  %v4433_v33 = vld [vmem:[%s5940_s1 + $0xb20] ss:$8 sps:$4 sm:$0xff]   ;;  %v4434_v34 = vld [vmem:[%s5940_s1 + $0x534] ss:$8 sps:$4 sm:$0xff]  }
 0x111   :  { %3308 = vmatprep.subr.bf16.mxu0 %v4347_v35  ;;  %v4437_v35 = vld [vmem:[%s5940_s1 + $0xb34] ss:$8 sps:$4 sm:$0xff]  }
 0x113   :  { %2926 = vmatpush1.bf16.msra.mxu1 %v4346_v36  ;;  %v4436_v36 = vld [vmem:[%s5940_s1 + $0x530] ss:$8 sps:$4 sm:$0xff]  }
 0x114   :  { %3310 = vmatpush1.bf16.msra.mxu0 %v4349_v37  ;;  %2928 = vmatprep.subr.bf16.mxu1 %v4350_v38  ;;  %v4439_v37 = vld [vmem:[%s5940_s1 + $0xb30] ss:$8 sps:$4 sm:$0xff]   ;;  %v4440_v38 = vld [vmem:[%s5940_s1 + $0x544] ss:$8 sps:$4 sm:$0xff]  }
 0x115   :  { %3312 = vmatprep.subr.bf16.mxu0 %v4353_v39  ;;  %v4443_v39 = vld [vmem:[%s5940_s1 + $0xb44] ss:$8 sps:$4 sm:$0xff]  }
 0x117   :  { %2930 = vmatpush1.bf16.msra.mxu1 %v4352_v40  ;;  %v4442_v40 = vld [vmem:[%s5940_s1 + $0x540] ss:$8 sps:$4 sm:$0xff]  }
 0x118   :  { %3314 = vmatpush1.bf16.msra.mxu0 %v4355_v41  ;;  %2932 = vmatprep.subr.bf16.mxu1 %v4356_v42  ;;  %v4445_v41 = vld [vmem:[%s5940_s1 + $0xb40] ss:$8 sps:$4 sm:$0xff]   ;;  %v4446_v42 = vld [vmem:[%s5940_s1 + $0x554] ss:$8 sps:$4 sm:$0xff]  }
 0x119   :  { %3316 = vmatprep.subr.bf16.mxu0 %v4359_v43  ;;  %v4449_v43 = vld [vmem:[%s5940_s1 + $0xb54] ss:$8 sps:$4 sm:$0xff]  }
 0x11b   :  { %2934 = vmatpush1.bf16.msra.mxu1 %v4358_v44  ;;  %v4448_v44 = vld [vmem:[%s5940_s1 + $0x550] ss:$8 sps:$4 sm:$0xff]  }
 0x11c   :  { %3318 = vmatpush1.bf16.msra.mxu0 %v4361_v45  ;;  %2936 = vmatprep.subr.bf16.mxu1 %v4362_v46  ;;  %v4451_v45 = vld [vmem:[%s5940_s1 + $0xb50] ss:$8 sps:$4 sm:$0xff]   ;;  %v4452_v46 = vld [vmem:[%s5940_s1 + $0x564] ss:$8 sps:$4 sm:$0xff]  }
 0x11d   :  { %3320 = vmatprep.subr.bf16.mxu0 %v4365_v47  ;;  %v4455_v47 = vld [vmem:[%s5940_s1 + $0xb64] ss:$8 sps:$4 sm:$0xff]  }
 0x11f   :  { %2938 = vmatpush1.bf16.msra.mxu1 %v4364_v48  ;;  %v4454_v48 = vld [vmem:[%s5940_s1 + $0x560] ss:$8 sps:$4 sm:$0xff]  }
 0x120   :  { %3322 = vmatpush1.bf16.msra.mxu0 %v4367_v49  ;;  %2940 = vmatprep.subr.bf16.mxu1 %v4368_v50  ;;  %v4457_v49 = vld [vmem:[%s5940_s1 + $0xb60] ss:$8 sps:$4 sm:$0xff]   ;;  %v4458_v50 = vld [vmem:[%s5940_s1 + $0x574] ss:$8 sps:$4 sm:$0xff]  }
 0x121   :  { %3324 = vmatprep.subr.bf16.mxu0 %v4371_v51  ;;  %v4461_v51 = vld [vmem:[%s5940_s1 + $0xb74] ss:$8 sps:$4 sm:$0xff]  }
 0x123   :  { %2942 = vmatpush1.bf16.msra.mxu1 %v4370_v52  ;;  %v4460_v52 = vld [vmem:[%s5940_s1 + $0x570] ss:$8 sps:$4 sm:$0xff]  }
 0x124   :  { %3326 = vmatpush1.bf16.msra.mxu0 %v4373_v53  ;;  %2944 = vmatprep.subr.bf16.mxu1 %v4374_v54  ;;  %v4463_v53 = vld [vmem:[%s5940_s1 + $0xb70] ss:$8 sps:$4 sm:$0xff]   ;;  %v4464_v54 = vld [vmem:[%s5940_s1 + $0x584] ss:$8 sps:$4 sm:$0xff]  }
 0x125   :  { %3328 = vmatprep.subr.bf16.mxu0 %v4377_v55  ;;  %v4467_v55 = vld [vmem:[%s5940_s1 + $0xb84] ss:$8 sps:$4 sm:$0xff]  }
 0x127   :  { %2946 = vmatpush1.bf16.msra.mxu1 %v4376_v56  ;;  %v4466_v56 = vld [vmem:[%s5940_s1 + $0x580] ss:$8 sps:$4 sm:$0xff]  }
 0x128   :  { %3330 = vmatpush1.bf16.msra.mxu0 %v4379_v57  ;;  %2948 = vmatprep.subr.bf16.mxu1 %v4380_v58  ;;  %v4469_v57 = vld [vmem:[%s5940_s1 + $0xb80] ss:$8 sps:$4 sm:$0xff]   ;;  %v4470_v58 = vld [vmem:[%s5940_s1 + $0x594] ss:$8 sps:$4 sm:$0xff]  }
 0x129   :  { %3332 = vmatprep.subr.bf16.mxu0 %v4383_v59  ;;  %v4473_v59 = vld [vmem:[%s5940_s1 + $0xb94] ss:$8 sps:$4 sm:$0xff]  }
 0x12b   :  { %2950 = vmatpush1.bf16.msra.mxu1 %v4382_v60  ;;  %v4472_v60 = vld [vmem:[%s5940_s1 + $0x590] ss:$8 sps:$4 sm:$0xff]  }
 0x12c   :  { %3334 = vmatpush1.bf16.msra.mxu0 %v4385_v61  ;;  %2952 = vmatprep.subr.bf16.mxu1 %v4386_v62  ;;  %v4475_v61 = vld [vmem:[%s5940_s1 + $0xb90] ss:$8 sps:$4 sm:$0xff]   ;;  %v4476_v62 = vld [vmem:[%s5940_s1 + $0x5a4] ss:$8 sps:$4 sm:$0xff]  }
 0x12d   :  { %3336 = vmatprep.subr.bf16.mxu0 %v4389_v63  ;;  %v4479_v63 = vld [vmem:[%s5940_s1 + $0xba4] ss:$8 sps:$4 sm:$0xff]  }
 0x12f   :  { %2954 = vmatpush1.bf16.msra.mxu1 %v4388_v0  ;;  %v4478_v0 = vld [vmem:[%s5940_s1 + $0x5a0] ss:$8 sps:$4 sm:$0xff]  }
 0x130   :  { %3338 = vmatpush1.bf16.msra.mxu0 %v4391_v1  ;;  %2956 = vmatprep.subr.bf16.mxu1 %v4392_v2  ;;  %v4481_v1 = vld [vmem:[%s5940_s1 + $0xba0] ss:$8 sps:$4 sm:$0xff]   ;;  %v4482_v2 = vld [vmem:[%s5940_s1 + $0x5b4] ss:$8 sps:$4 sm:$0xff]  }
 0x131   :  { %3340 = vmatprep.subr.bf16.mxu0 %v4395_v3  ;;  %v4485_v3 = vld [vmem:[%s5940_s1 + $0xbb4] ss:$8 sps:$4 sm:$0xff]  }
 0x133   :  { %2958 = vmatpush1.bf16.msra.mxu1 %v4394_v4  ;;  %v4484_v4 = vld [vmem:[%s5940_s1 + $0x5b0] ss:$8 sps:$4 sm:$0xff]  }
 0x134   :  { %3342 = vmatpush1.bf16.msra.mxu0 %v4397_v5  ;;  %2960 = vmatprep.subr.bf16.mxu1 %v4398_v6  ;;  %v4487_v5 = vld [vmem:[%s5940_s1 + $0xbb0] ss:$8 sps:$4 sm:$0xff]   ;;  %v4488_v6 = vld [vmem:[%s5940_s1 + $0x5c4] ss:$8 sps:$4 sm:$0xff]  }
 0x135   :  { %3344 = vmatprep.subr.bf16.mxu0 %v4401_v7  ;;  %v4491_v7 = vld [vmem:[%s5940_s1 + $0xbc4] ss:$8 sps:$4 sm:$0xff]  }
 0x137   :  { %2962 = vmatpush1.bf16.msra.mxu1 %v4400_v8  ;;  %v4490_v8 = vld [vmem:[%s5940_s1 + $0x5c0] ss:$8 sps:$4 sm:$0xff]  }
 0x138   :  { %3346 = vmatpush1.bf16.msra.mxu0 %v4403_v9  ;;  %2964 = vmatprep.subr.bf16.mxu1 %v4404_v10  ;;  %v4493_v9 = vld [vmem:[%s5940_s1 + $0xbc0] ss:$8 sps:$4 sm:$0xff]   ;;  %v4494_v10 = vld [vmem:[%s5940_s1 + $0x5d4] ss:$8 sps:$4 sm:$0xff]  }
 0x139   :  { %3348 = vmatprep.subr.bf16.mxu0 %v4407_v11  ;;  %v4497_v11 = vld [vmem:[%s5940_s1 + $0xbd4] ss:$8 sps:$4 sm:$0xff]  }
 0x13b   :  { %2966 = vmatpush1.bf16.msra.mxu1 %v4406_v12  ;;  %v4496_v12 = vld [vmem:[%s5940_s1 + $0x5d0] ss:$8 sps:$4 sm:$0xff]  }
 0x13c   :  { %3350 = vmatpush1.bf16.msra.mxu0 %v4409_v13  ;;  %2968 = vmatprep.subr.bf16.mxu1 %v4410_v14  ;;  %v4499_v13 = vld [vmem:[%s5940_s1 + $0xbd0] ss:$8 sps:$4 sm:$0xff]   ;;  %v4500_v14 = vld [vmem:[%s5940_s1 + $0x5e4] ss:$8 sps:$4 sm:$0xff]  }
 0x13d   :  { %3352 = vmatprep.subr.bf16.mxu0 %v4413_v15  ;;  %v4503_v15 = vld [vmem:[%s5940_s1 + $0xbe4] ss:$8 sps:$4 sm:$0xff]  }
 0x13f   :  { %2970 = vmatpush1.bf16.msra.mxu1 %v4412_v16  ;;  %v4502_v16 = vld [vmem:[%s5940_s1 + $0x5e0] ss:$8 sps:$4 sm:$0xff]  }
 0x140   :  { %3354 = vmatpush1.bf16.msra.mxu0 %v4415_v17  ;;  %2972 = vmatprep.subr.bf16.mxu1 %v4416_v18  ;;  %v4505_v17 = vld [vmem:[%s5940_s1 + $0xbe0] ss:$8 sps:$4 sm:$0xff]   ;;  %v4506_v18 = vld [vmem:[%s5940_s1 + $0x5f4] ss:$8 sps:$4 sm:$0xff]  }
 0x141   :  { %3356 = vmatprep.subr.bf16.mxu0 %v4419_v19  ;;  %v4509_v19 = vld [vmem:[%s5940_s1 + $0xbf4] ss:$8 sps:$4 sm:$0xff]  }
 0x142   :  { %1612 = vmatmul.mubr.f32.vlgmr.msra.gmra.mrb[0].mxu1 %v34_v22  ;;  %v4512_v22 = vld [vmem:[%s5940_s1 + $0xc04] ss:$8 sps:$4 sm:$0xff]  }
 0x143   :  { %2038 = vmatmul.mubr.f32.vlgmr.msra.gmra.mrb[0].mxu0 %v46_v23  ;;  %2974 = vmatpush1.bf16.msra.mxu1 %v4418_v20  ;;  %v4508_v20 = vld [vmem:[%s5940_s1 + $0x5f0] ss:$8 sps:$4 sm:$0xff]  }
 0x144   :  { %3358 = vmatpush1.bf16.msra.mxu0 %v4421_v21  ;;  %2976 = vmatprep.subr.bf16.mxu1 %v4422_v24  ;;  %v4511_v21 = vld [vmem:[%s5940_s1 + $0xbf0] ss:$8 sps:$4 sm:$0xff]   ;;  %v4514_v24 = vld [vmem:[%s5940_s1 + $0xc00] ss:$8 sps:$4 sm:$0xff]  }
 0x145   :  { %3360 = vmatprep.subr.bf16.mxu0 %v4425_v25  ;;  %1682 = vmatprep.mubr.f32.mxu1 %v37_v26  ;;  %v36_v23 = vld [vmem:[%s5941_s0 + $0x50] sm:$0xff] }
 0x146   :  { %2108 = vmatprep.mubr.f32.mxu0 %v49_v27  ;;  %v48_v25 = vld [vmem:[%s5941_s0 + $0xb0] sm:$0xff] }
 0x147   :  { %2978 = vmatpush1.bf16.msra.mxu1 %v4424_v28  ;;  %v4515_v26 = vld [vmem:[%s5940_s1 + $0xc14] ss:$8 sps:$4 sm:$0xff]   ;;  %v4517_v27 = vld [vmem:[%s5940_s1 + $0xc10] ss:$8 sps:$4 sm:$0xff]   ;;  %v4536_v28 = vmov 0.0  }
 0x148   :  { %3362 = vmatpush1.bf16.msra.mxu0 %v4427_v29  ;;  %2980 = vmatprep.subr.bf16.mxu1 %v4428_v30  ;;  %v4518_v29 = vld [vmem:[%s5940_s1 + $0xc24] ss:$8 sps:$4 sm:$0xff]   ;;  %v4520_v30 = vld [vmem:[%s5940_s1 + $0xc20] ss:$8 sps:$4 sm:$0xff]  }
 0x149   :  { %3364 = vmatprep.subr.bf16.mxu0 %v4431_v31  ;;  %v4521_v31 = vld [vmem:[%s5940_s1 + $0xc34] ss:$8 sps:$4 sm:$0xff]  }
 0x14b   :  { %2982 = vmatpush1.bf16.msra.mxu1 %v4430_v32  ;;  %v4523_v32 = vld [vmem:[%s5940_s1 + $0xc30] ss:$8 sps:$4 sm:$0xff]  }
 0x14c   :  { %3366 = vmatpush1.bf16.msra.mxu0 %v4433_v33  ;;  %2984 = vmatprep.subr.bf16.mxu1 %v4434_v34  ;;  %v4524_v33 = vld [vmem:[%s5940_s1 + $0xc44] ss:$8 sps:$4 sm:$0xff]   ;;  %v4526_v34 = vld [vmem:[%s5940_s1 + $0xc40] ss:$8 sps:$4 sm:$0xff]  }
 0x14d   :  { %3368 = vmatprep.subr.bf16.mxu0 %v4437_v35  ;;  %v4527_v35 = vld [vmem:[%s5940_s1 + $0xc54] ss:$8 sps:$4 sm:$0xff]  }
 0x14f   :  { %2986 = vmatpush1.bf16.msra.mxu1 %v4436_v36  ;;  %v4529_v36 = vld [vmem:[%s5940_s1 + $0xc50] ss:$8 sps:$4 sm:$0xff]  }
 0x150   :  { %3370 = vmatpush1.bf16.msra.mxu0 %v4439_v37  ;;  %2988 = vmatprep.subr.bf16.mxu1 %v4440_v38  ;;  %v4530_v37 = vld [vmem:[%s5940_s1 + $0xc64] ss:$8 sps:$4 sm:$0xff]   ;;  %v4532_v38 = vld [vmem:[%s5940_s1 + $0xc60] ss:$8 sps:$4 sm:$0xff]  }
 0x151   :  { %3372 = vmatprep.subr.bf16.mxu0 %v4443_v39  ;;  %v4533_v39 = vld [vmem:[%s5940_s1 + $0xc74] ss:$8 sps:$4 sm:$0xff]  }
 0x153   :  { %2990 = vmatpush1.bf16.msra.mxu1 %v4442_v40  ;;  %v4535_v40 = vld [vmem:[%s5940_s1 + $0xc70] ss:$8 sps:$4 sm:$0xff]  }
 0x154   :  { %3374 = vmatpush1.bf16.msra.mxu0 %v4445_v41  ;;  %2992 = vmatprep.subr.bf16.mxu1 %v4446_v42  ;;  %v50_v41 = vld [vmem:[%s5941_s0 + $0xc0] sm:$0xff] }
 0x155   :  { %3376 = vmatprep.subr.bf16.mxu0 %v4449_v43  ;;  %v2549_v42 = vld [vmem:[%s5942_s3 + $0x40] sm:$0xff]  }
 0x156   :  { %v2447_v43 = vld [vmem:[%s5942_s3] sm:$0xff]  }
 0x157   :  { %2994 = vmatpush1.bf16.msra.mxu1 %v4448_v44  ;;  %v2550_v44 = vld [vmem:[%s5942_s3 + $0x48] sm:$0xff]  }
 0x158   :  { %3378 = vmatpush1.bf16.msra.mxu0 %v4451_v45  ;;  %2996 = vmatprep.subr.bf16.mxu1 %v4452_v46  ;;  %v2542_v45 = vld [vmem:[%s5942_s3 + $0x8] sm:$0xff]   ;;  %v2551_v46 = vld [vmem:[%s5942_s3 + $0x50] sm:$0xff]  }
 0x159   :  { %3380 = vmatprep.subr.bf16.mxu0 %v4455_v47  ;;  %v2543_v47 = vld [vmem:[%s5942_s3 + $0x10] sm:$0xff]  }
 0x15b   :  { %2998 = vmatpush1.bf16.msra.mxu1 %v4454_v48  ;;  %v2552_v48 = vld [vmem:[%s5942_s3 + $0x58] sm:$0xff]  }
 0x15c   :  { %3382 = vmatpush1.bf16.msra.mxu0 %v4457_v49  ;;  %3000 = vmatprep.subr.bf16.mxu1 %v4458_v50  ;;  %v2544_v49 = vld [vmem:[%s5942_s3 + $0x18] sm:$0xff]   ;;  %v2553_v50 = vld [vmem:[%s5942_s3 + $0x60] sm:$0xff]  }
 0x15d   :  { %3384 = vmatprep.subr.bf16.mxu0 %v4461_v51  ;;  %v2545_v51 = vld [vmem:[%s5942_s3 + $0x20] sm:$0xff]  }
 0x15f   :  { %3002 = vmatpush1.bf16.msra.mxu1 %v4460_v52  ;;  %v2554_v52 = vld [vmem:[%s5942_s3 + $0x68] sm:$0xff]  }
 0x160   :  { %3386 = vmatpush1.bf16.msra.mxu0 %v4463_v53  ;;  %3004 = vmatprep.subr.bf16.mxu1 %v4464_v54  ;;  %v2546_v53 = vld [vmem:[%s5942_s3 + $0x28] sm:$0xff]   ;;  %v2555_v54 = vld [vmem:[%s5942_s3 + $0x70] sm:$0xff]  }
 0x161   :  { %3388 = vmatprep.subr.bf16.mxu0 %v4467_v55  ;;  %v2547_v55 = vld [vmem:[%s5942_s3 + $0x30] sm:$0xff]  }
 0x163   :  { %3006 = vmatpush1.bf16.msra.mxu1 %v4466_v56  ;;  %v2556_v56 = vld [vmem:[%s5942_s3 + $0x78] sm:$0xff]  }
 0x164   :  { %3390 = vmatpush1.bf16.msra.mxu0 %v4469_v57  ;;  %3008 = vmatprep.subr.bf16.mxu1 %v4470_v58  ;;  %v2548_v57 = vld [vmem:[%s5942_s3 + $0x38] sm:$0xff]   ;;  %v4537_v58 = vmov 0.0|0.0  }
 0x165   :  { %3392 = vmatprep.subr.bf16.mxu0 %v4473_v59 }
 0x167   :  { %3010 = vmatpush1.bf16.msra.mxu1 %v4472_v60 }
 0x168   :  { %3394 = vmatpush1.bf16.msra.mxu0 %v4475_v61  ;;  %3012 = vmatprep.subr.bf16.mxu1 %v4476_v62  ;;  %v1253_v61 = vlaneseq }
 0x169   :  { %3396 = vmatprep.subr.bf16.mxu0 %v4479_v63 }
 0x16a   :  { %v1254_v62 = vshrl.u32 %v1253_v61, 7 }
 0x16b   :  { %3014 = vmatpush1.bf16.msra.mxu1 %v4478_v0  ;;  %v1251_v0 = vld [vmem:[%s5943_s2] sm:$0x3] }
 0x16c   :  { %3398 = vmatpush1.bf16.msra.mxu0 %v4481_v1  ;;  %3016 = vmatprep.subr.bf16.mxu1 %v4482_v2  ;;  %v1255_v63 = vsub.s32 0, %v1254_v62  ;;  %v1259_v1 = vsub.s32 1, %v1254_v62 }
 0x16d   :  { %3400 = vmatprep.subr.bf16.mxu0 %v4485_v3 }
 0x16e   :  { %v1256_v2 = vrot.slane %v1251_v0, %v1255_v63  ;;  %v1260_v3 = vrot.slane %v1251_v0, %v1259_v1 }
 0x16f   :  { %3018 = vmatpush1.bf16.msra.mxu1 %v4484_v4 }
 0x170   :  { %3402 = vmatpush1.bf16.msra.mxu0 %v4487_v5  ;;  %3020 = vmatprep.subr.bf16.mxu1 %v4488_v6 }
 0x171   :  { %3404 = vmatprep.subr.bf16.mxu0 %v4491_v7 }
 0x173   :  { %3022 = vmatpush1.bf16.msra.mxu1 %v4490_v8 }
 0x174   :  { %3406 = vmatpush1.bf16.msra.mxu0 %v4493_v9  ;;  %3024 = vmatprep.subr.bf16.mxu1 %v4494_v10 }
 0x175   :  { %3408 = vmatprep.subr.bf16.mxu0 %v4497_v11 }
 0x177   :  { %3026 = vmatpush1.bf16.msra.mxu1 %v4496_v12  ;;  %v2511_v12 = vld [vmem:[%s5944_s5] sm:$0xff]  }
 0x178   :  { %3410 = vmatpush1.bf16.msra.mxu0 %v4499_v13  ;;  %3028 = vmatprep.subr.bf16.mxu1 %v4500_v14  ;;  %v2557_v13 = vld [vmem:[%s5944_s5 + $0x8] sm:$0xff]   ;;  %v2558_v14 = vld [vmem:[%s5944_s5 + $0x10] sm:$0xff]  }
 0x179   :  { %3412 = vmatprep.subr.bf16.mxu0 %v4503_v15  ;;  %v2559_v15 = vld [vmem:[%s5944_s5 + $0x18] sm:$0xff]  }
 0x17b   :  { %3030 = vmatpush1.bf16.msra.mxu1 %v4502_v16  ;;  %v2560_v16 = vld [vmem:[%s5944_s5 + $0x20] sm:$0xff]  }
 0x17c   :  { %3414 = vmatpush1.bf16.msra.mxu0 %v4505_v17  ;;  %3032 = vmatprep.subr.bf16.mxu1 %v4506_v18  ;;  %v2561_v17 = vld [vmem:[%s5944_s5 + $0x28] sm:$0xff]   ;;  %v2562_v18 = vld [vmem:[%s5944_s5 + $0x30] sm:$0xff]  }
 0x17d   :  { %3416 = vmatprep.subr.bf16.mxu0 %v4509_v19  ;;  %v2563_v19 = vld [vmem:[%s5944_s5 + $0x38] sm:$0xff]  }
 0x17f   :  { %3034 = vmatpush1.bf16.msra.mxu1 %v4508_v20 }
 0x180   :  { %3418 = vmatpush1.bf16.msra.mxu0 %v4511_v21  ;;  %3452 = vmatprep.subr.bf16.mxu1 %v2549_v42  ;;  %v2444_v21 = vld [vmem:[%s5945_s4] ss:$0 sm:$0xff] }
 0x181   :  { %3420 = vmatprep.subr.bf16.mxu0 %v4512_v22 }
 0x182   :  { %1683 = vmatmul.mubr.f32.vlgmr.msra.gmra.mrb[0].mxu1 %v36_v23 }
 0x183   :  { %2109 = vmatmul.mubr.f32.vlgmr.msra.gmra.mrb[0].mxu0 %v48_v25  ;;  %3454 = vmatpush3.bf16.msra.mxu1 %v2447_v43 }
 0x184   :  { %3422 = vmatpush1.bf16.msra.mxu0 %v4514_v24  ;;  %2179 = vmatprep.mubr.f32.mxu0 %v4536_v28 }
 0x185   :  { %3424 = vmatprep.subr.bf16.mxu0 %v4515_v26  ;;  %3456 = vmatprep.subr.bf16.mxu1 %v2550_v44  ;;  %v2445_v26 = vld [vmem:[%s5946_s6] ss:$0 sm:$0xff] }
 0x187   :  { %3458 = vmatpush3.bf16.msra.mxu1 %v2542_v45 }
 0x188   :  { %3426 = vmatpush1.bf16.msra.mxu0 %v4517_v27  ;;  %3460 = vmatprep.subr.bf16.mxu1 %v2551_v46 }
 0x189   :  { %3428 = vmatprep.subr.bf16.mxu0 %v4518_v29 }
 0x18b   :  { %3462 = vmatpush3.bf16.msra.mxu1 %v2543_v47 }
 0x18c   :  { %3430 = vmatpush1.bf16.msra.mxu0 %v4520_v30  ;;  %3464 = vmatprep.subr.bf16.mxu1 %v2552_v48 }
 0x18d   :  { %3432 = vmatprep.subr.bf16.mxu0 %v4521_v31 }
 0x18f   :  { %3466 = vmatpush3.bf16.msra.mxu1 %v2544_v49 }
 0x190   :  { %3434 = vmatpush1.bf16.msra.mxu0 %v4523_v32  ;;  %3468 = vmatprep.subr.bf16.mxu1 %v2553_v50 }
 0x191   :  { %3436 = vmatprep.subr.bf16.mxu0 %v4524_v33 }
 0x193   :  { %3470 = vmatpush3.bf16.msra.mxu1 %v2545_v51 }
 0x194   :  { %3438 = vmatpush1.bf16.msra.mxu0 %v4526_v34  ;;  %3472 = vmatprep.subr.bf16.mxu1 %v2554_v52 }
 0x195   :  { %3440 = vmatprep.subr.bf16.mxu0 %v4527_v35 }
 0x197   :  { %3474 = vmatpush3.bf16.msra.mxu1 %v2546_v53 }
 0x198   :  { %3442 = vmatpush1.bf16.msra.mxu0 %v4529_v36  ;;  %3476 = vmatprep.subr.bf16.mxu1 %v2555_v54 }
 0x199   :  { %3444 = vmatprep.subr.bf16.mxu0 %v4530_v37 }
 0x19b   :  { %3478 = vmatpush3.bf16.msra.mxu1 %v2547_v55 }
 0x19c   :  { %3446 = vmatpush1.bf16.msra.mxu0 %v4532_v38  ;;  %3480 = vmatprep.subr.bf16.mxu1 %v2556_v56 }
 0x19d   :  { %3448 = vmatprep.subr.bf16.mxu0 %v4533_v39 }
 0x19f   :  { %3482 = vmatpush3.bf16.msra.mxu1 %v2548_v57 }
 0x1a0   :  { %3450 = vmatpush1.bf16.msra.mxu0 %v4535_v40  ;;  %3483 = vmatprep.subr.bf16.mxu1 %v4537_v58 }
 0x1a3   :  { %2180 = vmatmul.mubr.f32.vlgmr.msra.gmra.mrb[0].mxu0 %v50_v41 }
 0x255   :  { %v1684_v59 = vpop.f32.mrb[0].mxu1 }
 0x256   :  { %v1686_v60 = vpop.f32.mrb[1].mxu1  ;;  %v3507_v4 = vadd.f32 %v1684_v59, %v1256_v2 }
 0x257   :  { %v3509_v5 = vadd.f32 %v1686_v60, %v1260_v3 }
 0x276   :  { %v2181_v6 = vpop.f32.mrb[0].mxu0 }
 0x277   :  { %v3508_v7 = vadd.f32 %v3507_v4, %v2181_v6  ;;  %v2183_v8 = vpop.f32.mrb[1].mxu0 }
 0x278   :  { %v3510_v9 = vadd.f32 %v3509_v5, %v2183_v8 }
 0x279   :  { %v2186_v11 = vmax.f32 %v3508_v7, 0.0 }
 0x27a   :  { %v2187_v10 = vmax.f32 %v3510_v9, 0.0 }
 0x27c   :  { %2323 = vmatprep.mubr.f32.mxu1 %v2187_v10 }
 0x27d   :  { %2324 = vmatmul.mubr.f32.vlgmr.msra.gmra.mrb[2].mxu1 %v2186_v11 }
 0x27e   :  { %3485 = vmatpush3.bf16.msra.mxu1 %v2511_v12  ;;  %2648 = vmatprep.mubr.msk.f32.mxu1 %vm4538_vm0, %v4536_v28 }
 0x27f   :  { %3486 = vmatprep.subr.bf16.mxu1 %v4537_v58 }
 0x282   :  { %3488 = vmatpush3.bf16.msra.mxu1 %v2557_v13 }
 0x283   :  { %3489 = vmatprep.subr.bf16.mxu1 %v4537_v58 }
 0x286   :  { %3491 = vmatpush3.bf16.msra.mxu1 %v2558_v14 }
 0x287   :  { %3492 = vmatprep.subr.bf16.mxu1 %v4537_v58 }
 0x28a   :  { %3494 = vmatpush3.bf16.msra.mxu1 %v2559_v15 }
 0x28b   :  { %3495 = vmatprep.subr.bf16.mxu1 %v4537_v58 }
 0x28e   :  { %3497 = vmatpush3.bf16.msra.mxu1 %v2560_v16 }
 0x28f   :  { %3498 = vmatprep.subr.bf16.mxu1 %v4537_v58 }
 0x292   :  { %3500 = vmatpush3.bf16.msra.mxu1 %v2561_v17 }
 0x293   :  { %3501 = vmatprep.subr.bf16.mxu1 %v4537_v58 }
 0x296   :  { %3503 = vmatpush3.bf16.msra.mxu1 %v2562_v18 }
 0x297   :  { %3504 = vmatprep.subr.bf16.mxu1 %v4537_v58 }
 0x29a   :  { %3506 = vmatpush3.bf16.msra.mxu1 %v2563_v19 }
 0x350   :  { %v2596_v20 = vpop.f32.mrb[2].mxu1 }
 0x351   :  { %v2597_v22 = vpop.f32.mrb[3].mxu1 }
 0x352   :  { %v2598_v23 = vadd.f32 %v2597_v22, %v2596_v20 }
 0x354   :  { %v2326_v24 = vadd.f32 %v2598_v23, %v2444_v21 }
 0x356   :  { %v2329_v25 = vmax.f32 %v2326_v24, 0.0 }
 0x358   :  { %2649 = vmatmul.mubr.f32.vlgmr.msra.gmra.mrb[4].mxu1 %v2329_v25 }
 0x42b   :  { %v2435_v27 = vpop.f32.mrb[4].mxu1 }
 0x42c   :  { %v2436_v29 = vadd.f32 %v2445_v26, %v2435_v27  ;;  %v2650_v30 = vpop.f32.mrb[5].mxu1 }
 0x42e   :  { %2439 = vst [vmem:[%s5947_s7] sm:$0xff] %v2436_v29 }

</bundles_post_ra>
